<compile_context>
chip_gen: v5e
topology: v5e:2x2
jax: 0.10.0
libtpu: 0.0.40
codegen_flags: <defaults>
</compile_context>

<pallas_src>
import functools

import jax
import jax.numpy as jnp
import numpy as np
from jax import lax
from jax.experimental import pallas as pl
from jax.experimental.pallas import tpu as pltpu


# ----------------------------- fused kernel ---------------------------------
def _sep_fused_kernel(k, pad, H, W, Cin, Cout,
                      x_ref, w_ref, prm_ref, o_ref,
                      xs_ref, yp_ref, x1p_ref, z1p_ref):
    # prm_ref row layout:
    #   0            : conv bias fused with BN1
    #   1 .. k       : t1 taps (vertical)
    #   k+1          : t1 bias
    #   k+2 .. 2k+1  : t2 taps (horizontal)
    #   2k+2         : t2 bias
    #   2k+3 .. 3k+2 : p1 taps (horizontal)
    #   3k+3         : p1 bias
    #   3k+4 .. 4k+3 : p2 taps (vertical)
    #   4k+4         : p2 bias
    #   4k+5         : BN2 scale (folded)
    #   4k+6         : BN2 bias (folded)

    # ---- zero-padded input tile built directly in VMEM (no wrapper pad / im2col) ----
    xs_ref[...] = jnp.zeros_like(xs_ref)
    xs_ref[pl.ds(1, H), pl.ds(1, W), :] = x_ref[...].astype(jnp.float32)

    # ---- stage 1: 3x3 conv as 9 shifted bf16 MXU matmuls, BN1 folded, ReLU ----
    acc = jnp.zeros((H * W, Cout), jnp.float32)
    for dy in range(3):
        for dx in range(3):
            xt = xs_ref[pl.ds(dy, H), pl.ds(dx, W), :]
            xt = xt.reshape(H * W, Cin).astype(jnp.bfloat16)
            acc = acc + jnp.dot(xt, w_ref[dy * 3 + dx],
                                preferred_element_type=jnp.float32)
    y = jnp.maximum(acc + prm_ref[0], 0.0).reshape(H, W, Cout)

    # ---- y stays in VMEM; zero-padded halo for the depthwise paths ----
    yp_ref[...] = jnp.zeros_like(yp_ref)
    yp_ref[pl.ds(pad, H), pl.ds(pad, W), :] = y

    # ---- t path: (k,1) depthwise then (1,k) depthwise ----
    x1 = jnp.zeros((H, W, Cout), jnp.float32) + prm_ref[k + 1]          # + t1 bias
    for i in range(k):
        x1 = x1 + yp_ref[pl.ds(i, H), pl.ds(pad, W), :] * prm_ref[1 + i]
    x1p_ref[...] = jnp.zeros_like(x1p_ref)
    x1p_ref[:, pl.ds(pad, W), :] = x1                                   # horiz zero pad

    x2 = jnp.zeros((H, W, Cout), jnp.float32) + prm_ref[2 * k + 2]      # + t2 bias
    for j in range(k):
        x2 = x2 + x1p_ref[:, pl.ds(j, W), :] * prm_ref[k + 2 + j]

    # ---- p path: (1,k) depthwise then (k,1) depthwise ----
    z1 = jnp.zeros((H, W, Cout), jnp.float32) + prm_ref[3 * k + 3]      # + p1 bias
    for j in range(k):
        z1 = z1 + yp_ref[pl.ds(pad, H), pl.ds(j, W), :] * prm_ref[2 * k + 3 + j]
    z1p_ref[...] = jnp.zeros_like(z1p_ref)
    z1p_ref[pl.ds(pad, H), :, :] = z1                                   # vert zero pad

    z2 = jnp.zeros((H, W, Cout), jnp.float32) + prm_ref[4 * k + 4]      # + p2 bias
    for i in range(k):
        z2 = z2 + z1p_ref[pl.ds(i, H), :, :] * prm_ref[3 * k + 4 + i]

    # ---- add, folded BN2, ReLU ----
    out = (x2 + z2) * prm_ref[4 * k + 5] + prm_ref[4 * k + 6]
    o_ref[...] = jnp.maximum(out, 0.0)


# ----------------------------- wrapper --------------------------------------
def separation_module_forward(x_nchw, p, kernel_size, eps=1e-5):
    N, Cin, H, W = x_nchw.shape
    Cout = p["conv_w"].shape[0]
    k = kernel_size
    pad = k // 2
    Hp, Wp = H + 2 * pad, W + 2 * pad

    # NHWC, bf16 (MXU operand; halves input DMA bytes)
    x = jnp.transpose(x_nchw, (0, 2, 3, 1)).astype(jnp.bfloat16)

    # fold BN1 into the 3x3 conv weights/bias
    scale1 = p["bn1_gamma"] / jnp.sqrt(p["bn1_var"] + eps)
    w = jnp.transpose(p["conv_w"], (2, 3, 1, 0)).reshape(9, Cin, Cout)   # (tap, Cin, Cout)
    w_fused = (w * scale1[None, None, :]).astype(jnp.bfloat16)
    b1_fused = (p["conv_b"] - p["bn1_mean"]) * scale1 + p["bn1_beta"]

    # fold BN2 into a scale/bias pair
    scale2 = p["bn2_gamma"] / jnp.sqrt(p["bn2_var"] + eps)
    bn2_b = p["bn2_beta"] - p["bn2_mean"] * scale2

    # pack all per-channel parameters into one (4k+7, Cout) array
    prm = jnp.concatenate([
        b1_fused[None, :],
        p["t1_w"].reshape(Cout, k).T, p["t1_b"][None, :],
        p["t2_w"].reshape(Cout, k).T, p["t2_b"][None, :],
        p["p1_w"].reshape(Cout, k).T, p["p1_b"][None, :],
        p["p2_w"].reshape(Cout, k).T, p["p2_b"][None, :],
        scale2[None, :], bn2_b[None, :],
    ], axis=0).astype(jnp.float32)

    kern = functools.partial(_sep_fused_kernel, k, pad, H, W, Cin, Cout)

    out_nhwc = pl.pallas_call(
        kern,
        out_shape=jax.ShapeDtypeStruct((N, H, W, Cout), jnp.float32),
        grid=(N,),
        in_specs=[
            pl.BlockSpec((None, H, W, Cin), lambda n: (n, 0, 0, 0)),
            pl.BlockSpec(w_fused.shape, lambda n: (0, 0, 0)),
            pl.BlockSpec(prm.shape, lambda n: (0, 0)),
        ],
        out_specs=pl.BlockSpec((None, H, W, Cout), lambda n: (n, 0, 0, 0)),
        scratch_shapes=[
            pltpu.VMEM((H + 2, W + 2, Cin), jnp.float32),   # padded input tile
            pltpu.VMEM((Hp, Wp, Cout), jnp.float32),        # padded y (stage-1 output)
            pltpu.VMEM((H, Wp, Cout), jnp.float32),         # t-path horiz-padded x1
            pltpu.VMEM((Hp, W, Cout), jnp.float32),         # p-path vert-padded z1
        ],
        compiler_params=pltpu.CompilerParams(
            dimension_semantics=("parallel",),
            vmem_limit_bytes=32 * 1024 * 1024,
        ),
    )(x, w_fused, prm)

    return jnp.transpose(out_nhwc, (0, 3, 1, 2))   # back to NCHW


# ----------------------------- pure-JAX reference ---------------------------
def reference_forward(x, p, kernel_size, eps=1e-5):
    k = kernel_size
    pad = k // 2
    dn = ("NCHW", "OIHW", "NCHW")
    C = p["conv_w"].shape[0]

    def bn(z, g, b, m, v):
        return ((z - m[None, :, None, None]) / jnp.sqrt(v + eps)[None, :, None, None]
                * g[None, :, None, None] + b[None, :, None, None])

    y = lax.conv_general_dilated(x, p["conv_w"], (1, 1), ((1, 1), (1, 1)),
                                 dimension_numbers=dn)
    y = y + p["conv_b"][None, :, None, None]
    y = jnp.maximum(bn(y, p["bn1_gamma"], p["bn1_beta"],
                       p["bn1_mean"], p["bn1_var"]), 0.0)

    def dw(z, w, b, pad_hw):
        o = lax.conv_general_dilated(z, w, (1, 1), pad_hw,
                                     dimension_numbers=dn, feature_group_count=C)
        return o + b[None, :, None, None]

    x1 = dw(y, p["t1_w"], p["t1_b"], ((pad, pad), (0, 0)))
    x1 = dw(x1, p["t2_w"], p["t2_b"], ((0, 0), (pad, pad)))
    x2 = dw(y, p["p1_w"], p["p1_b"], ((0, 0), (pad, pad)))
    x2 = dw(x2, p["p2_w"], p["p2_b"], ((pad, pad), (0, 0)))
    s = bn(x1 + x2, p["bn2_gamma"], p["bn2_beta"], p["bn2_mean"], p["bn2_var"])
    return jnp.maximum(s, 0.0)


# ----------------------------- main ------------------------------------------
if __name__ == "__main__":
    key = jax.random.PRNGKey(0)
    N, Cin, Cout, H, W, k = 2, 4, 8, 16, 16, 3
    keys = jax.random.split(key, 20)

    def rnd(kk, shape, s=0.1):
        return jax.random.normal(kk, shape, jnp.float32) * s

    params = {
        "conv_w": rnd(keys[0], (Cout, Cin, 3, 3)),
        "conv_b": rnd(keys[1], (Cout,)),
        "bn1_gamma": 1.0 + rnd(keys[2], (Cout,)),
        "bn1_beta": rnd(keys[3], (Cout,)),
        "bn1_mean": rnd(keys[4], (Cout,)),
        "bn1_var": jnp.abs(rnd(keys[5], (Cout,))) + 1.0,
        "t1_w": rnd(keys[6], (Cout, 1, k, 1)),
        "t1_b": rnd(keys[7], (Cout,)),
        "t2_w": rnd(keys[8], (Cout, 1, 1, k)),
        "t2_b": rnd(keys[9], (Cout,)),
        "p1_w": rnd(keys[10], (Cout, 1, 1, k)),
        "p1_b": rnd(keys[11], (Cout,)),
        "p2_w": rnd(keys[12], (Cout, 1, k, 1)),
        "p2_b": rnd(keys[13], (Cout,)),
        "bn2_gamma": 1.0 + rnd(keys[14], (Cout,)),
        "bn2_beta": rnd(keys[15], (Cout,)),
        "bn2_mean": rnd(keys[16], (Cout,)),
        "bn2_var": jnp.abs(rnd(keys[17], (Cout,))) + 1.0,
    }
    x = jax.random.normal(keys[18], (N, Cin, H, W), jnp.float32)

    out = jax.block_until_ready(separation_module_forward(x, params, k))
    ref = jax.block_until_ready(reference_forward(x, params, k))

    assert out.shape == (N, Cout, H, W)
    # tolerance loosened for the bf16 matmul operands (f32 accumulation)
    np.testing.assert_allclose(np.asarray(out), np.asarray(ref),
                               rtol=2e-2, atol=2e-2)
    print("KERNEL_OK")
</pallas_src>

<mosaic_0001>
module attributes {stable_mosaic.version = 11 : i64} {
  func.func @_sep_fused_kernel(%arg0: i32, %arg1: memref<1x16x16x4xbf16, #tpu.memory_space<vmem>>, %arg2: memref<9x4x8xbf16, #tpu.memory_space<vmem>>, %arg3: memref<19x8xf32, #tpu.memory_space<vmem>>, %arg4: memref<1x16x16x8xf32, #tpu.memory_space<vmem>>, %arg5: memref<18x18x4xf32, #tpu.memory_space<vmem>>, %arg6: memref<18x18x8xf32, #tpu.memory_space<vmem>>, %arg7: memref<16x18x8xf32, #tpu.memory_space<vmem>>, %arg8: memref<18x16x8xf32, #tpu.memory_space<vmem>>) attributes {dimension_semantics = [#tpu.dimension_semantics<parallel>], iteration_bounds = array<i64: 2>, scalar_prefetch = 0 : i64, scratch_operands = 4 : i64, tpu.core_type = #tpu.core_type<tc>, window_params = [{transform_indices = @transform_0, window_bounds = array<i64: 1, 16, 16, 4>}, {pipeline_mode = #tpu.pipeline_mode<synchronous>, transform_indices = @transform_1, window_bounds = array<i64: 9, 4, 8>}, {pipeline_mode = #tpu.pipeline_mode<synchronous>, transform_indices = @transform_2, window_bounds = array<i64: 19, 8>}, {transform_indices = @transform_3, window_bounds = array<i64: 1, 16, 16, 8>}]} {
    %cst = arith.constant 0.000000e+00 : f32
    %0 = vector.broadcast %cst : f32 to vector<18x18x4xf32>
    %c0 = arith.constant 0 : index
    %c0_0 = arith.constant 0 : index
    %c0_1 = arith.constant 0 : index
    %1 = vector.load %arg5[%c0, %c0_0, %c0_1] : memref<18x18x4xf32, #tpu.memory_space<vmem>>, vector<18x18x4xf32>
    tpu.vector_store %arg5[%c0, %c0_0, %c0_1], %0 {strides = array<i32>} : memref<18x18x4xf32, #tpu.memory_space<vmem>>, vector<18x18x4xf32>,
    %c0_2 = arith.constant 0 : index
    %c0_3 = arith.constant 0 : index
    %c0_4 = arith.constant 0 : index
    %c0_5 = arith.constant 0 : index
    %2 = vector.load %arg1[%c0_2, %c0_3, %c0_4, %c0_5] : memref<1x16x16x4xbf16, #tpu.memory_space<vmem>>, vector<1x16x16x4xbf16>
    %3 = vector.shape_cast %2 : vector<1x16x16x4xbf16> to vector<16x16x4xbf16>
    %4 = arith.extf %3 : vector<16x16x4xbf16> to vector<16x16x4xf32>
    %c1 = arith.constant 1 : index
    %c1_6 = arith.constant 1 : index
    %c0_7 = arith.constant 0 : index
    %5 = vector.load %arg5[%c1, %c1_6, %c0_7] : memref<18x18x4xf32, #tpu.memory_space<vmem>>, vector<16x16x4xf32>
    tpu.vector_store %arg5[%c1, %c1_6, %c0_7], %4 {strides = array<i32>} : memref<18x18x4xf32, #tpu.memory_space<vmem>>, vector<16x16x4xf32>,
    %cst_8 = arith.constant 0.000000e+00 : f32
    %6 = vector.broadcast %cst_8 : f32 to vector<256x8xf32>
    %c0_9 = arith.constant 0 : index
    %c0_10 = arith.constant 0 : index
    %c0_11 = arith.constant 0 : index
    %7 = vector.load %arg5[%c0_9, %c0_10, %c0_11] : memref<18x18x4xf32, #tpu.memory_space<vmem>>, vector<16x16x4xf32>
    %8 = vector.shape_cast %7 : vector<16x16x4xf32> to vector<256x4xf32>
    %9 = arith.truncf %8 : vector<256x4xf32> to vector<256x4xbf16>
    %c0_12 = arith.constant 0 : index
    %c0_13 = arith.constant 0 : index
    %c0_14 = arith.constant 0 : index
    %10 = vector.load %arg2[%c0_12, %c0_13, %c0_14] : memref<9x4x8xbf16, #tpu.memory_space<vmem>>, vector<1x4x8xbf16>
    %11 = vector.shape_cast %10 : vector<1x4x8xbf16> to vector<4x8xbf16>
    %cst_15 = arith.constant dense<0.000000e+00> : vector<256x8xf32>
    %12 = tpu.matmul %9, %11, %cst_15 {dimension_numbers = #tpu.dot_dimension_numbers<[1], [0], [0], [1], [0, 0, 1, 1], [], []>} : vector<256x4xbf16>, vector<4x8xbf16>, vector<256x8xf32> -> vector<256x8xf32>
    %13 = arith.addf %6, %12 : vector<256x8xf32>
    %c0_16 = arith.constant 0 : index
    %c1_17 = arith.constant 1 : index
    %c0_18 = arith.constant 0 : index
    %14 = vector.load %arg5[%c0_16, %c1_17, %c0_18] : memref<18x18x4xf32, #tpu.memory_space<vmem>>, vector<16x16x4xf32>
    %15 = vector.shape_cast %14 : vector<16x16x4xf32> to vector<256x4xf32>
    %16 = arith.truncf %15 : vector<256x4xf32> to vector<256x4xbf16>
    %c1_19 = arith.constant 1 : index
    %c0_20 = arith.constant 0 : index
    %c0_21 = arith.constant 0 : index
    %17 = vector.load %arg2[%c1_19, %c0_20, %c0_21] : memref<9x4x8xbf16, #tpu.memory_space<vmem>>, vector<1x4x8xbf16>
    %18 = vector.shape_cast %17 : vector<1x4x8xbf16> to vector<4x8xbf16>
    %cst_22 = arith.constant dense<0.000000e+00> : vector<256x8xf32>
    %19 = tpu.matmul %16, %18, %cst_22 {dimension_numbers = #tpu.dot_dimension_numbers<[1], [0], [0], [1], [0, 0, 1, 1], [], []>} : vector<256x4xbf16>, vector<4x8xbf16>, vector<256x8xf32> -> vector<256x8xf32>
    %20 = arith.addf %13, %19 : vector<256x8xf32>
    %c0_23 = arith.constant 0 : index
    %c2 = arith.constant 2 : index
    %c0_24 = arith.constant 0 : index
    %21 = vector.load %arg5[%c0_23, %c2, %c0_24] : memref<18x18x4xf32, #tpu.memory_space<vmem>>, vector<16x16x4xf32>
    %22 = vector.shape_cast %21 : vector<16x16x4xf32> to vector<256x4xf32>
    %23 = arith.truncf %22 : vector<256x4xf32> to vector<256x4xbf16>
    %c2_25 = arith.constant 2 : index
    %c0_26 = arith.constant 0 : index
    %c0_27 = arith.constant 0 : index
    %24 = vector.load %arg2[%c2_25, %c0_26, %c0_27] : memref<9x4x8xbf16, #tpu.memory_space<vmem>>, vector<1x4x8xbf16>
    %25 = vector.shape_cast %24 : vector<1x4x8xbf16> to vector<4x8xbf16>
    %cst_28 = arith.constant dense<0.000000e+00> : vector<256x8xf32>
    %26 = tpu.matmul %23, %25, %cst_28 {dimension_numbers = #tpu.dot_dimension_numbers<[1], [0], [0], [1], [0, 0, 1, 1], [], []>} : vector<256x4xbf16>, vector<4x8xbf16>, vector<256x8xf32> -> vector<256x8xf32>
    %27 = arith.addf %20, %26 : vector<256x8xf32>
    %c1_29 = arith.constant 1 : index
    %c0_30 = arith.constant 0 : index
    %c0_31 = arith.constant 0 : index
    %28 = vector.load %arg5[%c1_29, %c0_30, %c0_31] : memref<18x18x4xf32, #tpu.memory_space<vmem>>, vector<16x16x4xf32>
    %29 = vector.shape_cast %28 : vector<16x16x4xf32> to vector<256x4xf32>
    %30 = arith.truncf %29 : vector<256x4xf32> to vector<256x4xbf16>
    %c3 = arith.constant 3 : index
    %c0_32 = arith.constant 0 : index
    %c0_33 = arith.constant 0 : index
    %31 = vector.load %arg2[%c3, %c0_32, %c0_33] : memref<9x4x8xbf16, #tpu.memory_space<vmem>>, vector<1x4x8xbf16>
    %32 = vector.shape_cast %31 : vector<1x4x8xbf16> to vector<4x8xbf16>
    %cst_34 = arith.constant dense<0.000000e+00> : vector<256x8xf32>
    %33 = tpu.matmul %30, %32, %cst_34 {dimension_numbers = #tpu.dot_dimension_numbers<[1], [0], [0], [1], [0, 0, 1, 1], [], []>} : vector<256x4xbf16>, vector<4x8xbf16>, vector<256x8xf32> -> vector<256x8xf32>
    %34 = arith.addf %27, %33 : vector<256x8xf32>
    %c1_35 = arith.constant 1 : index
    %c1_36 = arith.constant 1 : index
    %c0_37 = arith.constant 0 : index
    %35 = vector.load %arg5[%c1_35, %c1_36, %c0_37] : memref<18x18x4xf32, #tpu.memory_space<vmem>>, vector<16x16x4xf32>
    %36 = vector.shape_cast %35 : vector<16x16x4xf32> to vector<256x4xf32>
    %37 = arith.truncf %36 : vector<256x4xf32> to vector<256x4xbf16>
    %c4 = arith.constant 4 : index
    %c0_38 = arith.constant 0 : index
    %c0_39 = arith.constant 0 : index
    %38 = vector.load %arg2[%c4, %c0_38, %c0_39] : memref<9x4x8xbf16, #tpu.memory_space<vmem>>, vector<1x4x8xbf16>
    %39 = vector.shape_cast %38 : vector<1x4x8xbf16> to vector<4x8xbf16>
    %cst_40 = arith.constant dense<0.000000e+00> : vector<256x8xf32>
    %40 = tpu.matmul %37, %39, %cst_40 {dimension_numbers = #tpu.dot_dimension_numbers<[1], [0], [0], [1], [0, 0, 1, 1], [], []>} : vector<256x4xbf16>, vector<4x8xbf16>, vector<256x8xf32> -> vector<256x8xf32>
    %41 = arith.addf %34, %40 : vector<256x8xf32>
    %c1_41 = arith.constant 1 : index
    %c2_42 = arith.constant 2 : index
    %c0_43 = arith.constant 0 : index
    %42 = vector.load %arg5[%c1_41, %c2_42, %c0_43] : memref<18x18x4xf32, #tpu.memory_space<vmem>>, vector<16x16x4xf32>
    %43 = vector.shape_cast %42 : vector<16x16x4xf32> to vector<256x4xf32>
    %44 = arith.truncf %43 : vector<256x4xf32> to vector<256x4xbf16>
    %c5 = arith.constant 5 : index
    %c0_44 = arith.constant 0 : index
    %c0_45 = arith.constant 0 : index
    %45 = vector.load %arg2[%c5, %c0_44, %c0_45] : memref<9x4x8xbf16, #tpu.memory_space<vmem>>, vector<1x4x8xbf16>
    %46 = vector.shape_cast %45 : vector<1x4x8xbf16> to vector<4x8xbf16>
    %cst_46 = arith.constant dense<0.000000e+00> : vector<256x8xf32>
    %47 = tpu.matmul %44, %46, %cst_46 {dimension_numbers = #tpu.dot_dimension_numbers<[1], [0], [0], [1], [0, 0, 1, 1], [], []>} : vector<256x4xbf16>, vector<4x8xbf16>, vector<256x8xf32> -> vector<256x8xf32>
    %48 = arith.addf %41, %47 : vector<256x8xf32>
    %c2_47 = arith.constant 2 : index
    %c0_48 = arith.constant 0 : index
    %c0_49 = arith.constant 0 : index
    %49 = vector.load %arg5[%c2_47, %c0_48, %c0_49] : memref<18x18x4xf32, #tpu.memory_space<vmem>>, vector<16x16x4xf32>
    %50 = vector.shape_cast %49 : vector<16x16x4xf32> to vector<256x4xf32>
    %51 = arith.truncf %50 : vector<256x4xf32> to vector<256x4xbf16>
    %c6 = arith.constant 6 : index
    %c0_50 = arith.constant 0 : index
    %c0_51 = arith.constant 0 : index
    %52 = vector.load %arg2[%c6, %c0_50, %c0_51] : memref<9x4x8xbf16, #tpu.memory_space<vmem>>, vector<1x4x8xbf16>
    %53 = vector.shape_cast %52 : vector<1x4x8xbf16> to vector<4x8xbf16>
    %cst_52 = arith.constant dense<0.000000e+00> : vector<256x8xf32>
    %54 = tpu.matmul %51, %53, %cst_52 {dimension_numbers = #tpu.dot_dimension_numbers<[1], [0], [0], [1], [0, 0, 1, 1], [], []>} : vector<256x4xbf16>, vector<4x8xbf16>, vector<256x8xf32> -> vector<256x8xf32>
    %55 = arith.addf %48, %54 : vector<256x8xf32>
    %c2_53 = arith.constant 2 : index
    %c1_54 = arith.constant 1 : index
    %c0_55 = arith.constant 0 : index
    %56 = vector.load %arg5[%c2_53, %c1_54, %c0_55] : memref<18x18x4xf32, #tpu.memory_space<vmem>>, vector<16x16x4xf32>
    %57 = vector.shape_cast %56 : vector<16x16x4xf32> to vector<256x4xf32>
    %58 = arith.truncf %57 : vector<256x4xf32> to vector<256x4xbf16>
    %c7 = arith.constant 7 : index
    %c0_56 = arith.constant 0 : index
    %c0_57 = arith.constant 0 : index
    %59 = vector.load %arg2[%c7, %c0_56, %c0_57] : memref<9x4x8xbf16, #tpu.memory_space<vmem>>, vector<1x4x8xbf16>
    %60 = vector.shape_cast %59 : vector<1x4x8xbf16> to vector<4x8xbf16>
    %cst_58 = arith.constant dense<0.000000e+00> : vector<256x8xf32>
    %61 = tpu.matmul %58, %60, %cst_58 {dimension_numbers = #tpu.dot_dimension_numbers<[1], [0], [0], [1], [0, 0, 1, 1], [], []>} : vector<256x4xbf16>, vector<4x8xbf16>, vector<256x8xf32> -> vector<256x8xf32>
    %62 = arith.addf %55, %61 : vector<256x8xf32>
    %c2_59 = arith.constant 2 : index
    %c2_60 = arith.constant 2 : index
    %c0_61 = arith.constant 0 : index
    %63 = vector.load %arg5[%c2_59, %c2_60, %c0_61] : memref<18x18x4xf32, #tpu.memory_space<vmem>>, vector<16x16x4xf32>
    %64 = vector.shape_cast %63 : vector<16x16x4xf32> to vector<256x4xf32>
    %65 = arith.truncf %64 : vector<256x4xf32> to vector<256x4xbf16>
    %c8 = arith.constant 8 : index
    %c0_62 = arith.constant 0 : index
    %c0_63 = arith.constant 0 : index
    %66 = vector.load %arg2[%c8, %c0_62, %c0_63] : memref<9x4x8xbf16, #tpu.memory_space<vmem>>, vector<1x4x8xbf16>
    %67 = vector.shape_cast %66 : vector<1x4x8xbf16> to vector<4x8xbf16>
    %cst_64 = arith.constant dense<0.000000e+00> : vector<256x8xf32>
    %68 = tpu.matmul %65, %67, %cst_64 {dimension_numbers = #tpu.dot_dimension_numbers<[1], [0], [0], [1], [0, 0, 1, 1], [], []>} : vector<256x4xbf16>, vector<4x8xbf16>, vector<256x8xf32> -> vector<256x8xf32>
    %69 = arith.addf %62, %68 : vector<256x8xf32>
    %c0_65 = arith.constant 0 : index
    %c0_66 = arith.constant 0 : index
    %70 = vector.load %arg3[%c0_65, %c0_66] : memref<19x8xf32, #tpu.memory_space<vmem>>, vector<1x8xf32>
    %71 = vector.shape_cast %70 : vector<1x8xf32> to vector<8xf32>
    %72 = vector.shape_cast %71 : vector<8xf32> to vector<1x8xf32>
    %73 = vector.broadcast %72 : vector<1x8xf32> to vector<256x8xf32>
    %74 = arith.addf %69, %73 : vector<256x8xf32>
    %cst_67 = arith.constant 0.000000e+00 : f32
    %75 = vector.broadcast %cst_67 : f32 to vector<256x8xf32>
    %76 = arith.maximumf %74, %75 : vector<256x8xf32>
    %77 = vector.shape_cast %76 : vector<256x8xf32> to vector<16x16x8xf32>
    %cst_68 = arith.constant 0.000000e+00 : f32
    %78 = vector.broadcast %cst_68 : f32 to vector<18x18x8xf32>
    %c0_69 = arith.constant 0 : index
    %c0_70 = arith.constant 0 : index
    %c0_71 = arith.constant 0 : index
    %79 = vector.load %arg6[%c0_69, %c0_70, %c0_71] : memref<18x18x8xf32, #tpu.memory_space<vmem>>, vector<18x18x8xf32>
    tpu.vector_store %arg6[%c0_69, %c0_70, %c0_71], %78 {strides = array<i32>} : memref<18x18x8xf32, #tpu.memory_space<vmem>>, vector<18x18x8xf32>,
    %c1_72 = arith.constant 1 : index
    %c1_73 = arith.constant 1 : index
    %c0_74 = arith.constant 0 : index
    %80 = vector.load %arg6[%c1_72, %c1_73, %c0_74] : memref<18x18x8xf32, #tpu.memory_space<vmem>>, vector<16x16x8xf32>
    tpu.vector_store %arg6[%c1_72, %c1_73, %c0_74], %77 {strides = array<i32>} : memref<18x18x8xf32, #tpu.memory_space<vmem>>, vector<16x16x8xf32>,
    %cst_75 = arith.constant 0.000000e+00 : f32
    %81 = vector.broadcast %cst_75 : f32 to vector<16x16x8xf32>
    %c4_76 = arith.constant 4 : index
    %c0_77 = arith.constant 0 : index
    %82 = vector.load %arg3[%c4_76, %c0_77] : memref<19x8xf32, #tpu.memory_space<vmem>>, vector<1x8xf32>
    %83 = vector.shape_cast %82 : vector<1x8xf32> to vector<8xf32>
    %84 = vector.shape_cast %83 : vector<8xf32> to vector<1x1x8xf32>
    %85 = vector.broadcast %84 : vector<1x1x8xf32> to vector<16x16x8xf32>
    %86 = arith.addf %81, %85 : vector<16x16x8xf32>
    %c0_78 = arith.constant 0 : index
    %c1_79 = arith.constant 1 : index
    %c0_80 = arith.constant 0 : index
    %87 = vector.load %arg6[%c0_78, %c1_79, %c0_80] : memref<18x18x8xf32, #tpu.memory_space<vmem>>, vector<16x16x8xf32>
    %c1_81 = arith.constant 1 : index
    %c0_82 = arith.constant 0 : index
    %88 = vector.load %arg3[%c1_81, %c0_82] : memref<19x8xf32, #tpu.memory_space<vmem>>, vector<1x8xf32>
    %89 = vector.shape_cast %88 : vector<1x8xf32> to vector<8xf32>
    %90 = vector.shape_cast %89 : vector<8xf32> to vector<1x1x8xf32>
    %91 = vector.broadcast %90 : vector<1x1x8xf32> to vector<16x16x8xf32>
    %92 = arith.mulf %87, %91 : vector<16x16x8xf32>
    %93 = arith.addf %86, %92 : vector<16x16x8xf32>
    %c1_83 = arith.constant 1 : index
    %c1_84 = arith.constant 1 : index
    %c0_85 = arith.constant 0 : index
    %94 = vector.load %arg6[%c1_83, %c1_84, %c0_85] : memref<18x18x8xf32, #tpu.memory_space<vmem>>, vector<16x16x8xf32>
    %c2_86 = arith.constant 2 : index
    %c0_87 = arith.constant 0 : index
    %95 = vector.load %arg3[%c2_86, %c0_87] : memref<19x8xf32, #tpu.memory_space<vmem>>, vector<1x8xf32>
    %96 = vector.shape_cast %95 : vector<1x8xf32> to vector<8xf32>
    %97 = vector.shape_cast %96 : vector<8xf32> to vector<1x1x8xf32>
    %98 = vector.broadcast %97 : vector<1x1x8xf32> to vector<16x16x8xf32>
    %99 = arith.mulf %94, %98 : vector<16x16x8xf32>
    %100 = arith.addf %93, %99 : vector<16x16x8xf32>
    %c2_88 = arith.constant 2 : index
    %c1_89 = arith.constant 1 : index
    %c0_90 = arith.constant 0 : index
    %101 = vector.load %arg6[%c2_88, %c1_89, %c0_90] : memref<18x18x8xf32, #tpu.memory_space<vmem>>, vector<16x16x8xf32>
    %c3_91 = arith.constant 3 : index
    %c0_92 = arith.constant 0 : index
    %102 = vector.load %arg3[%c3_91, %c0_92] : memref<19x8xf32, #tpu.memory_space<vmem>>, vector<1x8xf32>
    %103 = vector.shape_cast %102 : vector<1x8xf32> to vector<8xf32>
    %104 = vector.shape_cast %103 : vector<8xf32> to vector<1x1x8xf32>
    %105 = vector.broadcast %104 : vector<1x1x8xf32> to vector<16x16x8xf32>
    %106 = arith.mulf %101, %105 : vector<16x16x8xf32>
    %107 = arith.addf %100, %106 : vector<16x16x8xf32>
    %cst_93 = arith.constant 0.000000e+00 : f32
    %108 = vector.broadcast %cst_93 : f32 to vector<16x18x8xf32>
    %c0_94 = arith.constant 0 : index
    %c0_95 = arith.constant 0 : index
    %c0_96 = arith.constant 0 : index
    %109 = vector.load %arg7[%c0_94, %c0_95, %c0_96] : memref<16x18x8xf32, #tpu.memory_space<vmem>>, vector<16x18x8xf32>
    tpu.vector_store %arg7[%c0_94, %c0_95, %c0_96], %108 {strides = array<i32>} : memref<16x18x8xf32, #tpu.memory_space<vmem>>, vector<16x18x8xf32>,
    %c0_97 = arith.constant 0 : index
    %c1_98 = arith.constant 1 : index
    %c0_99 = arith.constant 0 : index
    %110 = vector.load %arg7[%c0_97, %c1_98, %c0_99] : memref<16x18x8xf32, #tpu.memory_space<vmem>>, vector<16x16x8xf32>
    tpu.vector_store %arg7[%c0_97, %c1_98, %c0_99], %107 {strides = array<i32>} : memref<16x18x8xf32, #tpu.memory_space<vmem>>, vector<16x16x8xf32>,
    %cst_100 = arith.constant 0.000000e+00 : f32
    %111 = vector.broadcast %cst_100 : f32 to vector<16x16x8xf32>
    %c8_101 = arith.constant 8 : index
    %c0_102 = arith.constant 0 : index
    %112 = vector.load %arg3[%c8_101, %c0_102] : memref<19x8xf32, #tpu.memory_space<vmem>>, vector<1x8xf32>
    %113 = vector.shape_cast %112 : vector<1x8xf32> to vector<8xf32>
    %114 = vector.shape_cast %113 : vector<8xf32> to vector<1x1x8xf32>
    %115 = vector.broadcast %114 : vector<1x1x8xf32> to vector<16x16x8xf32>
    %116 = arith.addf %111, %115 : vector<16x16x8xf32>
    %c0_103 = arith.constant 0 : index
    %c0_104 = arith.constant 0 : index
    %c0_105 = arith.constant 0 : index
    %117 = vector.load %arg7[%c0_103, %c0_104, %c0_105] : memref<16x18x8xf32, #tpu.memory_space<vmem>>, vector<16x16x8xf32>
    %c5_106 = arith.constant 5 : index
    %c0_107 = arith.constant 0 : index
    %118 = vector.load %arg3[%c5_106, %c0_107] : memref<19x8xf32, #tpu.memory_space<vmem>>, vector<1x8xf32>
    %119 = vector.shape_cast %118 : vector<1x8xf32> to vector<8xf32>
    %120 = vector.shape_cast %119 : vector<8xf32> to vector<1x1x8xf32>
    %121 = vector.broadcast %120 : vector<1x1x8xf32> to vector<16x16x8xf32>
    %122 = arith.mulf %117, %121 : vector<16x16x8xf32>
    %123 = arith.addf %116, %122 : vector<16x16x8xf32>
    %c0_108 = arith.constant 0 : index
    %c1_109 = arith.constant 1 : index
    %c0_110 = arith.constant 0 : index
    %124 = vector.load %arg7[%c0_108, %c1_109, %c0_110] : memref<16x18x8xf32, #tpu.memory_space<vmem>>, vector<16x16x8xf32>
    %c6_111 = arith.constant 6 : index
    %c0_112 = arith.constant 0 : index
    %125 = vector.load %arg3[%c6_111, %c0_112] : memref<19x8xf32, #tpu.memory_space<vmem>>, vector<1x8xf32>
    %126 = vector.shape_cast %125 : vector<1x8xf32> to vector<8xf32>
    %127 = vector.shape_cast %126 : vector<8xf32> to vector<1x1x8xf32>
    %128 = vector.broadcast %127 : vector<1x1x8xf32> to vector<16x16x8xf32>
    %129 = arith.mulf %124, %128 : vector<16x16x8xf32>
    %130 = arith.addf %123, %129 : vector<16x16x8xf32>
    %c0_113 = arith.constant 0 : index
    %c2_114 = arith.constant 2 : index
    %c0_115 = arith.constant 0 : index
    %131 = vector.load %arg7[%c0_113, %c2_114, %c0_115] : memref<16x18x8xf32, #tpu.memory_space<vmem>>, vector<16x16x8xf32>
    %c7_116 = arith.constant 7 : index
    %c0_117 = arith.constant 0 : index
    %132 = vector.load %arg3[%c7_116, %c0_117] : memref<19x8xf32, #tpu.memory_space<vmem>>, vector<1x8xf32>
    %133 = vector.shape_cast %132 : vector<1x8xf32> to vector<8xf32>
    %134 = vector.shape_cast %133 : vector<8xf32> to vector<1x1x8xf32>
    %135 = vector.broadcast %134 : vector<1x1x8xf32> to vector<16x16x8xf32>
    %136 = arith.mulf %131, %135 : vector<16x16x8xf32>
    %137 = arith.addf %130, %136 : vector<16x16x8xf32>
    %cst_118 = arith.constant 0.000000e+00 : f32
    %138 = vector.broadcast %cst_118 : f32 to vector<16x16x8xf32>
    %c12 = arith.constant 12 : index
    %c0_119 = arith.constant 0 : index
    %139 = vector.load %arg3[%c12, %c0_119] : memref<19x8xf32, #tpu.memory_space<vmem>>, vector<1x8xf32>
    %140 = vector.shape_cast %139 : vector<1x8xf32> to vector<8xf32>
    %141 = vector.shape_cast %140 : vector<8xf32> to vector<1x1x8xf32>
    %142 = vector.broadcast %141 : vector<1x1x8xf32> to vector<16x16x8xf32>
    %143 = arith.addf %138, %142 : vector<16x16x8xf32>
    %c1_120 = arith.constant 1 : index
    %c0_121 = arith.constant 0 : index
    %c0_122 = arith.constant 0 : index
    %144 = vector.load %arg6[%c1_120, %c0_121, %c0_122] : memref<18x18x8xf32, #tpu.memory_space<vmem>>, vector<16x16x8xf32>
    %c9 = arith.constant 9 : index
    %c0_123 = arith.constant 0 : index
    %145 = vector.load %arg3[%c9, %c0_123] : memref<19x8xf32, #tpu.memory_space<vmem>>, vector<1x8xf32>
    %146 = vector.shape_cast %145 : vector<1x8xf32> to vector<8xf32>
    %147 = vector.shape_cast %146 : vector<8xf32> to vector<1x1x8xf32>
    %148 = vector.broadcast %147 : vector<1x1x8xf32> to vector<16x16x8xf32>
    %149 = arith.mulf %144, %148 : vector<16x16x8xf32>
    %150 = arith.addf %143, %149 : vector<16x16x8xf32>
    %c1_124 = arith.constant 1 : index
    %c1_125 = arith.constant 1 : index
    %c0_126 = arith.constant 0 : index
    %151 = vector.load %arg6[%c1_124, %c1_125, %c0_126] : memref<18x18x8xf32, #tpu.memory_space<vmem>>, vector<16x16x8xf32>
    %c10 = arith.constant 10 : index
    %c0_127 = arith.constant 0 : index
    %152 = vector.load %arg3[%c10, %c0_127] : memref<19x8xf32, #tpu.memory_space<vmem>>, vector<1x8xf32>
    %153 = vector.shape_cast %152 : vector<1x8xf32> to vector<8xf32>
    %154 = vector.shape_cast %153 : vector<8xf32> to vector<1x1x8xf32>
    %155 = vector.broadcast %154 : vector<1x1x8xf32> to vector<16x16x8xf32>
    %156 = arith.mulf %151, %155 : vector<16x16x8xf32>
    %157 = arith.addf %150, %156 : vector<16x16x8xf32>
    %c1_128 = arith.constant 1 : index
    %c2_129 = arith.constant 2 : index
    %c0_130 = arith.constant 0 : index
    %158 = vector.load %arg6[%c1_128, %c2_129, %c0_130] : memref<18x18x8xf32, #tpu.memory_space<vmem>>, vector<16x16x8xf32>
    %c11 = arith.constant 11 : index
    %c0_131 = arith.constant 0 : index
    %159 = vector.load %arg3[%c11, %c0_131] : memref<19x8xf32, #tpu.memory_space<vmem>>, vector<1x8xf32>
    %160 = vector.shape_cast %159 : vector<1x8xf32> to vector<8xf32>
    %161 = vector.shape_cast %160 : vector<8xf32> to vector<1x1x8xf32>
    %162 = vector.broadcast %161 : vector<1x1x8xf32> to vector<16x16x8xf32>
    %163 = arith.mulf %158, %162 : vector<16x16x8xf32>
    %164 = arith.addf %157, %163 : vector<16x16x8xf32>
    %cst_132 = arith.constant 0.000000e+00 : f32
    %165 = vector.broadcast %cst_132 : f32 to vector<18x16x8xf32>
    %c0_133 = arith.constant 0 : index
    %c0_134 = arith.constant 0 : index
    %c0_135 = arith.constant 0 : index
    %166 = vector.load %arg8[%c0_133, %c0_134, %c0_135] : memref<18x16x8xf32, #tpu.memory_space<vmem>>, vector<18x16x8xf32>
    tpu.vector_store %arg8[%c0_133, %c0_134, %c0_135], %165 {strides = array<i32>} : memref<18x16x8xf32, #tpu.memory_space<vmem>>, vector<18x16x8xf32>,
    %c1_136 = arith.constant 1 : index
    %c0_137 = arith.constant 0 : index
    %c0_138 = arith.constant 0 : index
    %167 = vector.load %arg8[%c1_136, %c0_137, %c0_138] : memref<18x16x8xf32, #tpu.memory_space<vmem>>, vector<16x16x8xf32>
    tpu.vector_store %arg8[%c1_136, %c0_137, %c0_138], %164 {strides = array<i32>} : memref<18x16x8xf32, #tpu.memory_space<vmem>>, vector<16x16x8xf32>,
    %cst_139 = arith.constant 0.000000e+00 : f32
    %168 = vector.broadcast %cst_139 : f32 to vector<16x16x8xf32>
    %c16 = arith.constant 16 : index
    %c0_140 = arith.constant 0 : index
    %169 = vector.load %arg3[%c16, %c0_140] : memref<19x8xf32, #tpu.memory_space<vmem>>, vector<1x8xf32>
    %170 = vector.shape_cast %169 : vector<1x8xf32> to vector<8xf32>
    %171 = vector.shape_cast %170 : vector<8xf32> to vector<1x1x8xf32>
    %172 = vector.broadcast %171 : vector<1x1x8xf32> to vector<16x16x8xf32>
    %173 = arith.addf %168, %172 : vector<16x16x8xf32>
    %c0_141 = arith.constant 0 : index
    %c0_142 = arith.constant 0 : index
    %c0_143 = arith.constant 0 : index
    %174 = vector.load %arg8[%c0_141, %c0_142, %c0_143] : memref<18x16x8xf32, #tpu.memory_space<vmem>>, vector<16x16x8xf32>
    %c13 = arith.constant 13 : index
    %c0_144 = arith.constant 0 : index
    %175 = vector.load %arg3[%c13, %c0_144] : memref<19x8xf32, #tpu.memory_space<vmem>>, vector<1x8xf32>
    %176 = vector.shape_cast %175 : vector<1x8xf32> to vector<8xf32>
    %177 = vector.shape_cast %176 : vector<8xf32> to vector<1x1x8xf32>
    %178 = vector.broadcast %177 : vector<1x1x8xf32> to vector<16x16x8xf32>
    %179 = arith.mulf %174, %178 : vector<16x16x8xf32>
    %180 = arith.addf %173, %179 : vector<16x16x8xf32>
    %c1_145 = arith.constant 1 : index
    %c0_146 = arith.constant 0 : index
    %c0_147 = arith.constant 0 : index
    %181 = vector.load %arg8[%c1_145, %c0_146, %c0_147] : memref<18x16x8xf32, #tpu.memory_space<vmem>>, vector<16x16x8xf32>
    %c14 = arith.constant 14 : index
    %c0_148 = arith.constant 0 : index
    %182 = vector.load %arg3[%c14, %c0_148] : memref<19x8xf32, #tpu.memory_space<vmem>>, vector<1x8xf32>
    %183 = vector.shape_cast %182 : vector<1x8xf32> to vector<8xf32>
    %184 = vector.shape_cast %183 : vector<8xf32> to vector<1x1x8xf32>
    %185 = vector.broadcast %184 : vector<1x1x8xf32> to vector<16x16x8xf32>
    %186 = arith.mulf %181, %185 : vector<16x16x8xf32>
    %187 = arith.addf %180, %186 : vector<16x16x8xf32>
    %c2_149 = arith.constant 2 : index
    %c0_150 = arith.constant 0 : index
    %c0_151 = arith.constant 0 : index
    %188 = vector.load %arg8[%c2_149, %c0_150, %c0_151] : memref<18x16x8xf32, #tpu.memory_space<vmem>>, vector<16x16x8xf32>
    %c15 = arith.constant 15 : index
    %c0_152 = arith.constant 0 : index
    %189 = vector.load %arg3[%c15, %c0_152] : memref<19x8xf32, #tpu.memory_space<vmem>>, vector<1x8xf32>
    %190 = vector.shape_cast %189 : vector<1x8xf32> to vector<8xf32>
    %191 = vector.shape_cast %190 : vector<8xf32> to vector<1x1x8xf32>
    %192 = vector.broadcast %191 : vector<1x1x8xf32> to vector<16x16x8xf32>
    %193 = arith.mulf %188, %192 : vector<16x16x8xf32>
    %194 = arith.addf %187, %193 : vector<16x16x8xf32>
    %195 = arith.addf %137, %194 : vector<16x16x8xf32>
    %c17 = arith.constant 17 : index
    %c0_153 = arith.constant 0 : index
    %196 = vector.load %arg3[%c17, %c0_153] : memref<19x8xf32, #tpu.memory_space<vmem>>, vector<1x8xf32>
    %197 = vector.shape_cast %196 : vector<1x8xf32> to vector<8xf32>
    %198 = vector.shape_cast %197 : vector<8xf32> to vector<1x1x8xf32>
    %199 = vector.broadcast %198 : vector<1x1x8xf32> to vector<16x16x8xf32>
    %200 = arith.mulf %195, %199 : vector<16x16x8xf32>
    %c18 = arith.constant 18 : index
    %c0_154 = arith.constant 0 : index
    %201 = vector.load %arg3[%c18, %c0_154] : memref<19x8xf32, #tpu.memory_space<vmem>>, vector<1x8xf32>
    %202 = vector.shape_cast %201 : vector<1x8xf32> to vector<8xf32>
    %203 = vector.shape_cast %202 : vector<8xf32> to vector<1x1x8xf32>
    %204 = vector.broadcast %203 : vector<1x1x8xf32> to vector<16x16x8xf32>
    %205 = arith.addf %200, %204 : vector<16x16x8xf32>
    %cst_155 = arith.constant 0.000000e+00 : f32
    %206 = vector.broadcast %cst_155 : f32 to vector<16x16x8xf32>
    %207 = arith.maximumf %205, %206 : vector<16x16x8xf32>
    %c0_156 = arith.constant 0 : index
    %c0_157 = arith.constant 0 : index
    %c0_158 = arith.constant 0 : index
    %c0_159 = arith.constant 0 : index
    %208 = vector.load %arg4[%c0_156, %c0_157, %c0_158, %c0_159] : memref<1x16x16x8xf32, #tpu.memory_space<vmem>>, vector<1x16x16x8xf32>
    %209 = vector.shape_cast %208 : vector<1x16x16x8xf32> to vector<16x16x8xf32>
    %210 = vector.shape_cast %207 : vector<16x16x8xf32> to vector<1x16x16x8xf32>
    tpu.vector_store %arg4[%c0_156, %c0_157, %c0_158, %c0_159], %210 {strides = array<i32>} : memref<1x16x16x8xf32, #tpu.memory_space<vmem>>, vector<1x16x16x8xf32>,
    return
  }
  func.func @transform_0(%arg0: i32) -> (i32, i32, i32, i32) {
    %c0_i32 = arith.constant 0 : i32
    %c0_i32_0 = arith.constant 0 : i32
    %c0_i32_1 = arith.constant 0 : i32
    %c0_i32_2 = arith.constant 0 : i32
    return %arg0, %c0_i32, %c0_i32_0, %c0_i32_1 : i32, i32, i32, i32
  }
  func.func @transform_1(%arg0: i32) -> (i32, i32, i32) {
    %c0_i32 = arith.constant 0 : i32
    %c0_i32_0 = arith.constant 0 : i32
    %c0_i32_1 = arith.constant 0 : i32
    %c0_i32_2 = arith.constant 0 : i32
    return %c0_i32, %c0_i32_0, %c0_i32_1 : i32, i32, i32
  }
  func.func @transform_2(%arg0: i32) -> (i32, i32) {
    %c0_i32 = arith.constant 0 : i32
    %c0_i32_0 = arith.constant 0 : i32
    %c0_i32_1 = arith.constant 0 : i32
    return %c0_i32, %c0_i32_0 : i32, i32
  }
  func.func @transform_3(%arg0: i32) -> (i32, i32, i32, i32) {
    %c0_i32 = arith.constant 0 : i32
    %c0_i32_0 = arith.constant 0 : i32
    %c0_i32_1 = arith.constant 0 : i32
    %c0_i32_2 = arith.constant 0 : i32
    return %arg0, %c0_i32, %c0_i32_0, %c0_i32_1 : i32, i32, i32, i32
  }
}

</mosaic_0001>

<bundles_post_ra>
// kernel: tpu_custom_call.1
= control target key start
LH: loop header
LB: loop body
LE: loop exit
PB: predicated region body
PF: predicated region fallthrough
CT: control target
= control target key end

     0   :  { %s4320_s12 = smov 0   ;;  %s7100_s0 = inlined_call_operand.vmem [shape: bf16[2,16,16,4], index: 0, kind: input, shape index: {}]   ;;  %s7101_s1 = inlined_call_operand.vmem [shape: bf16[9,4,8], index: 1, kind: input, shape index: {}]   ;;  %s7102_s2 = inlined_call_operand.vmem [shape: f32[19,8], index: 2, kind: input, shape index: {}]   ;;  %s7103_s3 = inlined_call_operand.vmem [shape: f32[2,16,16,8], index: 3, kind: output, shape index: {}]  }
   0x1 LB: > { %s3973_s13 = sadd.s32 4294967295, %s4297_s12   ;;  %p3977_p0 = scmp.ge.s32.totalorder %s4297_s12, 1  ;;  %s4297_s12 = sphi %s4320_s12, %s13_s12  }
   0x2   : > { %p137_p1 = scmp.lt.s32.totalorder %s4297_s12, 3 }
   0x4   : > { %p138_p2 = pnand %p3977_p0, %p137_p1 }
   0x6   : > { %141 = sbr.rel (%p138_p2) target bundleno = 940 (0x3ac), region = 32 }
   0xb   : > { %v3982_v0 = vld [vmem:[%s7101_s1 + $0x2] sm:$0x3]  ;;  %vm472_vm0 = vcmask 1041408   ;;  %p161_p3 = scmp.lt.s32.totalorder %s3973_s13, 1  ;;  %vm172_vm1 = vcmask 31744   ;;  %vm175_vm2 = vcmask 25600  }
   0xc   : > { %v474_v1 = vsel %vm472_vm0, %v3982_v0, 0  ;;  %v7104_v2 = vmov 0.0   ;;  %v4015_v11 = vld [vmem:[%s7101_s1 + $0x4] sm:$0x3]  ;;  %v4032_v13 = vld [vmem:[%s7101_s1 + $0x6] sm:$0x3] }
   0xd   : > { %186 = vst.msk [vmem:[#allocation2 + $0x60] sm:$0xff] %vm172_vm1, %v7104_v2  ;;  %4217 = vmatpush.bf16.msra.mxu1 %v474_v1  ;;  %4218 = vmatpush.bf16.msra.mxu2 %v474_v1  ;;  %s7275_s13 = smov (!%p161_p3, %s3973_s13), 1  ;;  %v804_v14 = vsel %vm472_vm0, %v4015_v11, 0  ;;  %v1026_v15 = vsel %vm472_vm0, %v4032_v13, 0  ;;  %v373_v16 = vld [vmem:[%s7101_s1] sm:$0x3] }
   0xe   : > { %187 = vst.msk [vmem:[#allocation2 + $0x68] sm:$0xff] %vm172_vm1, %v7104_v2  ;;  %4219 = vmatpush.bf16.msra.mxu3 %v474_v1  ;;  %483 = vmatpush.bf16.msra.mxu0 %v474_v1  ;;  %s4136_s16 = sshll.u32 %s7275_s13, 7  ;;  %v614_v17 = vsel %vm472_vm0, %v373_v16, 0  ;;  %v4049_v18 = vld [vmem:[%s7101_s1 + $0x8] sm:$0x3]  ;;  %vm2326_vm3 = vcmask 64512  }
   0xf   : > { %188 = vst.msk [vmem:[#allocation2 + $0x70] sm:$0x3] %vm175_vm2, %v7104_v2  ;;  %s4346_s19 = scalar_lea.vmem %s7100_s0, %s4136_s16  ;;  %v1248_v19 = vsel %vm472_vm0, %v4049_v18, 0  ;;  %vm2329_vm4 = vcmask 58368   ;;  %s4137_s24 = sshll.u32 %s7275_s13, 8 }
  0x10   : > { %173 = vst.msk [vmem:[#allocation2] sm:$0xff] %vm172_vm1, %v7104_v2  ;;  %v4204_v3 = vld [vmem:[%s4346_s19 + $0x18] sm:$0xff]   ;;  %v4205_v24 = vld [vmem:[%s4346_s19 + $0x20] sm:$0xff]   ;;  %v4206_v36 = vld [vmem:[%s4346_s19 + $0x28] sm:$0xff]   ;;  %s5681_s26 = scalar_lea.vmem %s7103_s3, %s4137_s24 }
  0x11   : > { %174 = vst.msk [vmem:[#allocation2 + $0x8] sm:$0xff] %vm172_vm1, %v7104_v2  ;;  %v4152_v4 = vunpack.c.l.bf16 %v4204_v3  ;;  %v4153_v5 = vunpack.c.h.bf16 %v4204_v3  ;;  %813 = vmatpush.bf16.msrb.mxu2 %v804_v14  ;;  %623 = vmatpush.bf16.msrb.mxu1 %v614_v17  ;;  %v4208_v20 = vld [vmem:[%s4346_s19 + $0x38] sm:$0xff]   ;;  %v4209_v27 = vld [vmem:[%s4346_s19 + $0x40] sm:$0xff]   ;;  %v4156_v28 = vunpack.c.l.bf16 %v4205_v24  ;;  %v4157_v29 = vunpack.c.h.bf16 %v4205_v24  ;;  %v4210_v40 = vld [vmem:[%s4346_s19 + $0x48] sm:$0xff]  }
  0x12   : > { %176 = vst.msk [vmem:[#allocation2 + $0x10] sm:$0x3] %vm175_vm2, %v7104_v2  ;;  %1035 = vmatpush.bf16.msrb.mxu3 %v1026_v15  ;;  %1257 = vmatpush.bf16.msrb.mxu0 %v1248_v19  ;;  %v4212_v21 = vld [vmem:[%s4346_s19 + $0x58] sm:$0xff]   ;;  %v4168_v22 = vunpack.c.l.bf16 %v4208_v20  ;;  %v4169_v23 = vunpack.c.h.bf16 %v4208_v20  ;;  %v4213_v30 = vld [vmem:[%s4346_s19 + $0x60] sm:$0xff]   ;;  %v4172_v31 = vunpack.c.l.bf16 %v4209_v27  ;;  %v4173_v32 = vunpack.c.h.bf16 %v4209_v27  ;;  %v4214_v46 = vld [vmem:[%s4346_s19 + $0x68] sm:$0xff]  }
  0x13   : > { %177 = vst.msk [vmem:[#allocation2 + $0x18] sm:$0xff] %vm172_vm1, %v7104_v2  ;;  %v4184_v25 = vunpack.c.l.bf16 %v4212_v21  ;;  %v4185_v26 = vunpack.c.h.bf16 %v4212_v21  ;;  %v4139_v33 = vld [vmem:[%s4346_s19] sm:$0xff]   ;;  %v4188_v34 = vunpack.c.l.bf16 %v4213_v30  ;;  %v4189_v35 = vunpack.c.h.bf16 %v4213_v30  ;;  %v4202_v52 = vld [vmem:[%s4346_s19 + $0x8] sm:$0xff]   ;;  %v4207_v57 = vld [vmem:[%s4346_s19 + $0x30] sm:$0xff]  }
  0x14   : > { %178 = vst.msk [vmem:[#allocation2 + $0x20] sm:$0xff] %vm172_vm1, %v7104_v2  ;;  %v4140_v37 = vunpack.c.l.bf16 %v4139_v33  ;;  %v4141_v39 = vunpack.c.h.bf16 %v4139_v33  ;;  %v4160_v42 = vunpack.c.l.bf16 %v4206_v36  ;;  %v4161_v45 = vunpack.c.h.bf16 %v4206_v36  ;;  %v4211_v60 = vld [vmem:[%s4346_s19 + $0x50] sm:$0xff]   ;;  %v4066_v36 = vld [vmem:[%s7101_s1 + $0xa] sm:$0x3] }
  0x15   : > { %299 = vst.msk [vmem:[#allocation2 + $0x61] sm:$0xff] %vm172_vm1, %v4152_v4  ;;  %v4176_v48 = vunpack.c.l.bf16 %v4210_v40  ;;  %v4177_v51 = vunpack.c.h.bf16 %v4210_v40  ;;  %v4192_v54 = vunpack.c.l.bf16 %v4214_v46  ;;  %v4193_v56 = vunpack.c.h.bf16 %v4214_v46  ;;  %v4215_v0 = vld [vmem:[%s4346_s19 + $0x70] sm:$0xff]  }
  0x16   : > { %300 = vst.msk [vmem:[#allocation2 + $0x69] sm:$0xff] %vm172_vm1, %v4153_v5  ;;  %v4144_v58 = vunpack.c.l.bf16 %v4202_v52  ;;  %v4145_v59 = vunpack.c.h.bf16 %v4202_v52  ;;  %v4164_v61 = vunpack.c.l.bf16 %v4207_v57  ;;  %v4165_v63 = vunpack.c.h.bf16 %v4207_v57 }
  0x17   : > { %179 = vst.msk [vmem:[#allocation2 + $0x28] sm:$0x3] %vm175_vm2, %v7104_v2  ;;  %v4180_v3 = vunpack.c.l.bf16 %v4211_v60  ;;  %v4181_v5 = vunpack.c.h.bf16 %v4211_v60  ;;  %v4197_v11 = vunpack.c.h.bf16 %v4215_v0  ;;  %v1470_v40 = vsel %vm472_vm0, %v4066_v36, 0 }
  0x18   : > { %180 = vst.msk [vmem:[#allocation2 + $0x30] sm:$0xff] %vm172_vm1, %v7104_v2  ;;  %v374_v9 = vld [vmem:[#allocation2 + $0x1] sm:$0xff] }
  0x19   : > { %181 = vst.msk [vmem:[#allocation2 + $0x38] sm:$0xff] %vm172_vm1, %v7104_v2  ;;  %v375_v10 = vld [vmem:[#allocation2 + $0x9] sm:$0xff] }
  0x1a   : > { %182 = vst.msk [vmem:[#allocation2 + $0x40] sm:$0x3] %vm175_vm2, %v7104_v2  ;;  %v406_v12 = vpack.c.bf16 %v375_v10, %v374_v9  ;;  %v4196_v10 = vunpack.c.l.bf16 %v4215_v0  ;;  %v326_v52 = vld [vmem:[#allocation2 + $0x8] sm:$0xff] }
  0x1b   : > { %183 = vst.msk [vmem:[#allocation2 + $0x48] sm:$0xff] %vm172_vm1, %v7104_v2  ;;  %v706_v57 = vld [vmem:[#allocation2 + $0xa] sm:$0xff] }
  0x1c   : > { %v382_v6 = vld [vmem:[#allocation2 + $0x61] sm:$0xff]  ;;  %184 = vst.msk [vmem:[#allocation2 + $0x50] sm:$0xff] %vm172_vm1, %v7104_v2  ;;  %3983 = vmatmul.msk.bf16.vlgmr.msra.gmra.mxu0 %vm172_vm1, %v406_v12 }
  0x1d   : > { %v383_v7 = vld [vmem:[#allocation2 + $0x69] sm:$0xff]  ;;  %185 = vst.msk [vmem:[#allocation2 + $0x58] sm:$0x3] %vm175_vm2, %v7104_v2 }
  0x1e   : > { %v4373_v8 = vpack.c.bf16 %v383_v7, %v382_v6  ;;  %189 = vst.msk [vmem:[#allocation2 + $0x78] sm:$0xff] %vm172_vm1, %v7104_v2  ;;  %v4203_v6 = vld [vmem:[%s4346_s19 + $0x10] sm:$0xff]  }
  0x1f   : > { %190 = vst.msk [vmem:[#allocation2 + $0x80] sm:$0xff] %vm172_vm1, %v7104_v2  ;;  %v4148_v14 = vunpack.c.l.bf16 %v4203_v6  ;;  %v4149_v16 = vunpack.c.h.bf16 %v4203_v6 }
  0x20   : > { %3987 = vmatmul.msk.bf16.vlgmr.msra.gmra.mxu1 %vm172_vm1, %v4373_v8  ;;  %191 = vst.msk [vmem:[#allocation2 + $0x88] sm:$0x3] %vm175_vm2, %v7104_v2 }
  0x21   : > { %192 = vst.msk [vmem:[#allocation2 + $0x90] sm:$0xff] %vm172_vm1, %v7104_v2  ;;  %1479 = vmatpush.bf16.msra.mxu1 %v1470_v40 }
  0x22   : > { %193 = vst.msk [vmem:[#allocation2 + $0x98] sm:$0xff] %vm172_vm1, %v7104_v2 }
  0x23   : > { %194 = vst.msk [vmem:[#allocation2 + $0xa0] sm:$0x3] %vm175_vm2, %v7104_v2 }
  0x24   : > { %195 = vst.msk [vmem:[#allocation2 + $0xa8] sm:$0xff] %vm172_vm1, %v7104_v2 }
  0x25   : > { %196 = vst.msk [vmem:[#allocation2 + $0xb0] sm:$0xff] %vm172_vm1, %v7104_v2 }
  0x26   : > { %197 = vst.msk [vmem:[#allocation2 + $0xb8] sm:$0x3] %vm175_vm2, %v7104_v2 }
  0x27   : > { %198 = vst.msk [vmem:[#allocation2 + $0xc0] sm:$0xff] %vm172_vm1, %v7104_v2 }
  0x28   : > { %199 = vst.msk [vmem:[#allocation2 + $0xc8] sm:$0xff] %vm172_vm1, %v7104_v2 }
  0x29   : > { %200 = vst.msk [vmem:[#allocation2 + $0xd0] sm:$0x3] %vm175_vm2, %v7104_v2 }
  0x2a   : > { %201 = vst.msk [vmem:[#allocation2 + $0xd8] sm:$0xff] %vm172_vm1, %v7104_v2 }
  0x2b   : > { %202 = vst.msk [vmem:[#allocation2 + $0xe0] sm:$0xff] %vm172_vm1, %v7104_v2 }
  0x2c   : > { %203 = vst.msk [vmem:[#allocation2 + $0xe8] sm:$0x3] %vm175_vm2, %v7104_v2 }
  0x2d   : > { %204 = vst.msk [vmem:[#allocation2 + $0xf0] sm:$0xff] %vm172_vm1, %v7104_v2 }
  0x2e   : > { %205 = vst.msk [vmem:[#allocation2 + $0xf8] sm:$0xff] %vm172_vm1, %v7104_v2 }
  0x2f   : > { %206 = vst.msk [vmem:[#allocation2 + $0x100] sm:$0x3] %vm175_vm2, %v7104_v2 }
  0x30   : > { %207 = vst.msk [vmem:[#allocation2 + $0x108] sm:$0xff] %vm172_vm1, %v7104_v2 }
  0x31   : > { %208 = vst.msk [vmem:[#allocation2 + $0x110] sm:$0xff] %vm172_vm1, %v7104_v2 }
  0x32   : > { %209 = vst.msk [vmem:[#allocation2 + $0x118] sm:$0x3] %vm175_vm2, %v7104_v2 }
  0x33   : > { %210 = vst.msk [vmem:[#allocation2 + $0x120] sm:$0xff] %vm172_vm1, %v7104_v2 }
  0x34   : > { %211 = vst.msk [vmem:[#allocation2 + $0x128] sm:$0xff] %vm172_vm1, %v7104_v2 }
  0x35   : > { %212 = vst.msk [vmem:[#allocation2 + $0x130] sm:$0x3] %vm175_vm2, %v7104_v2 }
  0x36   : > { %213 = vst.msk [vmem:[#allocation2 + $0x138] sm:$0xff] %vm172_vm1, %v7104_v2 }
  0x37   : > { %214 = vst.msk [vmem:[#allocation2 + $0x140] sm:$0xff] %vm172_vm1, %v7104_v2 }
  0x38   : > { %215 = vst.msk [vmem:[#allocation2 + $0x148] sm:$0x3] %vm175_vm2, %v7104_v2 }
  0x39   : > { %216 = vst.msk [vmem:[#allocation2 + $0x150] sm:$0xff] %vm172_vm1, %v7104_v2 }
  0x3a   : > { %217 = vst.msk [vmem:[#allocation2 + $0x158] sm:$0xff] %vm172_vm1, %v7104_v2 }
  0x3b   : > { %218 = vst.msk [vmem:[#allocation2 + $0x160] sm:$0x3] %vm175_vm2, %v7104_v2 }
  0x3c   : > { %219 = vst.msk [vmem:[#allocation2 + $0x168] sm:$0xff] %vm172_vm1, %v7104_v2 }
  0x3d   : > { %220 = vst.msk [vmem:[#allocation2 + $0x170] sm:$0xff] %vm172_vm1, %v7104_v2 }
  0x3e   : > { %221 = vst.msk [vmem:[#allocation2 + $0x178] sm:$0x3] %vm175_vm2, %v7104_v2 }
  0x3f   : > { %222 = vst.msk [vmem:[#allocation2 + $0x180] sm:$0xff] %vm172_vm1, %v7104_v2 }
  0x40   : > { %223 = vst.msk [vmem:[#allocation2 + $0x188] sm:$0xff] %vm172_vm1, %v7104_v2 }
  0x41   : > { %224 = vst.msk [vmem:[#allocation2 + $0x190] sm:$0x3] %vm175_vm2, %v7104_v2 }
  0x42   : > { %225 = vst.msk [vmem:[#allocation2 + $0x198] sm:$0xff] %vm172_vm1, %v7104_v2 }
  0x43   : > { %226 = vst.msk [vmem:[#allocation2 + $0x1a0] sm:$0xff] %vm172_vm1, %v7104_v2 }
  0x44   : > { %227 = vst.msk [vmem:[#allocation2 + $0x1a8] sm:$0x3] %vm175_vm2, %v7104_v2 }
  0x45   : > { %307 = vst.msk [vmem:[#allocation2 + $0xc1] sm:$0xff] %vm172_vm1, %v4168_v22 }
  0x46   : > { %308 = vst.msk [vmem:[#allocation2 + $0xc9] sm:$0xff] %vm172_vm1, %v4169_v23 }
  0x47   : > { %315 = vst.msk [vmem:[#allocation2 + $0x121] sm:$0xff] %vm172_vm1, %v4184_v25 }
  0x48   : > { %316 = vst.msk [vmem:[#allocation2 + $0x129] sm:$0xff] %vm172_vm1, %v4185_v26 }
  0x49   : > { %301 = vst.msk [vmem:[#allocation2 + $0x79] sm:$0xff] %vm172_vm1, %v4156_v28 }
  0x4a   : > { %302 = vst.msk [vmem:[#allocation2 + $0x81] sm:$0xff] %vm172_vm1, %v4157_v29 }
  0x4b   : > { %309 = vst.msk [vmem:[#allocation2 + $0xd9] sm:$0xff] %vm172_vm1, %v4172_v31 }
  0x4c   : > { %v390_v38 = vld [vmem:[#allocation2 + $0xc1] sm:$0xff]  ;;  %310 = vst.msk [vmem:[#allocation2 + $0xe1] sm:$0xff] %vm172_vm1, %v4173_v32 }
  0x4d   : > { %v391_v41 = vld [vmem:[#allocation2 + $0xc9] sm:$0xff]  ;;  %317 = vst.msk [vmem:[#allocation2 + $0x139] sm:$0xff] %vm172_vm1, %v4188_v34 }
  0x4e   : > { %v4489_v43 = vpack.c.bf16 %v391_v41, %v390_v38  ;;  %v398_v44 = vld [vmem:[#allocation2 + $0x121] sm:$0xff]  ;;  %318 = vst.msk [vmem:[#allocation2 + $0x141] sm:$0xff] %vm172_vm1, %v4189_v35  ;;  %v4083_v34 = vld [vmem:[%s7101_s1 + $0xc] sm:$0x3]  ;;  %v4100_v35 = vld [vmem:[%s7101_s1 + $0xe] sm:$0x3] }
  0x4f   : > { %v399_v47 = vld [vmem:[#allocation2 + $0x129] sm:$0xff]  ;;  %293 = vst.msk [vmem:[#allocation2 + $0x19] sm:$0xff] %vm172_vm1, %v4140_v37  ;;  %v1693_v38 = vsel %vm472_vm0, %v4083_v34, 0 }
  0x50   : > { %3991 = vmatmul.msk.bf16.vlgmr.msra.gmra.mxu2 %vm172_vm1, %v4489_v43  ;;  %v4496_v49 = vpack.c.bf16 %v399_v47, %v398_v44  ;;  %v384_v50 = vld [vmem:[#allocation2 + $0x79] sm:$0xff]  ;;  %294 = vst.msk [vmem:[#allocation2 + $0x21] sm:$0xff] %vm172_vm1, %v4141_v39  ;;  %v1915_v39 = vsel %vm472_vm0, %v4100_v35, 0  ;;  %v4117_v41 = vld [vmem:[%s7101_s1 + $0x10] sm:$0x3] }
  0x51   : > { %v385_v53 = vld [vmem:[#allocation2 + $0x81] sm:$0xff]  ;;  %303 = vst.msk [vmem:[#allocation2 + $0x91] sm:$0xff] %vm172_vm1, %v4160_v42  ;;  %1702 = vmatpush.bf16.msra.mxu2 %v1693_v38  ;;  %v2137_v42 = vsel %vm472_vm0, %v4117_v41, 0 }
  0x52   : > { %3995 = vmatmul.msk.bf16.vlgmr.msra.gmra.mxu3 %vm172_vm1, %v4496_v49  ;;  %v4503_v55 = vpack.c.bf16 %v385_v53, %v384_v50  ;;  %304 = vst.msk [vmem:[#allocation2 + $0x99] sm:$0xff] %vm172_vm1, %v4161_v45  ;;  %v392_v7 = vld [vmem:[#allocation2 + $0xd9] sm:$0xff]  ;;  %2146 = vmatpush.bf16.msra.mxu0 %v2137_v42  ;;  %v716_v38 = vld [vmem:[#allocation2 + $0x82] sm:$0xff] }
  0x53   : > { %311 = vst.msk [vmem:[#allocation2 + $0xf1] sm:$0xff] %vm172_vm1, %v4176_v48  ;;  %v393_v9 = vld [vmem:[#allocation2 + $0xe1] sm:$0xff]  ;;  %1924 = vmatpush.bf16.msra.mxu3 %v1915_v39 }
  0x54   : > { %3988 = vmatmul.msk.bf16.gmra.mxu1 %vm172_vm1, %v4503_v55  ;;  %312 = vst.msk [vmem:[#allocation2 + $0xf9] sm:$0xff] %vm172_vm1, %v4177_v51  ;;  %v400_v12 = vld [vmem:[#allocation2 + $0x139] sm:$0xff]  ;;  %v4525_v15 = vpack.c.bf16 %v393_v9, %v392_v7 }
  0x55   : > { %319 = vst.msk [vmem:[#allocation2 + $0x151] sm:$0xff] %vm172_vm1, %v4192_v54  ;;  %v401_v13 = vld [vmem:[#allocation2 + $0x141] sm:$0xff] }
  0x56   : > { %v376_v62 = vld [vmem:[#allocation2 + $0x19] sm:$0xff]  ;;  %320 = vst.msk [vmem:[#allocation2 + $0x159] sm:$0xff] %vm172_vm1, %v4193_v56  ;;  %v4529_v19 = vpack.c.bf16 %v401_v13, %v400_v12  ;;  %v705_v56 = vld [vmem:[#allocation2 + $0x2] sm:$0xff] }
  0x57   : > { %v377_v1 = vld [vmem:[#allocation2 + $0x21] sm:$0xff]  ;;  %295 = vst.msk [vmem:[#allocation2 + $0x31] sm:$0xff] %vm172_vm1, %v4144_v58  ;;  %v927_v58 = vld [vmem:[#allocation2 + $0x18] sm:$0xff]  ;;  %v737_v60 = vpack.c.bf16 %v706_v57, %v705_v56 }
  0x58   : > { %v4516_v4 = vpack.c.bf16 %v377_v1, %v376_v62  ;;  %296 = vst.msk [vmem:[#allocation2 + $0x39] sm:$0xff] %vm172_vm1, %v4145_v59  ;;  %v386_v17 = vld [vmem:[#allocation2 + $0x91] sm:$0xff]  ;;  %v325_v51 = vld [vmem:[#allocation2] sm:$0xff] }
  0x59   : > { %305 = vst.msk [vmem:[#allocation2 + $0xa9] sm:$0xff] %vm172_vm1, %v4164_v61  ;;  %v387_v18 = vld [vmem:[#allocation2 + $0x99] sm:$0xff]  ;;  %v357_v54 = vpack.c.bf16 %v326_v52, %v325_v51  ;;  %v937_v41 = vld [vmem:[#allocation2 + $0x90] sm:$0xff] }
  0x5a   : > { %3984 = vmatmul.msk.bf16.gmra.mxu0 %vm172_vm1, %v4516_v4  ;;  %306 = vst.msk [vmem:[#allocation2 + $0xb1] sm:$0xff] %vm172_vm1, %v4165_v63  ;;  %v4535_v20 = vpack.c.bf16 %v387_v18, %v386_v17  ;;  %v394_v24 = vld [vmem:[#allocation2 + $0xf1] sm:$0xff]  ;;  %v928_v59 = vld [vmem:[#allocation2 + $0x20] sm:$0xff] }
  0x5b   : > { %313 = vst.msk [vmem:[#allocation2 + $0x109] sm:$0xff] %vm172_vm1, %v4180_v3  ;;  %v395_v25 = vld [vmem:[#allocation2 + $0xf9] sm:$0xff]  ;;  %v959_v61 = vpack.c.bf16 %v928_v59, %v927_v58  ;;  %v708_v63 = vld [vmem:[#allocation2 + $0x22] sm:$0xff] }
  0x5c   : > { %314 = vst.msk [vmem:[#allocation2 + $0x111] sm:$0xff] %vm172_vm1, %v4181_v5  ;;  %v402_v26 = vld [vmem:[#allocation2 + $0x151] sm:$0xff]  ;;  %v4546_v28 = vpack.c.bf16 %v395_v25, %v394_v24  ;;  %v707_v62 = vld [vmem:[#allocation2 + $0x1a] sm:$0xff]  ;;  %v713_v24 = vld [vmem:[#allocation2 + $0x62] sm:$0xff] }
  0x5d   : > { %321 = vst.msk [vmem:[#allocation2 + $0x169] sm:$0xff] %vm172_vm1, %v4196_v10  ;;  %v403_v27 = vld [vmem:[#allocation2 + $0x159] sm:$0xff]  ;;  %v4594_v3 = vpack.c.bf16 %v708_v63, %v707_v62  ;;  %v714_v25 = vld [vmem:[#allocation2 + $0x6a] sm:$0xff] }
  0x5e   : > { %322 = vst.msk [vmem:[#allocation2 + $0x171] sm:$0xff] %vm172_vm1, %v4197_v11  ;;  %v378_v21 = vld [vmem:[#allocation2 + $0x31] sm:$0xff]  ;;  %v4548_v31 = vpack.c.bf16 %v403_v27, %v402_v26  ;;  %v936_v27 = vld [vmem:[#allocation2 + $0x80] sm:$0xff] }
  0x5f   : > { %297 = vst.msk [vmem:[#allocation2 + $0x49] sm:$0xff] %vm172_vm1, %v4148_v14  ;;  %v379_v22 = vld [vmem:[#allocation2 + $0x39] sm:$0xff]  ;;  %v929_v0 = vld [vmem:[#allocation2 + $0x30] sm:$0xff] }
  0x60   : > { %3992 = vmatmul.msk.bf16.gmra.mxu2 %vm172_vm1, %v4525_v15  ;;  %298 = vst.msk [vmem:[#allocation2 + $0x51] sm:$0xff] %vm172_vm1, %v4149_v16  ;;  %v4542_v23 = vpack.c.bf16 %v379_v22, %v378_v21  ;;  %v388_v29 = vld [vmem:[#allocation2 + $0xa9] sm:$0xff]  ;;  %v930_v1 = vld [vmem:[#allocation2 + $0x38] sm:$0xff]  ;;  %v933_v14 = vld [vmem:[#allocation2 + $0x60] sm:$0xff] }
  0x61   : > { %v389_v30 = vld [vmem:[#allocation2 + $0xb1] sm:$0xff]  ;;  %v710_v6 = vld [vmem:[#allocation2 + $0x3a] sm:$0xff]  ;;  %v934_v16 = vld [vmem:[#allocation2 + $0x68] sm:$0xff] }
  0x62   : > { %3996 = vmatmul.msk.bf16.gmra.mxu3 %vm172_vm1, %v4529_v19  ;;  %v4552_v32 = vpack.c.bf16 %v389_v30, %v388_v29  ;;  %v396_v45 = vld [vmem:[#allocation2 + $0x109] sm:$0xff]  ;;  %v709_v5 = vld [vmem:[#allocation2 + $0x32] sm:$0xff]  ;;  %v4622_v21 = vpack.c.bf16 %v934_v16, %v933_v14  ;;  %v4636_v29 = vpack.c.bf16 %v714_v25, %v713_v24  ;;  %v718_v57 = vld [vmem:[#allocation2 + $0x9a] sm:$0xff] }
  0x63   : > { %v397_v46 = vld [vmem:[#allocation2 + $0x111] sm:$0xff]  ;;  %v4606_v10 = vpack.c.bf16 %v710_v6, %v709_v5  ;;  %v941_v16 = vld [vmem:[#allocation2 + $0xc0] sm:$0xff]  ;;  %v942_v24 = vld [vmem:[#allocation2 + $0xc8] sm:$0xff] }
  0x64   : > { %3989 = vmatmul.msk.bf16.gmra.mxu1 %vm172_vm1, %v4535_v20  ;;  %v404_v47 = vld [vmem:[#allocation2 + $0x169] sm:$0xff]  ;;  %v4578_v50 = vpack.c.bf16 %v397_v46, %v396_v45  ;;  %v935_v26 = vld [vmem:[#allocation2 + $0x78] sm:$0xff] }
  0x65   : > { %v405_v48 = vld [vmem:[#allocation2 + $0x171] sm:$0xff] }
  0x66   : > { %v380_v33 = vld [vmem:[#allocation2 + $0x49] sm:$0xff]  ;;  %v4580_v53 = vpack.c.bf16 %v405_v48, %v404_v47  ;;  %v938_v42 = vld [vmem:[#allocation2 + $0x98] sm:$0xff] }
  0x67   : > { %v381_v37 = vld [vmem:[#allocation2 + $0x51] sm:$0xff]  ;;  %v931_v7 = vld [vmem:[#allocation2 + $0x48] sm:$0xff]  ;;  %v4666_v47 = vpack.c.bf16 %v938_v42, %v937_v41 }
  0x68   : > { %v4574_v44 = vpack.c.bf16 %v381_v37, %v380_v33  ;;  %v932_v9 = vld [vmem:[#allocation2 + $0x50] sm:$0xff]  ;;  %v4640_v33 = vpack.c.bf16 %v936_v27, %v935_v26  ;;  %v715_v37 = vld [vmem:[#allocation2 + $0x7a] sm:$0xff]  ;;  %v4722_v27 = vpack.c.bf16 %v942_v24, %v941_v16 }
  0x69   : > { %v4608_v11 = vpack.c.bf16 %v932_v9, %v931_v7  ;;  %v711_v12 = vld [vmem:[#allocation2 + $0x4a] sm:$0xff]  ;;  %v712_v13 = vld [vmem:[#allocation2 + $0x52] sm:$0xff]  ;;  %v4662_v45 = vpack.c.bf16 %v716_v38, %v715_v37  ;;  %v944_v16 = vld [vmem:[#allocation2 + $0xe0] sm:$0xff] }
  0x6a   : > { %3985 = vmatmul.msk.bf16.gmra.mxu0 %vm172_vm1, %v4542_v23  ;;  %v4618_v17 = vpack.c.bf16 %v712_v13, %v711_v12  ;;  %v717_v56 = vld [vmem:[#allocation2 + $0x92] sm:$0xff]  ;;  %v719_v9 = vld [vmem:[#allocation2 + $0xaa] sm:$0xff]  ;;  %7126 = vst [vmem:[#allocation9_spill] sm:$0xff] %v4722_v27 }
  0x6b   : > { %v4690_v62 = vpack.c.bf16 %v718_v57, %v717_v56  ;;  %v720_v12 = vld [vmem:[#allocation2 + $0xb2] sm:$0xff]  ;;  %v721_v56 = vld [vmem:[#allocation2 + $0xc2] sm:$0xff]  ;;  %v722_v57 = vld [vmem:[#allocation2 + $0xca] sm:$0xff] }
  0x6c   : > { %v4718_v25 = vpack.c.bf16 %v720_v12, %v719_v9  ;;  %v943_v12 = vld [vmem:[#allocation2 + $0xd8] sm:$0xff]  ;;  %v4741_v24 = vpack.c.bf16 %v722_v57, %v721_v56 }
  0x6e   : > { %7128 = vst [vmem:[#allocation11_spill] sm:$0xff] %v4741_v24 }
  0x70   : > { %3993 = vmatmul.msk.bf16.gmra.mxu2 %vm172_vm1, %v4546_v28 }
  0x72   : > { %3997 = vmatmul.msk.bf16.gmra.mxu3 %vm172_vm1, %v4548_v31 }
  0x74   : > { %3990 = vmatmul.msk.bf16.gmra.mxu1 %vm172_vm1, %v4552_v32 }
  0x7a   : > { %3986 = vmatmul.msk.bf16.gmra.mxu0 %vm172_vm1, %v4574_v44 }
  0x80   : > { %3994 = vmatmul.msk.bf16.gmra.mxu2 %vm172_vm1, %v4578_v50 }
  0x82   : > { %3998 = vmatmul.msk.bf16.gmra.mxu3 %vm172_vm1, %v4580_v53 }
  0x84   : > { %3999 = vmatmul.msk.bf16.vlgmr.msrb.gmra.mxu1 %vm172_vm1, %v357_v54 }
  0x8a   : > { %4050 = vmatmul.msk.bf16.vlgmr.msrb.gmra.mxu0 %vm172_vm1, %v4516_v4  ;;  %v4596_v4 = vpack.c.bf16 %v930_v1, %v929_v0 }
  0x90   : > { %4016 = vmatmul.msk.bf16.vlgmr.msrb.gmra.mxu2 %vm172_vm1, %v737_v60  ;;  %v939_v60 = vld [vmem:[#allocation2 + $0xa8] sm:$0xff] }
  0x92   : > { %4033 = vmatmul.msk.bf16.vlgmr.msrb.gmra.mxu3 %vm172_vm1, %v959_v61 }
  0x94   : > { %4000 = vmatmul.msk.bf16.gmra.mxu1 %vm172_vm1, %v959_v61  ;;  %v940_v61 = vld [vmem:[#allocation2 + $0xb0] sm:$0xff] }
  0x95   : > { %v4694_v0 = vpack.c.bf16 %v940_v61, %v939_v60 }
  0x99   : > { %v4628_v22 = vpop.f32.mrf.mxu0 }
  0x9a   : > { %4051 = vmatmul.msk.bf16.gmra.mxu0 %vm172_vm1, %v4542_v23 }
  0x9d   : > { %v4620_v18 = vpop.f32.mrf.mxu1 }
  0xa0   : > { %4017 = vmatmul.msk.bf16.gmra.mxu2 %vm172_vm1, %v4594_v3 }
  0xa1   : > { %v4638_v30 = vpop.f32.mrf.mxu0 }
  0xa2   : > { %4034 = vmatmul.msk.bf16.gmra.mxu3 %vm172_vm1, %v4596_v4 }
  0xa4   : > { %4001 = vmatmul.msk.bf16.gmra.mxu1 %vm172_vm1, %v4596_v4 }
  0xaa   : > { %4052 = vmatmul.msk.bf16.gmra.mxu0 %vm172_vm1, %v4574_v44 }
  0xb0   : > { %4018 = vmatmul.msk.bf16.gmra.mxu2 %vm172_vm1, %v4606_v10 }
  0xb2   : > { %4035 = vmatmul.msk.bf16.gmra.mxu3 %vm172_vm1, %v4608_v11 }
  0xb4   : > { %4002 = vmatmul.msk.bf16.gmra.mxu1 %vm172_vm1, %v4608_v11 }
  0xba   : > { %4053 = vmatmul.msk.bf16.gmra.mxu0 %vm172_vm1, %v4373_v8  ;;  %v4632_v8 = vpop.f32.mrf.mxu1 }
  0xc0   : > { %4019 = vmatmul.msk.bf16.gmra.mxu2 %vm172_vm1, %v4618_v17 }
  0xc2   : > { %4036 = vmatmul.msk.bf16.gmra.mxu3 %vm172_vm1, %v4622_v21 }
  0xc4   : > { %4003 = vmatmul.msk.bf16.gmra.mxu1 %vm172_vm1, %v4622_v21 }
  0xca   : > { %4054 = vmatmul.msk.bf16.gmra.mxu0 %vm172_vm1, %v4503_v55 }
  0xd0   : > { %4020 = vmatmul.msk.bf16.gmra.mxu2 %vm172_vm1, %v4636_v29 }
  0xd1   : > { %v4644_v34 = vpop.f32.mrf.mxu1 }
  0xd2   : > { %4037 = vmatmul.msk.bf16.gmra.mxu3 %vm172_vm1, %v4640_v33 }
  0xd3   : > { %v4648_v35 = vpop.f32.mrf.mxu2 }
  0xd4   : > { %4004 = vmatmul.msk.bf16.gmra.mxu1 %vm172_vm1, %v4640_v33 }
  0xd5   : > { %v4652_v55 = vpop.f32.mrf.mxu3 }
  0xd7   : > { %v4654_v36 = vpop.f32.mrf.mxu0 }
  0xd9   : > { %v4656_v39 = vpop.f32.mrf.mxu1 }
  0xda   : > { %4055 = vmatmul.msk.bf16.gmra.mxu0 %vm172_vm1, %v4535_v20 }
  0xdb   : > { %v4660_v40 = vpop.f32.mrf.mxu2 }
  0xdd   : > { %v4664_v46 = vpop.f32.mrf.mxu3 }
  0xdf   : > { %v4668_v48 = vpop.f32.mrf.mxu0 }
  0xe0   : > { %4021 = vmatmul.msk.bf16.gmra.mxu2 %vm172_vm1, %v4662_v45 }
  0xe1   : > { %v4672_v51 = vpop.f32.mrf.mxu1 }
  0xe2   : > { %4038 = vmatmul.msk.bf16.gmra.mxu3 %vm172_vm1, %v4666_v47 }
  0xe3   : > { %v4676_v20 = vpop.f32.mrf.mxu2 }
  0xe4   : > { %4005 = vmatmul.msk.bf16.gmra.mxu1 %vm172_vm1, %v4666_v47 }
  0xe5   : > { %v4680_v52 = vpop.f32.mrf.mxu3 }
  0xe7   : > { %v4682_v54 = vpop.f32.mrf.mxu0 }
  0xe9   : > { %v4684_v58 = vpop.f32.mrf.mxu1 }
  0xea   : > { %4056 = vmatmul.msk.bf16.gmra.mxu0 %vm172_vm1, %v4552_v32 }
  0xeb   : > { %v4688_v59 = vpop.f32.mrf.mxu2 }
  0xed   : > { %v4692_v63 = vpop.f32.mrf.mxu3 }
  0xee   : > { %7123 = vst [vmem:[#allocation6_spill] sm:$0xff] %v4692_v63 }
  0xef   : > { %v4696_v1 = vpop.f32.mrf.mxu0 }
  0xf0   : > { %4022 = vmatmul.msk.bf16.gmra.mxu2 %vm172_vm1, %v4690_v62 }
  0xf1   : > { %v4700_v5 = vpop.f32.mrf.mxu1 }
  0xf2   : > { %4039 = vmatmul.msk.bf16.gmra.mxu3 %vm172_vm1, %v4694_v0 }
  0xf3   : > { %v4704_v32 = vpop.f32.mrf.mxu2 }
  0xf4   : > { %4006 = vmatmul.msk.bf16.gmra.mxu1 %vm172_vm1, %v4694_v0 }
  0xf5   : > { %v4708_v6 = vpop.f32.mrf.mxu3 }
  0xf6   : > { %7124 = vst [vmem:[#allocation7_spill] sm:$0xff] %v4708_v6 }
  0xf7   : > { %v4710_v7 = vpop.f32.mrf.mxu0 }
  0xf9   : > { %v4712_v13 = vpop.f32.mrf.mxu1 }
  0xfa   : > { %4057 = vmatmul.msk.bf16.gmra.mxu0 %vm172_vm1, %v4489_v43 }
  0xfb   : > { %v4716_v14 = vpop.f32.mrf.mxu2 }
  0xfd   : > { %v4720_v26 = vpop.f32.mrf.mxu3 }
  0xfe   : > { %7125 = vst [vmem:[#allocation8_spill] sm:$0xff] %v4720_v26  ;;  %v4745_v26 = vpack.c.bf16 %v944_v16, %v943_v12 }
  0xff   : > { %v4724_v37 = vpop.f32.mrf.mxu0 }
 0x100   : > { %4023 = vmatmul.msk.bf16.gmra.mxu2 %vm172_vm1, %v4718_v25  ;;  %7130 = vst [vmem:[#allocation13_spill] sm:$0xff] %v4745_v26 }
 0x101   : > { %v625_v38 = vpop.f32.mrf.mxu1 }
 0x102   : > { %4040 = vmatmul.msk.bf16.gmra.mxu3 %vm172_vm1, %v4722_v27  ;;  %v626_v6 = vadd.f32 %v625_v38, %v4628_v22  ;;  %v945_v38 = vld [vmem:[#allocation2 + $0xf0] sm:$0xff] }
 0x103   : > { %v4730_v43 = vpop.f32.mrf.mxu2 }
 0x104   : > { %4007 = vmatmul.msk.bf16.gmra.mxu1 %vm172_vm1, %v4722_v27  ;;  %v724_v27 = vld [vmem:[#allocation2 + $0xe2] sm:$0xff] }
 0x105   : > { %v4734_v41 = vpop.f32.mrf.mxu3 }
 0x106   : > { %7127 = vst [vmem:[#allocation10_spill] sm:$0xff] %v4734_v41 }
 0x107   : > { %v1259_v42 = vpop.f32.mrf.mxu0 }
 0x109   : > { %v627_v60 = vpop.f32.mrf.mxu1 }
 0x10a   : > { %4058 = vmatmul.msk.bf16.gmra.mxu0 %vm172_vm1, %v4525_v15  ;;  %v628_v61 = vadd.f32 %v627_v60, %v4638_v30 }
 0x10b   : > { %v4739_v9 = vpop.f32.mrf.mxu2 }
 0x10d   : > { %v4743_v2 = vpop.f32.mrf.mxu3 }
 0x10e   : > { %7129 = vst [vmem:[#allocation12_spill] sm:$0xff] %v4743_v2  ;;  %v723_v2 = vld [vmem:[#allocation2 + $0xda] sm:$0xff] }
 0x10f   : > { %v1261_v63 = vpop.f32.mrf.mxu0 }
 0x110   : > { %4024 = vmatmul.msk.bf16.gmra.mxu2 %vm172_vm1, %v4741_v24 }
 0x111   : > { %v630_v41 = vpop.f32.mrf.mxu1 }
 0x112   : > { %4041 = vmatmul.msk.bf16.gmra.mxu3 %vm172_vm1, %v4745_v26  ;;  %v631_v15 = vadd.f32 %v630_v41, %v4654_v36 }
 0x113   : > { %v815_v30 = vpop.f32.mrf.mxu2 }
 0x114   : > { %v895_v60 = vadd.f32 %v815_v30, %v626_v6  ;;  %4008 = vmatmul.msk.bf16.gmra.mxu1 %vm172_vm1, %v4745_v26  ;;  %v946_v6 = vld [vmem:[#allocation2 + $0xf8] sm:$0xff]  ;;  %v4762_v30 = vpack.c.bf16 %v724_v27, %v723_v2 }
 0x115   : > { %v1037_v56 = vpop.f32.mrf.mxu3 }
 0x116   : > { %v1117_v57 = vadd.f32 %v1037_v56, %v895_v60  ;;  %v4764_v56 = vpack.c.bf16 %v946_v6, %v945_v38  ;;  %v726_v38 = vld [vmem:[#allocation2 + $0xfa] sm:$0xff] }
 0x117   : > { %v4755_v12 = vpop.f32.mrf.mxu0 }
 0x118   : > { %v4757_v16 = vadd.f32 %v1259_v42, %v1117_v57 }
 0x119   : > { %v632_v24 = vpop.f32.mrf.mxu1 }
 0x11a   : > { %4059 = vmatmul.msk.bf16.gmra.mxu0 %vm172_vm1, %v4546_v28  ;;  %v633_v22 = vadd.f32 %v632_v24, %v4668_v48 }
 0x11b   : > { %v817_v36 = vpop.f32.mrf.mxu2 }
 0x11c   : > { %v896_v41 = vadd.f32 %v817_v36, %v628_v61  ;;  %v725_v36 = vld [vmem:[#allocation2 + $0xf2] sm:$0xff] }
 0x11d   : > { %v1039_v26 = vpop.f32.mrf.mxu3 }
 0x11e   : > { %v1118_v60 = vadd.f32 %v1039_v26, %v896_v41 }
 0x11f   : > { %v4766_v42 = vpop.f32.mrf.mxu0 }
 0x120   : > { %7131 = vst [vmem:[#allocation14_spill] sm:$0xff] %v4766_v42  ;;  %4025 = vmatmul.msk.bf16.gmra.mxu2 %vm172_vm1, %v4762_v30  ;;  %v4770_v57 = vadd.f32 %v1261_v63, %v1118_v60  ;;  %v947_v60 = vld [vmem:[#allocation2 + $0x108] sm:$0xff] }
 0x121   : > { %v635_v28 = vpop.f32.mrf.mxu1 }
 0x122   : > { %4042 = vmatmul.msk.bf16.gmra.mxu3 %vm172_vm1, %v4764_v56  ;;  %v636_v48 = vadd.f32 %v635_v28, %v4682_v54  ;;  %v948_v54 = vld [vmem:[#allocation2 + $0x110] sm:$0xff] }
 0x123   : > { %v820_v61 = vpop.f32.mrf.mxu2 }
 0x124   : > { %v897_v2 = vadd.f32 %v820_v61, %v631_v15  ;;  %4009 = vmatmul.msk.bf16.gmra.mxu1 %vm172_vm1, %v4764_v56  ;;  %v4782_v15 = vpack.c.bf16 %v726_v38, %v725_v36 }
 0x125   : > { %v1042_v26 = vpop.f32.mrf.mxu3 }
 0x126   : > { %v1119_v27 = vadd.f32 %v1042_v26, %v897_v2  ;;  %v969_v2 = vpack.c.bf16 %v948_v54, %v947_v60  ;;  %v728_v60 = vld [vmem:[#allocation2 + $0x112] sm:$0xff] }
 0x127   : > { %v4777_v24 = vpop.f32.mrf.mxu0 }
 0x128   : > { %7132 = vst [vmem:[#allocation15_spill] sm:$0xff] %v4777_v24 }
 0x129   : > { %v637_v6 = vpop.f32.mrf.mxu1 }
 0x12a   : > { %4060 = vmatmul.msk.bf16.gmra.mxu0 %vm172_vm1, %v4578_v50  ;;  %v638_v63 = vadd.f32 %v637_v6, %v4696_v1 }
 0x12b   : > { %v822_v41 = vpop.f32.mrf.mxu2 }
 0x12c   : > { %v898_v28 = vadd.f32 %v822_v41, %v633_v22  ;;  %v727_v41 = vld [vmem:[#allocation2 + $0x10a] sm:$0xff] }
 0x12d   : > { %v1044_v61 = vpop.f32.mrf.mxu3 }
 0x12e   : > { %v4784_v42 = vadd.f32 %v1044_v61, %v898_v28 }
 0x12f   : > { %v4786_v26 = vpop.f32.mrf.mxu0 }
 0x130   : > { %7133 = vst [vmem:[#allocation16_spill] sm:$0xff] %v4786_v26  ;;  %4026 = vmatmul.msk.bf16.gmra.mxu2 %vm172_vm1, %v4782_v15  ;;  %v949_v26 = vld [vmem:[#allocation2 + $0x120] sm:$0xff] }
 0x131   : > { %v640_v24 = vpop.f32.mrf.mxu1 }
 0x132   : > { %4043 = vmatmul.msk.bf16.gmra.mxu3 %vm172_vm1, %v969_v2  ;;  %v641_v50 = vadd.f32 %v640_v24, %v4710_v7  ;;  %v950_v7 = vld [vmem:[#allocation2 + $0x128] sm:$0xff] }
 0x133   : > { %v825_v1 = vpop.f32.mrf.mxu2 }
 0x134   : > { %v899_v6 = vadd.f32 %v825_v1, %v636_v48  ;;  %4010 = vmatmul.msk.bf16.gmra.mxu1 %vm172_vm1, %v969_v2  ;;  %v748_v48 = vpack.c.bf16 %v728_v60, %v727_v41  ;;  %v729_v41 = vld [vmem:[#allocation2 + $0x122] sm:$0xff]  ;;  %v730_v60 = vld [vmem:[#allocation2 + $0x12a] sm:$0xff] }
 0x135   : > { %v1047_v22 = vpop.f32.mrf.mxu3 }
 0x136   : > { %v4793_v36 = vadd.f32 %v1047_v22, %v899_v6  ;;  %v970_v6 = vpack.c.bf16 %v950_v7, %v949_v26  ;;  %v951_v7 = vld [vmem:[#allocation2 + $0x138] sm:$0xff] }
 0x137   : > { %v4795_v38 = vpop.f32.mrf.mxu0 }
 0x138   : > { %7134 = vst [vmem:[#allocation17_spill] sm:$0xff] %v4793_v36 }
 0x139   : > { %7135 = vst [vmem:[#allocation18_spill] sm:$0xff] %v4795_v38  ;;  %v642_v54 = vpop.f32.mrf.mxu1 }
 0x13a   : > { %4061 = vmatmul.msk.bf16.gmra.mxu0 %vm172_vm1, %v4496_v49  ;;  %v643_v28 = vadd.f32 %v642_v54, %v4724_v37 }
 0x13b   : > { %v827_v61 = vpop.f32.mrf.mxu2 }
 0x13c   : > { %v900_v24 = vadd.f32 %v827_v61, %v638_v63 }
 0x13d   : > { %v1049_v1 = vpop.f32.mrf.mxu3 }
 0x13e   : > { %v4800_v2 = vadd.f32 %v1049_v1, %v900_v24  ;;  %v952_v24 = vld [vmem:[#allocation2 + $0x140] sm:$0xff]  ;;  %v749_v1 = vpack.c.bf16 %v730_v60, %v729_v41 }
 0x13f   : > { %v4802_v22 = vpop.f32.mrf.mxu0 }
 0x140   : > { %7136 = vst [vmem:[#allocation19_spill] sm:$0xff] %v4802_v22  ;;  %4027 = vmatmul.msk.bf16.gmra.mxu2 %vm172_vm1, %v748_v48 }
 0x141   : > { %v645_v38 = vpop.f32.mrf.mxu1 }
 0x142   : > { %4044 = vmatmul.msk.bf16.gmra.mxu3 %vm172_vm1, %v970_v6 }
 0x143   : > { %v830_v36 = vpop.f32.mrf.mxu2 }
 0x144   : > { %v901_v49 = vadd.f32 %v830_v36, %v641_v50  ;;  %4011 = vmatmul.msk.bf16.gmra.mxu1 %vm172_vm1, %v970_v6  ;;  %v4814_v50 = vadd.f32 %v4755_v12, %v1119_v27  ;;  %v4216_v12 = vld [vmem:[%s4346_s19 + $0x78] sm:$0xff]  }
 0x145   : > { %v1052_v37 = vpop.f32.mrf.mxu3  ;;  %v4200_v41 = vunpack.c.l.bf16 %v4216_v12  ;;  %v4201_v60 = vunpack.c.h.bf16 %v4216_v12 }
 0x146   : > { %v4807_v54 = vadd.f32 %v1052_v37, %v901_v49  ;;  %v971_v49 = vpack.c.bf16 %v952_v24, %v951_v7  ;;  %v731_v7 = vld [vmem:[#allocation2 + $0x13a] sm:$0xff]  ;;  %v732_v24 = vld [vmem:[#allocation2 + $0x142] sm:$0xff] }
 0x147   : > { %v4809_v63 = vpop.f32.mrf.mxu0  ;;  %323 = vst.msk [vmem:[#allocation2 + $0x181] sm:$0xff] %vm172_vm1, %v4200_v41 }
 0x148   : > { %7137 = vst [vmem:[#allocation20_spill] sm:$0xff] %v4807_v54 }
 0x149   : > { %7138 = vst [vmem:[#allocation21_spill] sm:$0xff] %v4809_v63  ;;  %v647_v61 = vpop.f32.mrf.mxu1 }
 0x14a   : > { %4062 = vmatmul.msk.bf16.gmra.mxu0 %vm172_vm1, %v4529_v19  ;;  %v646_v19 = vadd.f32 %v645_v38, %v4620_v18  ;;  %324 = vst.msk [vmem:[#allocation2 + $0x189] sm:$0xff] %vm172_vm1, %v4201_v60  ;;  %v648_v18 = vadd.f32 %v647_v61, %v4632_v8 }
 0x14b   : > { %v832_v26 = vpop.f32.mrf.mxu2 }
 0x14c   : > { %v902_v48 = vadd.f32 %v832_v26, %v643_v28 }
 0x14d   : > { %v1054_v36 = vpop.f32.mrf.mxu3 }
 0x14e   : > { %v4816_v6 = vadd.f32 %v1054_v36, %v902_v48  ;;  %v750_v36 = vpack.c.bf16 %v732_v24, %v731_v7  ;;  %v733_v24 = vld [vmem:[#allocation2 + $0x152] sm:$0xff] }
 0x14f   : > { %v4818_v37 = vpop.f32.mrf.mxu0 }
 0x150   : > { %4028 = vmatmul.msk.bf16.gmra.mxu2 %vm172_vm1, %v749_v1 }
 0x151   : > { %v650_v63 = vpop.f32.mrf.mxu1 }
 0x152   : > { %4045 = vmatmul.msk.bf16.gmra.mxu3 %vm172_vm1, %v971_v49  ;;  %v651_v60 = vadd.f32 %v650_v63, %v4644_v34  ;;  %v955_v63 = vld [vmem:[#allocation2 + $0x168] sm:$0xff] }
 0x153   : > { %v835_v22 = vpop.f32.mrf.mxu2 }
 0x154   : > { %v903_v54 = vadd.f32 %v835_v22, %v646_v19  ;;  %4012 = vmatmul.msk.bf16.gmra.mxu1 %vm172_vm1, %v971_v49  ;;  %v953_v22 = vld [vmem:[#allocation2 + $0x150] sm:$0xff] }
 0x155   : > { %v1057_v28 = vpop.f32.mrf.mxu3 }
 0x156   : > { %v4825_v27 = vadd.f32 %v1057_v28, %v903_v54  ;;  %v954_v54 = vld [vmem:[#allocation2 + $0x158] sm:$0xff] }
 0x157   : > { %v4827_v26 = vpop.f32.mrf.mxu0  ;;  %v972_v28 = vpack.c.bf16 %v954_v54, %v953_v22 }
 0x159   : > { %v652_v48 = vpop.f32.mrf.mxu1 }
 0x15a   : > { %4063 = vmatmul.msk.bf16.gmra.mxu0 %vm172_vm1, %v4548_v31  ;;  %v653_v54 = vadd.f32 %v652_v48, %v4656_v39  ;;  %v1180_v48 = vld [vmem:[#allocation2 + $0x189] sm:$0xff] }
 0x15b   : > { %v837_v38 = vpop.f32.mrf.mxu2 }
 0x15c   : > { %v904_v1 = vadd.f32 %v837_v38, %v648_v18  ;;  %v734_v38 = vld [vmem:[#allocation2 + $0x15a] sm:$0xff] }
 0x15d   : > { %v1059_v49 = vpop.f32.mrf.mxu3 }
 0x15e   : > { %v4834_v19 = vadd.f32 %v1059_v49, %v904_v1  ;;  %v956_v1 = vld [vmem:[#allocation2 + $0x170] sm:$0xff]  ;;  %v751_v49 = vpack.c.bf16 %v734_v38, %v733_v24 }
 0x15f   : > { %v4836_v12 = vpop.f32.mrf.mxu0 }
 0x160   : > { %7139 = vst [vmem:[#allocation22_spill] sm:$0xff] %v4836_v12  ;;  %4029 = vmatmul.msk.bf16.gmra.mxu2 %vm172_vm1, %v750_v36 }
 0x161   : > { %v655_v41 = vpop.f32.mrf.mxu1 }
 0x162   : > { %4046 = vmatmul.msk.bf16.gmra.mxu3 %vm172_vm1, %v972_v28 }
 0x163   : > { %v840_v8 = vpop.f32.mrf.mxu2 }
 0x164   : > { %v905_v31 = vadd.f32 %v840_v8, %v651_v60  ;;  %4013 = vmatmul.msk.bf16.gmra.mxu1 %vm172_vm1, %v972_v28  ;;  %v973_v8 = vpack.c.bf16 %v956_v1, %v955_v63  ;;  %v735_v63 = vld [vmem:[#allocation2 + $0x16a] sm:$0xff]  ;;  %v736_v1 = vld [vmem:[#allocation2 + $0x172] sm:$0xff] }
 0x165   : > { %v1062_v61 = vpop.f32.mrf.mxu3 }
 0x166   : > { %v4842_v18 = vadd.f32 %v1062_v61, %v905_v31 }
 0x167   : > { %v4844_v7 = vpop.f32.mrf.mxu0 }
 0x168   : > { %7140 = vst [vmem:[#allocation23_spill] sm:$0xff] %v4844_v7  ;;  %v656_v7 = vadd.f32 %v655_v41, %v4672_v51  ;;  %v957_v41 = vld [vmem:[#allocation2 + $0x180] sm:$0xff] }
 0x169   : > { %v657_v22 = vpop.f32.mrf.mxu1 }
 0x16a   : > { %4064 = vmatmul.msk.bf16.gmra.mxu0 %vm172_vm1, %v4580_v53  ;;  %v1179_v53 = vld [vmem:[#allocation2 + $0x181] sm:$0xff] }
 0x16b   : > { %v842_v34 = vpop.f32.mrf.mxu2 }
 0x16c   : > { %v906_v36 = vadd.f32 %v842_v34, %v653_v54  ;;  %v1196_v54 = vpack.c.bf16 %v1180_v48, %v1179_v53 }
 0x16d   : > { %v1064_v60 = vpop.f32.mrf.mxu3 }
 0x16e   : > { %v4849_v28 = vadd.f32 %v1064_v60, %v906_v36  ;;  %v958_v60 = vld [vmem:[#allocation2 + $0x188] sm:$0xff] }
 0x16f   : > { %v4851_v31 = vpop.f32.mrf.mxu0 }
 0x170   : > { %7141 = vst [vmem:[#allocation24_spill] sm:$0xff] %v4851_v31  ;;  %4030 = vmatmul.msk.bf16.gmra.mxu2 %vm172_vm1, %v751_v49  ;;  %v658_v49 = vadd.f32 %v657_v22, %v4684_v58 }
 0x171   : > { %v660_v61 = vpop.f32.mrf.mxu1 }
 0x172   : > { %4047 = vmatmul.msk.bf16.gmra.mxu3 %vm172_vm1, %v973_v8  ;;  %v661_v48 = vadd.f32 %v660_v61, %v4700_v5 }
 0x173   : > { %v845_v39 = vpop.f32.mrf.mxu2 }
 0x174   : > { %v907_v12 = vadd.f32 %v845_v39, %v656_v7  ;;  %4014 = vmatmul.msk.bf16.gmra.mxu1 %vm172_vm1, %v973_v8  ;;  %v752_v7 = vpack.c.bf16 %v736_v1, %v735_v63 }
 0x175   : > { %v1067_v24 = vpop.f32.mrf.mxu3 }
 0x176   : > { %v4857_v38 = vadd.f32 %v1067_v24, %v907_v12  ;;  %v974_v12 = vpack.c.bf16 %v958_v60, %v957_v41 }
 0x177   : > { %v4859_v34 = vpop.f32.mrf.mxu0 }
 0x178   : > { %7142 = vst [vmem:[#allocation25_spill] sm:$0xff] %v4859_v34 }
 0x179   : > { %v662_v36 = vpop.f32.mrf.mxu1 }
 0x17a   : > { %4065 = vmatmul.msk.bf16.gmra.mxu0 %vm172_vm1, %v1196_v54 }
 0x17b   : > { %v847_v51 = vpop.f32.mrf.mxu2 }
 0x17c   : > { %v908_v31 = vadd.f32 %v847_v51, %v658_v49  ;;  %v663_v49 = vadd.f32 %v662_v36, %v4712_v13 }
 0x17d   : > { %v1069_v39 = vpop.f32.mrf.mxu3 }
 0x17e   : > { %v4863_v8 = vadd.f32 %v1069_v39, %v908_v31 }
 0x17f   : > { %v4865_v24 = vpop.f32.mrf.mxu0 }
 0x180   : > { %7143 = vst [vmem:[#allocation26_spill] sm:$0xff] %v4865_v24  ;;  %4031 = vmatmul.msk.bf16.gmra.mxu2 %vm172_vm1, %v752_v7 }
 0x181   : > { %v665_v53 = vpop.f32.mrf.mxu1 }
 0x182   : > { %4048 = vmatmul.msk.bf16.gmra.mxu3 %vm172_vm1, %v974_v12  ;;  %v666_v7 = vadd.f32 %v665_v53, %v4648_v35 }
 0x183   : > { %v850_v58 = vpop.f32.mrf.mxu2 }
 0x184   : > { %v909_v22 = vadd.f32 %v850_v58, %v661_v48  ;;  %4067 = vmatmul.msk.bf16.vlgmr.msra.gmra.mxu1 %vm172_vm1, %v4594_v3 }
 0x185   : > { %v1072_v54 = vpop.f32.mrf.mxu3 }
 0x186   : > { %v4872_v63 = vadd.f32 %v1072_v54, %v909_v22 }
 0x187   : > { %v4874_v31 = vpop.f32.mrf.mxu0 }
 0x188   : > { %7144 = vst [vmem:[#allocation27_spill] sm:$0xff] %v4872_v63 }
 0x189   : > { %7145 = vst [vmem:[#allocation28_spill] sm:$0xff] %v4874_v31  ;;  %v667_v1 = vpop.f32.mrf.mxu1 }
 0x18a   : > { %4118 = vmatmul.msk.bf16.vlgmr.msra.gmra.mxu0 %vm172_vm1, %v4606_v10  ;;  %v668_v22 = vadd.f32 %v667_v1, %v4660_v40 }
 0x18b   : > { %v852_v51 = vpop.f32.mrf.mxu2 }
 0x18c   : > { %v910_v5 = vadd.f32 %v852_v51, %v663_v49 }
 0x18d   : > { %v1074_v61 = vpop.f32.mrf.mxu3 }
 0x18e   : > { %v4879_v41 = vadd.f32 %v1074_v61, %v910_v5 }
 0x18f   : > { %v4881_v60 = vpop.f32.mrf.mxu0 }
 0x190   : > { %7146 = vst [vmem:[#allocation29_spill] sm:$0xff] %v4879_v41  ;;  %4084 = vmatmul.msk.bf16.vlgmr.msra.gmra.mxu2 %vm172_vm1, %v4596_v4 }
 0x191   : > { %7147 = vst [vmem:[#allocation30_spill] sm:$0xff] %v4881_v60  ;;  %v670_v3 = vpop.f32.mrf.mxu1 }
 0x192   : > { %4101 = vmatmul.msk.bf16.vlgmr.msra.gmra.mxu3 %vm172_vm1, %v4542_v23  ;;  %v671_v49 = vadd.f32 %v670_v3, %v4676_v20  ;;  %v1820_v20 = vld [vmem:[#allocation2 + $0x61] sm:$0xff]  ;;  %v1821_v3 = vld [vmem:[#allocation2 + $0x69] sm:$0xff] }
 0x193   : > { %v855_v13 = vpop.f32.mrf.mxu2 }
 0x194   : > { %v911_v36 = vadd.f32 %v855_v13, %v666_v7  ;;  %4068 = vmatmul.msk.bf16.gmra.mxu1 %vm172_vm1, %v4606_v10 }
 0x195   : > { %v1077_v39 = vpop.f32.mrf.mxu3 }
 0x196   : > { %v4890_v12 = vadd.f32 %v1077_v39, %v911_v36 }
 0x197   : > { %v4892_v48 = vpop.f32.mrf.mxu0 }
 0x198   : > { %7148 = vst [vmem:[#allocation31_spill] sm:$0xff] %v4890_v12 }
 0x199   : > { %7149 = vst [vmem:[#allocation32_spill] sm:$0xff] %v4892_v48  ;;  %v672_v58 = vpop.f32.mrf.mxu1 }
 0x19a   : > { %4119 = vmatmul.msk.bf16.gmra.mxu0 %vm172_vm1, %v4618_v17  ;;  %v673_v13 = vadd.f32 %v672_v58, %v4688_v59 }
 0x19b   : > { %v857_v4 = vpop.f32.mrf.mxu2 }
 0x19c   : > { %v912_v35 = vadd.f32 %v857_v4, %v668_v22  ;;  %v1850_v22 = vpack.c.bf16 %v1821_v3, %v1820_v20 }
 0x19d   : > { %v1079_v53 = vpop.f32.mrf.mxu3 }
 0x19e   : > { %v4897_v23 = vadd.f32 %v1079_v53, %v912_v35 }
 0x19f   : > { %v4899_v54 = vpop.f32.mrf.mxu0 }
 0x1a0   : > { %7150 = vst [vmem:[#allocation33_spill] sm:$0xff] %v4897_v23  ;;  %4085 = vmatmul.msk.bf16.gmra.mxu2 %vm172_vm1, %v4608_v11 }
 0x1a1   : > { %7151 = vst [vmem:[#allocation34_spill] sm:$0xff] %v4899_v54  ;;  %v675_v10 = vpop.f32.mrf.mxu1  ;;  %v5571_v54 = vld [vmem:[%s7102_s2 + $0x6] ss:$0 sm:$0xff] }
 0x1a2   : > { %4102 = vmatmul.msk.bf16.gmra.mxu3 %vm172_vm1, %v4574_v44  ;;  %v676_v35 = vadd.f32 %v675_v10, %v4704_v32  ;;  %v1822_v32 = vld [vmem:[#allocation2 + $0x79] sm:$0xff]  ;;  %v1823_v10 = vld [vmem:[#allocation2 + $0x81] sm:$0xff] }
 0x1a3   : > { %v860_v40 = vpop.f32.mrf.mxu2  ;;  %v1851_v3 = vpack.c.bf16 %v1823_v10, %v1822_v32 }
 0x1a4   : > { %v913_v1 = vadd.f32 %v860_v40, %v671_v49  ;;  %4069 = vmatmul.msk.bf16.gmra.mxu1 %vm172_vm1, %v4618_v17 }
 0x1a5   : > { %v1082_v51 = vpop.f32.mrf.mxu3 }
 0x1a6   : > { %v4908_v5 = vadd.f32 %v1082_v51, %v913_v1 }
 0x1a7   : > { %v4910_v61 = vpop.f32.mrf.mxu0 }
 0x1a8   : > { %7152 = vst [vmem:[#allocation35_spill] sm:$0xff] %v4908_v5 }
 0x1a9   : > { %7153 = vst [vmem:[#allocation36_spill] sm:$0xff] %v4910_v61  ;;  %v677_v7 = vpop.f32.mrf.mxu1 }
 0x1aa   : > { %4120 = vmatmul.msk.bf16.gmra.mxu0 %vm172_vm1, %v4636_v29  ;;  %v678_v51 = vadd.f32 %v677_v7, %v4716_v14 }
 0x1ab   : > { %v862_v11 = vpop.f32.mrf.mxu2 }
 0x1ac   : > { %v914_v44 = vadd.f32 %v862_v11, %v673_v13 }
 0x1ad   : > { %v1084_v36 = vpop.f32.mrf.mxu3 }
 0x1ae   : > { %v4915_v39 = vadd.f32 %v1084_v36, %v914_v44 }
 0x1af   : > { %v4917_v17 = vpop.f32.mrf.mxu0 }
 0x1b0   : > { %7154 = vst [vmem:[#allocation37_spill] sm:$0xff] %v4915_v39  ;;  %4086 = vmatmul.msk.bf16.gmra.mxu2 %vm172_vm1, %v4622_v21 }
 0x1b1   : > { %7155 = vst [vmem:[#allocation38_spill] sm:$0xff] %v4917_v17  ;;  %v680_v4 = vpop.f32.mrf.mxu1 }
 0x1b2   : > { %4103 = vmatmul.msk.bf16.gmra.mxu3 %vm172_vm1, %v1850_v22  ;;  %v681_v36 = vadd.f32 %v680_v4, %v4730_v43  ;;  %v1824_v43 = vld [vmem:[#allocation2 + $0x91] sm:$0xff]  ;;  %v1825_v4 = vld [vmem:[#allocation2 + $0x99] sm:$0xff] }
 0x1b3   : > { %v865_v59 = vpop.f32.mrf.mxu2  ;;  %v1852_v10 = vpack.c.bf16 %v1825_v4, %v1824_v43 }
 0x1b4   : > { %v915_v58 = vadd.f32 %v865_v59, %v676_v35  ;;  %4070 = vmatmul.msk.bf16.gmra.mxu1 %vm172_vm1, %v4636_v29 }
 0x1b5   : > { %v1087_v53 = vpop.f32.mrf.mxu3 }
 0x1b6   : > { %v4925_v49 = vadd.f32 %v1087_v53, %v915_v58 }
 0x1b7   : > { %v4927_v40 = vpop.f32.mrf.mxu0 }
 0x1b8   : > { %7156 = vst [vmem:[#allocation39_spill] sm:$0xff] %v4925_v49 }
 0x1b9   : > { %7157 = vst [vmem:[#allocation40_spill] sm:$0xff] %v4927_v40  ;;  %v682_v1 = vpop.f32.mrf.mxu1 }
 0x1ba   : > { %4121 = vmatmul.msk.bf16.gmra.mxu0 %vm172_vm1, %v4662_v45  ;;  %v683_v53 = vadd.f32 %v682_v1, %v4739_v9 }
 0x1bb   : > { %v867_v21 = vpop.f32.mrf.mxu2 }
 0x1bc   : > { %v916_v13 = vadd.f32 %v867_v21, %v678_v51 }
 0x1bd   : > { %v1089_v11 = vpop.f32.mrf.mxu3 }
 0x1be   : > { %v4932_v20 = vadd.f32 %v1089_v11, %v916_v13 }
 0x1bf   : > { %v4934_v29 = vpop.f32.mrf.mxu0 }
 0x1c0   : > { %7158 = vst [vmem:[#allocation41_spill] sm:$0xff] %v4932_v20  ;;  %4087 = vmatmul.msk.bf16.gmra.mxu2 %vm172_vm1, %v4640_v33 }
 0x1c1   : > { %7159 = vst [vmem:[#allocation42_spill] sm:$0xff] %v4934_v29  ;;  %v685_v44 = vpop.f32.mrf.mxu1 }
 0x1c2   : > { %4104 = vmatmul.msk.bf16.gmra.mxu3 %vm172_vm1, %v1851_v3  ;;  %v686_v13 = vadd.f32 %v685_v44, %v4652_v55  ;;  %v1826_v55 = vld [vmem:[#allocation2 + $0xa9] sm:$0xff]  ;;  %v1827_v44 = vld [vmem:[#allocation2 + $0xb1] sm:$0xff] }
 0x1c3   : > { %v870_v14 = vpop.f32.mrf.mxu2 }
 0x1c4   : > { %v917_v7 = vadd.f32 %v870_v14, %v681_v36  ;;  %4071 = vmatmul.msk.bf16.gmra.mxu1 %vm172_vm1, %v4662_v45 }
 0x1c5   : > { %v1092_v22 = vpop.f32.mrf.mxu3 }
 0x1c6   : > { %v4942_v35 = vadd.f32 %v1092_v22, %v917_v7 }
 0x1c7   : > { %v4944_v59 = vpop.f32.mrf.mxu0 }
 0x1c8   : > { %7160 = vst [vmem:[#allocation43_spill] sm:$0xff] %v4942_v35 }
 0x1c9   : > { %7161 = vst [vmem:[#allocation44_spill] sm:$0xff] %v4944_v59  ;;  %v687_v58 = vpop.f32.mrf.mxu1 }
 0x1ca   : > { %4122 = vmatmul.msk.bf16.gmra.mxu0 %vm172_vm1, %v4690_v62  ;;  %v688_v14 = vadd.f32 %v687_v58, %v4664_v46 }
 0x1cb   : > { %v872_v33 = vpop.f32.mrf.mxu2 }
 0x1cc   : > { %v918_v51 = vadd.f32 %v872_v33, %v683_v53 }
 0x1cd   : > { %v1094_v21 = vpop.f32.mrf.mxu3 }
 0x1ce   : > { %v4949_v32 = vadd.f32 %v1094_v21, %v918_v51 }
 0x1cf   : > { %v4953_v45 = vpop.f32.mrf.mxu0 }
 0x1d0   : > { %7162 = vst [vmem:[#allocation45_spill] sm:$0xff] %v4949_v32  ;;  %4088 = vmatmul.msk.bf16.gmra.mxu2 %vm172_vm1, %v4666_v47 }
 0x1d1   : > { %7163 = vst [vmem:[#allocation46_spill] sm:$0xff] %v4953_v45  ;;  %v690_v1 = vpop.f32.mrf.mxu1 }
 0x1d2   : > { %4105 = vmatmul.msk.bf16.gmra.mxu3 %vm172_vm1, %v1852_v10  ;;  %v691_v46 = vadd.f32 %v690_v1, %v4680_v52  ;;  %v1829_v52 = vld [vmem:[#allocation2 + $0xc9] sm:$0xff] }
 0x1d3   : > { %v875_v9 = vpop.f32.mrf.mxu2 }
 0x1d4   : > { %v919_v11 = vadd.f32 %v875_v9, %v686_v13  ;;  %4072 = vmatmul.msk.bf16.gmra.mxu1 %vm172_vm1, %v4690_v62  ;;  %v1853_v62 = vpack.c.bf16 %v1827_v44, %v1826_v55  ;;  %v7170_v9 = vld [vmem:[#allocation11_spill] sm:$0xff] }
 0x1d5   : > { %v1097_v3 = vpop.f32.mrf.mxu3  ;;  %v7176_v55 = vld [vmem:[#allocation7_spill] sm:$0xff] }
 0x1d6   : > { %v4959_v36 = vadd.f32 %v1097_v3, %v919_v11 }
 0x1d7   : > { %v4964_v7 = vpop.f32.mrf.mxu0 }
 0x1d8   : > { %7164 = vst [vmem:[#allocation47_spill] sm:$0xff] %v4959_v36 }
 0x1d9   : > { %7165 = vst [vmem:[#allocation48_spill] sm:$0xff] %v4964_v7  ;;  %v4966_v33 = vpop.f32.mrf.mxu1  ;;  %v1836_v7 = vld [vmem:[#allocation2 + $0x121] sm:$0xff] }
 0x1da   : > { %4123 = vmatmul.msk.bf16.gmra.mxu0 %vm172_vm1, %v4718_v25  ;;  %7166 = vst [vmem:[#allocation49_spill] sm:$0xff] %v4966_v33 }
 0x1db   : > { %v877_v47 = vpop.f32.mrf.mxu2 }
 0x1dc   : > { %v920_v22 = vadd.f32 %v877_v47, %v688_v14  ;;  %v7174_v47 = vld [vmem:[#allocation9_spill] sm:$0xff] }
 0x1dd   : > { %v1099_v53 = vpop.f32.mrf.mxu3 }
 0x1de   : > { %v4968_v43 = vadd.f32 %v1099_v53, %v920_v22 }
 0x1df   : > { %v4976_v21 = vpop.f32.mrf.mxu0 }
 0x1e0   : > { %7167 = vst [vmem:[#allocation50_spill] sm:$0xff] %v4968_v43  ;;  %4089 = vmatmul.msk.bf16.gmra.mxu2 %vm172_vm1, %v4694_v0  ;;  %v1828_v0 = vld [vmem:[#allocation2 + $0xc1] sm:$0xff]  ;;  %v1837_v43 = vld [vmem:[#allocation2 + $0x129] sm:$0xff] }
 0x1e1   : > { %7168 = vst [vmem:[#allocation51_spill] sm:$0xff] %v4976_v21  ;;  %v695_v13 = vpop.f32.mrf.mxu1  ;;  %v1854_v3 = vpack.c.bf16 %v1829_v52, %v1828_v0  ;;  %v1830_v0 = vld [vmem:[#allocation2 + $0xd9] sm:$0xff] }
 0x1e2   : > { %4106 = vmatmul.msk.bf16.gmra.mxu3 %vm172_vm1, %v1853_v62  ;;  %v696_v44 = vadd.f32 %v695_v13, %v7176_v55  ;;  %v1831_v13 = vld [vmem:[#allocation2 + $0xe1] sm:$0xff] }
 0x1e3   : > { %v880_v58 = vpop.f32.mrf.mxu2  ;;  %v7183_v55 = vld [vmem:[#allocation10_spill] sm:$0xff] }
 0x1e4   : > { %v921_v4 = vadd.f32 %v880_v58, %v691_v46  ;;  %4073 = vmatmul.msk.bf16.gmra.mxu1 %vm172_vm1, %v4718_v25  ;;  %v1614_v21 = vld [vmem:[#allocation2 + $0x120] sm:$0xff] }
 0x1e5   : > { %v1102_v51 = vpop.f32.mrf.mxu3 }
 0x1e6   : > { %v4978_v10 = vadd.f32 %v1102_v51, %v921_v4 }
 0x1e7   : > { %v4986_v14 = vpop.f32.mrf.mxu0 }
 0x1e8   : > { %7169 = vst [vmem:[#allocation52_spill] sm:$0xff] %v4978_v10 }
 0x1e9   : > { %7173 = vst [vmem:[#allocation54_spill] sm:$0xff] %v4986_v14  ;;  %v4990_v25 = vpop.f32.mrf.mxu1 }
 0x1ea   : > { %4124 = vmatmul.msk.bf16.gmra.mxu0 %vm172_vm1, %v7170_v9  ;;  %7175 = vst [vmem:[#allocation9_spill] sm:$0xff] %v4990_v25 }
 0x1eb   : > { %v4982_v11 = vpop.f32.mrf.mxu2 }
 0x1ec   : > { %7171 = vst [vmem:[#allocation11_spill] sm:$0xff] %v4982_v11 }
 0x1ed   : > { %v4984_v1 = vpop.f32.mrf.mxu3 }
 0x1ee   : > { %7172 = vst [vmem:[#allocation53_spill] sm:$0xff] %v4984_v1 }
 0x1ef   : > { %v4998_v58 = vpop.f32.mrf.mxu0 }
 0x1f0   : > { %4090 = vmatmul.msk.bf16.gmra.mxu2 %vm172_vm1, %v7174_v47  ;;  %7178 = vst [vmem:[#allocation55_spill] sm:$0xff] %v4998_v58  ;;  %v7182_v47 = vld [vmem:[#allocation13_spill] sm:$0xff] }
 0x1f1   : > { %v700_v51 = vpop.f32.mrf.mxu1  ;;  %v2057_v58 = vld [vmem:[#allocation2 + $0x112] sm:$0xff] }
 0x1f2   : > { %4107 = vmatmul.msk.bf16.gmra.mxu3 %vm172_vm1, %v1854_v3  ;;  %v7181_v3 = vmov 0.0  }
 0x1f3   : > { %v885_v22 = vpop.f32.mrf.mxu2  ;;  %2327 = vst.msk [vmem:[#allocation3] sm:$0xff] %vm2326_vm3, %v7181_v3 }
 0x1f4   : > { %v923_v53 = vadd.f32 %v885_v22, %v696_v44  ;;  %4074 = vmatmul.msk.bf16.gmra.mxu1 %vm172_vm1, %v7170_v9  ;;  %v1855_v9 = vpack.c.bf16 %v1831_v13, %v1830_v0  ;;  %2328 = vst.msk [vmem:[#allocation3 + $0x8] sm:$0xff] %vm2326_vm3, %v7181_v3  ;;  %v701_v44 = vadd.f32 %v700_v51, %v7183_v55 }
 0x1f5   : > { %v1107_v62 = vpop.f32.mrf.mxu3  ;;  %2331 = vst.msk [vmem:[#allocation3 + $0x18] sm:$0xff] %vm2326_vm3, %v7181_v3 }
 0x1f6   : > { %v4996_v46 = vadd.f32 %v1107_v62, %v923_v53  ;;  %2332 = vst.msk [vmem:[#allocation3 + $0x20] sm:$0xff] %vm2326_vm3, %v7181_v3 }
 0x1f7   : > { %2334 = vst.msk [vmem:[#allocation3 + $0x30] sm:$0xff] %vm2326_vm3, %v7181_v3  ;;  %v5022_v22 = vpop.f32.mrf.mxu0 }
 0x1f8   : > { %7177 = vst [vmem:[#allocation7_spill] sm:$0xff] %v4996_v46  ;;  %v5287_v46 = vld [vmem:[%s7102_s2 + $0xa] ss:$0 sm:$0xff] }
 0x1f9   : > { %2335 = vst.msk [vmem:[#allocation3 + $0x38] sm:$0xff] %vm2326_vm3, %v7181_v3  ;;  %v5030_v51 = vpop.f32.mrf.mxu1 }
 0x1fa   : > { %4125 = vmatmul.msk.bf16.gmra.mxu0 %vm172_vm1, %v4762_v30  ;;  %7184 = vst [vmem:[#allocation13_spill] sm:$0xff] %v5022_v22 }
 0x1fb   : > { %v5002_v4 = vpop.f32.mrf.mxu2  ;;  %2337 = vst.msk [vmem:[#allocation3 + $0x48] sm:$0xff] %vm2326_vm3, %v7181_v3 }
 0x1fc   : > { %7179 = vst [vmem:[#allocation56_spill] sm:$0xff] %v5002_v4  ;;  %v2058_v4 = vld [vmem:[#allocation2 + $0x122] sm:$0xff] }
 0x1fd   : > { %v5004_v52 = vpop.f32.mrf.mxu3  ;;  %2338 = vst.msk [vmem:[#allocation3 + $0x50] sm:$0xff] %vm2326_vm3, %v7181_v3 }
 0x1fe   : > { %7180 = vst [vmem:[#allocation57_spill] sm:$0xff] %v5004_v52  ;;  %v5301_v52 = vld [vmem:[%s7102_s2 + $0xb] ss:$0 sm:$0xff] }
 0x1ff   : > { %7185 = vst [vmem:[#allocation10_spill] sm:$0xff] %v5030_v51  ;;  %v5052_v55 = vpop.f32.mrf.mxu0  ;;  %v2059_v51 = vld [vmem:[#allocation2 + $0x12a] sm:$0xff] }
 0x200   : > { %4091 = vmatmul.msk.bf16.gmra.mxu2 %vm172_vm1, %v7182_v47  ;;  %2340 = vst.msk [vmem:[#allocation3 + $0x60] sm:$0xff] %vm2326_vm3, %v7181_v3  ;;  %v1833_v47 = vld [vmem:[#allocation2 + $0xf9] sm:$0xff] }
 0x201   : > { %2341 = vst.msk [vmem:[#allocation3 + $0x68] sm:$0xff] %vm2326_vm3, %v7181_v3 }
 0x202   : > { %4108 = vmatmul.msk.bf16.gmra.mxu3 %vm172_vm1, %v1855_v9  ;;  %2343 = vst.msk [vmem:[#allocation3 + $0x78] sm:$0xff] %vm2326_vm3, %v7181_v3  ;;  %v1832_v9 = vld [vmem:[#allocation2 + $0xf1] sm:$0xff] }
 0x203   : > { %v890_v53 = vpop.f32.mrf.mxu2  ;;  %2344 = vst.msk [vmem:[#allocation3 + $0x80] sm:$0xff] %vm2326_vm3, %v7181_v3 }
 0x204   : > { %v925_v62 = vadd.f32 %v890_v53, %v701_v44  ;;  %4075 = vmatmul.msk.bf16.gmra.mxu1 %vm172_vm1, %v4762_v30  ;;  %2346 = vst.msk [vmem:[#allocation3 + $0x90] sm:$0xff] %vm2326_vm3, %v7181_v3  ;;  %v1481_v53 = vpop.f32.mrf.mxu1 }
 0x205   : > { %v1112_v0 = vpop.f32.mrf.mxu3  ;;  %2347 = vst.msk [vmem:[#allocation3 + $0x98] sm:$0xff] %vm2326_vm3, %v7181_v3 }
 0x206   : > { %v5034_v13 = vadd.f32 %v1112_v0, %v925_v62  ;;  %2349 = vst.msk [vmem:[#allocation3 + $0xa8] sm:$0xff] %vm2326_vm3, %v7181_v3  ;;  %v1561_v62 = vadd.f32 %v1481_v53, %v4757_v16  ;;  %v5081_v16 = vld [vmem:[%s7102_s2] ss:$0 sm:$0xff] }
 0x207   : > { %7188 = vst [vmem:[#allocation60_spill] sm:$0xff] %v5052_v55 }
 0x208   : > { %7186 = vst [vmem:[#allocation58_spill] sm:$0xff] %v5034_v13  ;;  %v2056_v13 = vld [vmem:[#allocation2 + $0x10a] sm:$0xff] }
 0x209   : > { %2350 = vst.msk [vmem:[#allocation3 + $0xb0] sm:$0xff] %vm2326_vm3, %v7181_v3  ;;  %v2079_v14 = vpack.c.bf16 %v2057_v58, %v2056_v13 }
 0x20a   : > { %4126 = vmatmul.msk.bf16.gmra.mxu0 %vm172_vm1, %v4782_v15  ;;  %v1856_v15 = vpack.c.bf16 %v1833_v47, %v1832_v9  ;;  %2352 = vst.msk [vmem:[#allocation3 + $0xc0] sm:$0xff] %vm2326_vm3, %v7181_v3 }
 0x20b   : > { %v5046_v30 = vpop.f32.mrf.mxu2  ;;  %2353 = vst.msk [vmem:[#allocation3 + $0xc8] sm:$0xff] %vm2326_vm3, %v7181_v3 }
 0x20c   : > { %7187 = vst [vmem:[#allocation59_spill] sm:$0xff] %v5046_v30  ;;  %v1483_v58 = vpop.f32.mrf.mxu1  ;;  %v1858_v30 = vpack.c.bf16 %v1837_v43, %v1836_v7 }
 0x20d   : > { %v5054_v44 = vpop.f32.mrf.mxu3  ;;  %2355 = vst.msk [vmem:[#allocation3 + $0xd8] sm:$0xff] %vm2326_vm3, %v7181_v3 }
 0x20e   : > { %7189 = vst [vmem:[#allocation61_spill] sm:$0xff] %v5054_v44 }
 0x20f   : > { %2356 = vst.msk [vmem:[#allocation3 + $0xe0] sm:$0xff] %vm2326_vm3, %v7181_v3 }
 0x210   : > { %4092 = vmatmul.msk.bf16.gmra.mxu2 %vm172_vm1, %v4764_v56  ;;  %2358 = vst.msk [vmem:[#allocation3 + $0xf0] sm:$0xff] %vm2326_vm3, %v7181_v3 }
 0x211   : > { %2359 = vst.msk [vmem:[#allocation3 + $0xf8] sm:$0xff] %vm2326_vm3, %v7181_v3 }
 0x212   : > { %4109 = vmatmul.msk.bf16.gmra.mxu3 %vm172_vm1, %v1856_v15  ;;  %2361 = vst.msk [vmem:[#allocation3 + $0x108] sm:$0xff] %vm2326_vm3, %v7181_v3  ;;  %v2148_v15 = vpop.f32.mrf.mxu0 }
 0x213   : > { %v1704_v0 = vpop.f32.mrf.mxu2  ;;  %2362 = vst.msk [vmem:[#allocation3 + $0x110] sm:$0xff] %vm2326_vm3, %v7181_v3 }
 0x214   : > { %v1784_v9 = vadd.f32 %v1704_v0, %v1561_v62  ;;  %2364 = vst.msk [vmem:[#allocation3 + $0x120] sm:$0xff] %vm2326_vm3, %v7181_v3 }
 0x215   : > { %v1926_v56 = vpop.f32.mrf.mxu3  ;;  %2365 = vst.msk [vmem:[#allocation3 + $0x128] sm:$0xff] %vm2326_vm3, %v7181_v3 }
 0x216   : > { %v2006_v47 = vadd.f32 %v1926_v56, %v1784_v9  ;;  %2367 = vst.msk [vmem:[#allocation3 + $0x138] sm:$0xff] %vm2326_vm3, %v7181_v3  ;;  %v1389_v9 = vld [vmem:[#allocation2 + $0xf2] sm:$0xff]  ;;  %v1390_v56 = vld [vmem:[#allocation2 + $0xfa] sm:$0xff] }
 0x217   : > { %2368 = vst.msk [vmem:[#allocation3 + $0x140] sm:$0xff] %vm2326_vm3, %v7181_v3 }
 0x218   : > { %v2228_v53 = vadd.f32 %v2148_v15, %v2006_v47  ;;  %2370 = vst.msk [vmem:[#allocation3 + $0x150] sm:$0xff] %vm2326_vm3, %v7181_v3  ;;  %v1612_v47 = vld [vmem:[#allocation2 + $0x108] sm:$0xff]  ;;  %v1412_v15 = vpack.c.bf16 %v1390_v56, %v1389_v9 }
 0x219   : > { %2371 = vst.msk [vmem:[#allocation3 + $0x158] sm:$0xff] %vm2326_vm3, %v7181_v3 }
 0x21a   : > { %v2262_v62 = vadd.f32 %v5081_v16, %v2228_v53  ;;  %2373 = vst.msk [vmem:[#allocation3 + $0x168] sm:$0xff] %vm2326_vm3, %v7181_v3  ;;  %v1613_v53 = vld [vmem:[#allocation2 + $0x110] sm:$0xff]  ;;  %4076 = vmatmul.msk.bf16.gmra.mxu1 %vm172_vm1, %v1412_v15  ;;  %4127 = vmatmul.msk.bf16.gmra.mxu0 %vm172_vm1, %v2079_v14 }
 0x21b   : > { %2374 = vst.msk [vmem:[#allocation3 + $0x170] sm:$0xff] %vm2326_vm3, %v7181_v3  ;;  %v1635_v55 = vpack.c.bf16 %v1613_v53, %v1612_v47  ;;  %v1706_v13 = vpop.f32.mrf.mxu2 }
 0x21c   : > { %v2294_v0 = vmax.f32 %v2262_v62, 0.0  ;;  %2376 = vst.msk [vmem:[#allocation3 + $0x180] sm:$0xff] %vm2326_vm3, %v7181_v3  ;;  %v1834_v62 = vld [vmem:[#allocation2 + $0x109] sm:$0xff] }
 0x21d   : > { %2377 = vst.msk [vmem:[#allocation3 + $0x188] sm:$0xff] %vm2326_vm3, %v7181_v3  ;;  %v1928_v56 = vpop.f32.mrf.mxu3 }
 0x21e   : > { %2383 = vst.msk [vmem:[#allocation3 + $0x19] sm:$0xff] %vm2326_vm3, %v2294_v0  ;;  %v1835_v0 = vld [vmem:[#allocation2 + $0x111] sm:$0xff] }
 0x21f   : > { %2379 = vst.msk [vmem:[#allocation3 + $0x198] sm:$0xff] %vm2326_vm3, %v7181_v3  ;;  %v1857_v22 = vpack.c.bf16 %v1835_v0, %v1834_v62 }
 0x220   : > { %2380 = vst.msk [vmem:[#allocation3 + $0x1a0] sm:$0xff] %vm2326_vm3, %v7181_v3  ;;  %4093 = vmatmul.msk.bf16.gmra.mxu2 %vm172_vm1, %v1635_v55  ;;  %v1562_v55 = vadd.f32 %v1483_v58, %v4770_v57 }
 0x221   : > { %2713 = vst.msk [vmem:[#allocation4] sm:$0xff] %vm2326_vm3, %v7181_v3 }
 0x222   : > { %2714 = vst.msk [vmem:[#allocation4 + $0x8] sm:$0xff] %vm2326_vm3, %v7181_v3  ;;  %4110 = vmatmul.msk.bf16.gmra.mxu3 %vm172_vm1, %v1857_v22  ;;  %v2150_v22 = vpop.f32.mrf.mxu0  ;;  %v1785_v9 = vadd.f32 %v1706_v13, %v1562_v55  ;;  %v5263_v13 = vld [vmem:[%s7102_s2 + $0x9] ss:$0 sm:$0xff] }
 0x223   : > { %2716 = vst.msk [vmem:[#allocation4 + $0x18] sm:$0xff] %vm2326_vm3, %v7181_v3  ;;  %v5243_v53 = vpop.f32.mrf.mxu2 }
 0x224   : > { %2717 = vst.msk [vmem:[#allocation4 + $0x20] sm:$0xff] %vm2326_vm3, %v7181_v3  ;;  %v2007_v57 = vadd.f32 %v1928_v56, %v1785_v9  ;;  %v5277_v56 = vld [vmem:[%s7102_s2 + $0xc] ss:$0 sm:$0xff] }
 0x225   : > { %2719 = vst.msk [vmem:[#allocation4 + $0x30] sm:$0xff] %vm2326_vm3, %v7181_v3  ;;  %v5245_v62 = vpop.f32.mrf.mxu3  ;;  %v3093_v9 = vld [vmem:[#allocation3 + $0x18] sm:$0xff] }
 0x226   : > { %2720 = vst.msk [vmem:[#allocation4 + $0x38] sm:$0xff] %vm2326_vm3, %v7181_v3  ;;  %v2229_v15 = vadd.f32 %v2150_v22, %v2007_v57  ;;  %v3127_v57 = vmul.f32 %v5263_v13, %v3093_v9  ;;  %v1615_v9 = vld [vmem:[#allocation2 + $0x128] sm:$0xff] }
 0x227   : > { %2722 = vst.msk [vmem:[#allocation4 + $0x48] sm:$0xff] %vm2326_vm3, %v7181_v3  ;;  %v5293_v10 = vld [vmem:[#allocation3 + $0x19] sm:$0xff]  ;;  %v1636_v45 = vpack.c.bf16 %v1615_v9, %v1614_v21  ;;  %v2080_v21 = vpack.c.bf16 %v2059_v51, %v2058_v4 }
 0x228   : > { %2723 = vst.msk [vmem:[#allocation4 + $0x50] sm:$0xff] %vm2326_vm3, %v7181_v3  ;;  %v2263_v0 = vadd.f32 %v5081_v16, %v2229_v15  ;;  %v3159_v44 = vadd.f32 %v5277_v56, %v3127_v57  ;;  %v3225_v57 = vmul.f32 %v5287_v46, %v5293_v10 }
 0x229   : > { %2725 = vst.msk [vmem:[#allocation4 + $0x60] sm:$0xff] %vm2326_vm3, %v7181_v3 }
 0x22a   : > { %2726 = vst.msk [vmem:[#allocation4 + $0x68] sm:$0xff] %vm2326_vm3, %v7181_v3  ;;  %4077 = vmatmul.msk.bf16.gmra.mxu1 %vm172_vm1, %v2079_v14  ;;  %v5227_v14 = vpop.f32.mrf.mxu1  ;;  %v5233_v47 = vpop.f32.mrf.mxu0  ;;  %v2295_v22 = vmax.f32 %v2263_v0, 0.0  ;;  %v3257_v43 = vadd.f32 %v3225_v57, %v3159_v44  ;;  %4128 = vmatmul.msk.bf16.gmra.mxu0 %vm172_vm1, %v2080_v21  ;;  %v7191_v57 = vld [vmem:[#allocation14_spill] sm:$0xff] }
 0x22b   : > { %2728 = vst.msk [vmem:[#allocation4 + $0x78] sm:$0xff] %vm2326_vm3, %v7181_v3  ;;  %v1711_v15 = vpop.f32.mrf.mxu2  ;;  %v1563_v29 = vadd.f32 %v5227_v14, %v4814_v50 }
 0x22c   : > { %2729 = vst.msk [vmem:[#allocation4 + $0x80] sm:$0xff] %vm2326_vm3, %v7181_v3 }
 0x22d   : > { %2731 = vst.msk [vmem:[#allocation4 + $0x90] sm:$0xff] %vm2326_vm3, %v7181_v3  ;;  %v5282_v0 = vpop.f32.mrf.mxu3 }
 0x22e   : > { %2732 = vst.msk [vmem:[#allocation4 + $0x98] sm:$0xff] %vm2326_vm3, %v7181_v3 }
 0x22f   : > { %2734 = vst.msk [vmem:[#allocation4 + $0xa8] sm:$0xff] %vm2326_vm3, %v7181_v3 }
 0x230   : > { %2735 = vst.msk [vmem:[#allocation4 + $0xb0] sm:$0xff] %vm2326_vm3, %v7181_v3  ;;  %4094 = vmatmul.msk.bf16.gmra.mxu2 %vm172_vm1, %v1636_v45 }
 0x231   : > { %2737 = vst.msk [vmem:[#allocation4 + $0xc0] sm:$0xff] %vm2326_vm3, %v7181_v3 }
 0x232   : > { %2738 = vst.msk [vmem:[#allocation4 + $0xc8] sm:$0xff] %vm2326_vm3, %v7181_v3  ;;  %v5256_v58 = vpop.f32.mrf.mxu1  ;;  %v5267_v55 = vpop.f32.mrf.mxu0  ;;  %4111 = vmatmul.msk.bf16.gmra.mxu3 %vm172_vm1, %v1858_v30 }
 0x233   : > { %2740 = vst.msk [vmem:[#allocation4 + $0xd8] sm:$0xff] %vm2326_vm3, %v7181_v3  ;;  %v1714_v51 = vpop.f32.mrf.mxu2 }
 0x234   : > { %2741 = vst.msk [vmem:[#allocation4 + $0xe0] sm:$0xff] %vm2326_vm3, %v7181_v3 }
 0x235   : > { %2743 = vst.msk [vmem:[#allocation4 + $0xf0] sm:$0xff] %vm2326_vm3, %v7181_v3  ;;  %v1936_v59 = vpop.f32.mrf.mxu3 }
 0x236   : > { %2744 = vst.msk [vmem:[#allocation4 + $0xf8] sm:$0xff] %vm2326_vm3, %v7181_v3 }
 0x237   : > { %2746 = vst.msk [vmem:[#allocation4 + $0x108] sm:$0xff] %vm2326_vm3, %v7181_v3 }
 0x238   : > { %2747 = vst.msk [vmem:[#allocation4 + $0x110] sm:$0xff] %vm2326_vm3, %v7181_v3 }
 0x239   : > { %2749 = vst.msk [vmem:[#allocation4 + $0x120] sm:$0xff] %vm2326_vm3, %v7181_v3 }
 0x23a   : > { %2750 = vst.msk [vmem:[#allocation4 + $0x128] sm:$0xff] %vm2326_vm3, %v7181_v3  ;;  %v5305_v1 = vpop.f32.mrf.mxu0  ;;  %4078 = vmatmul.msk.bf16.gmra.mxu1 %vm172_vm1, %v2080_v21  ;;  %v7192_v21 = vld [vmem:[#allocation17_spill] sm:$0xff] }
 0x23b   : > { %2752 = vst.msk [vmem:[#allocation4 + $0x138] sm:$0xff] %vm2326_vm3, %v7181_v3 }
 0x23c   : > { %2753 = vst.msk [vmem:[#allocation4 + $0x140] sm:$0xff] %vm2326_vm3, %v7181_v3 }
 0x23d   : > { %2755 = vst.msk [vmem:[#allocation4 + $0x150] sm:$0xff] %vm2326_vm3, %v7181_v3 }
 0x23e   : > { %2756 = vst.msk [vmem:[#allocation4 + $0x158] sm:$0xff] %vm2326_vm3, %v7181_v3 }
 0x23f   : > { %2758 = vst.msk [vmem:[#allocation4 + $0x168] sm:$0xff] %vm2326_vm3, %v7181_v3 }
 0x240   : > { %2759 = vst.msk [vmem:[#allocation4 + $0x170] sm:$0xff] %vm2326_vm3, %v7181_v3 }
 0x241   : > { %3387 = vst.msk [vmem:[#allocation5] sm:$0xff] %vm2326_vm3, %v7181_v3 }
 0x242   : > { %3388 = vst.msk [vmem:[#allocation5 + $0x8] sm:$0xff] %vm2326_vm3, %v7181_v3  ;;  %v2160_v32 = vpop.f32.mrf.mxu0 }
 0x243   : > { %3389 = vst.msk [vmem:[#allocation5 + $0x10] sm:$0xff] %vm2326_vm3, %v7181_v3 }
 0x244   : > { %3390 = vst.msk [vmem:[#allocation5 + $0x18] sm:$0xff] %vm2326_vm3, %v7181_v3 }
 0x245   : > { %3391 = vst.msk [vmem:[#allocation5 + $0x20] sm:$0xff] %vm2326_vm3, %v7181_v3 }
 0x246   : > { %3392 = vst.msk [vmem:[#allocation5 + $0x28] sm:$0xff] %vm2326_vm3, %v7181_v3 }
 0x247   : > { %3393 = vst.msk [vmem:[#allocation5 + $0x30] sm:$0xff] %vm2326_vm3, %v7181_v3 }
 0x248   : > { %3394 = vst.msk [vmem:[#allocation5 + $0x38] sm:$0xff] %vm2326_vm3, %v7181_v3 }
 0x249   : > { %3395 = vst.msk [vmem:[#allocation5 + $0x40] sm:$0xff] %vm2326_vm3, %v7181_v3 }
 0x24a   : > { %3396 = vst.msk [vmem:[#allocation5 + $0x48] sm:$0xff] %vm2326_vm3, %v7181_v3 }
 0x24b   : > { %3397 = vst.msk [vmem:[#allocation5 + $0x50] sm:$0xff] %vm2326_vm3, %v7181_v3 }
 0x24c   : > { %3398 = vst.msk [vmem:[#allocation5 + $0x58] sm:$0xff] %vm2326_vm3, %v7181_v3 }
 0x24d   : > { %3399 = vst.msk [vmem:[#allocation5 + $0x60] sm:$0xff] %vm2326_vm3, %v7181_v3 }
 0x24e   : > { %3400 = vst.msk [vmem:[#allocation5 + $0x68] sm:$0xff] %vm2326_vm3, %v7181_v3 }
 0x24f   : > { %3401 = vst.msk [vmem:[#allocation5 + $0x70] sm:$0xff] %vm2326_vm3, %v7181_v3 }
 0x250   : > { %3402 = vst.msk [vmem:[#allocation5 + $0x78] sm:$0xff] %vm2326_vm3, %v7181_v3 }
 0x251   : > { %3403 = vst.msk [vmem:[#allocation5 + $0x80] sm:$0xff] %vm2326_vm3, %v7181_v3 }
 0x252   : > { %3404 = vst.msk [vmem:[#allocation5 + $0x88] sm:$0xff] %vm2326_vm3, %v7181_v3 }
 0x253   : > { %3405 = vst.msk [vmem:[#allocation5 + $0x90] sm:$0xff] %vm2326_vm3, %v7181_v3 }
 0x254   : > { %3406 = vst.msk [vmem:[#allocation5 + $0x98] sm:$0xff] %vm2326_vm3, %v7181_v3 }
 0x255   : > { %3407 = vst.msk [vmem:[#allocation5 + $0xa0] sm:$0xff] %vm2326_vm3, %v7181_v3 }
 0x256   : > { %3408 = vst.msk [vmem:[#allocation5 + $0xa8] sm:$0xff] %vm2326_vm3, %v7181_v3 }
 0x257   : > { %3409 = vst.msk [vmem:[#allocation5 + $0xb0] sm:$0xff] %vm2326_vm3, %v7181_v3 }
 0x258   : > { %3410 = vst.msk [vmem:[#allocation5 + $0xb8] sm:$0xff] %vm2326_vm3, %v7181_v3 }
 0x259   : > { %3411 = vst.msk [vmem:[#allocation5 + $0xc0] sm:$0xff] %vm2326_vm3, %v7181_v3 }
 0x25a   : > { %3412 = vst.msk [vmem:[#allocation5 + $0xc8] sm:$0xff] %vm2326_vm3, %v7181_v3 }
 0x25b   : > { %3413 = vst.msk [vmem:[#allocation5 + $0xd0] sm:$0xff] %vm2326_vm3, %v7181_v3 }
 0x25c   : > { %3414 = vst.msk [vmem:[#allocation5 + $0xd8] sm:$0xff] %vm2326_vm3, %v7181_v3 }
 0x25d   : > { %3415 = vst.msk [vmem:[#allocation5 + $0xe0] sm:$0xff] %vm2326_vm3, %v7181_v3 }
 0x25e   : > { %3416 = vst.msk [vmem:[#allocation5 + $0xe8] sm:$0xff] %vm2326_vm3, %v7181_v3 }
 0x25f   : > { %3417 = vst.msk [vmem:[#allocation5 + $0xf0] sm:$0xff] %vm2326_vm3, %v7181_v3 }
 0x260   : > { %3418 = vst.msk [vmem:[#allocation5 + $0xf8] sm:$0xff] %vm2326_vm3, %v7181_v3 }
 0x261   : > { %3419 = vst.msk [vmem:[#allocation5 + $0x100] sm:$0xff] %vm2326_vm3, %v7181_v3 }
 0x262   : > { %3420 = vst.msk [vmem:[#allocation5 + $0x108] sm:$0xff] %vm2326_vm3, %v7181_v3 }
 0x263   : > { %3421 = vst.msk [vmem:[#allocation5 + $0x110] sm:$0xff] %vm2326_vm3, %v7181_v3 }
 0x264   : > { %3422 = vst.msk [vmem:[#allocation5 + $0x118] sm:$0xff] %vm2326_vm3, %v7181_v3 }
 0x265   : > { %2330 = vst.msk [vmem:[#allocation3 + $0x10] sm:$0x3] %vm2329_vm4, %v7181_v3 }
 0x266   : > { %2333 = vst.msk [vmem:[#allocation3 + $0x28] sm:$0x3] %vm2329_vm4, %v7181_v3 }
 0x267   : > { %2384 = vst.msk [vmem:[#allocation3 + $0x21] sm:$0xff] %vm2326_vm3, %v2295_v22  ;;  %v1491_v22 = vpop.f32.mrf.mxu1 }
 0x268   : > { %7190 = vst [vmem:[#allocation62_spill] sm:$0xff] %v5277_v56 }
 0x269   : > { %2336 = vst.msk [vmem:[#allocation3 + $0x40] sm:$0x3] %vm2329_vm4, %v7181_v3 }
 0x26a   : > { %2339 = vst.msk [vmem:[#allocation3 + $0x58] sm:$0x3] %vm2329_vm4, %v7181_v3 }
 0x26b   : > { %2342 = vst.msk [vmem:[#allocation3 + $0x70] sm:$0x3] %vm2329_vm4, %v7181_v3 }
 0x26c   : > { %2345 = vst.msk [vmem:[#allocation3 + $0x88] sm:$0x3] %vm2329_vm4, %v7181_v3 }
 0x26d   : > { %2348 = vst.msk [vmem:[#allocation3 + $0xa0] sm:$0x3] %vm2329_vm4, %v7181_v3 }
 0x26e   : > { %2351 = vst.msk [vmem:[#allocation3 + $0xb8] sm:$0x3] %vm2329_vm4, %v7181_v3  ;;  %v5312_v9 = vld [vmem:[#allocation3 + $0x21] sm:$0xff] }
 0x26f   : > { %v3094_v11 = vld [vmem:[#allocation3 + $0x20] sm:$0xff]  ;;  %2354 = vst.msk [vmem:[#allocation3 + $0xd0] sm:$0x3] %vm2329_vm4, %v7181_v3  ;;  %v3226_v33 = vmul.f32 %v5287_v46, %v5312_v9 }
 0x270   : > { %v3289_v25 = vld [vmem:[#allocation3 + $0x1a] sm:$0xff]  ;;  %v3128_v7 = vmul.f32 %v5263_v13, %v3094_v11  ;;  %2357 = vst.msk [vmem:[#allocation3 + $0xe8] sm:$0x3] %vm2329_vm4, %v7181_v3  ;;  %v3290_v45 = vld [vmem:[#allocation3 + $0x22] sm:$0xff] }
 0x271   : > { %v3323_v4 = vmul.f32 %v5301_v52, %v3289_v25  ;;  %2360 = vst.msk [vmem:[#allocation3 + $0x100] sm:$0x3] %vm2329_vm4, %v7181_v3  ;;  %v1493_v25 = vpop.f32.mrf.mxu1  ;;  %v3324_v44 = vmul.f32 %v5301_v52, %v3290_v45 }
 0x272   : > { %v3160_v36 = vadd.f32 %v5277_v56, %v3128_v7  ;;  %2363 = vst.msk [vmem:[#allocation3 + $0x118] sm:$0x3] %vm2329_vm4, %v7181_v3  ;;  %v1342_v7 = vadd.f32 %v7191_v57, %v4784_v42  ;;  %v1786_v42 = vadd.f32 %v5243_v53, %v1563_v29  ;;  %v1938_v57 = vpop.f32.mrf.mxu3 }
 0x273   : > { %v3355_v11 = vadd.f32 %v3323_v4, %v3257_v43  ;;  %2366 = vst.msk [vmem:[#allocation3 + $0x130] sm:$0x3] %vm2329_vm4, %v7181_v3  ;;  %v7193_v43 = vld [vmem:[#allocation15_spill] sm:$0xff] }
 0x274   : > { %v3258_v30 = vadd.f32 %v3226_v33, %v3160_v36  ;;  %2369 = vst.msk [vmem:[#allocation3 + $0x148] sm:$0x3] %vm2329_vm4, %v7181_v3  ;;  %v1343_v4 = vadd.f32 %v7193_v43, %v7192_v21  ;;  %v1564_v36 = vadd.f32 %v5256_v58, %v1342_v7  ;;  %v7194_v33 = vld [vmem:[#allocation16_spill] sm:$0xff]  ;;  %v2008_v29 = vadd.f32 %v5245_v62, %v1786_v42  ;;  %v1616_v58 = vld [vmem:[#allocation2 + $0x138] sm:$0xff]  ;;  %v2163_v21 = vpop.f32.mrf.mxu0  ;;  %v2061_v42 = vld [vmem:[#allocation2 + $0x142] sm:$0xff] }
 0x275   : > { %3424 = vst.msk [vmem:[#allocation5 + $0x10] sm:$0xff] %vm2326_vm3, %v3355_v11  ;;  %v1344_v45 = vadd.f32 %v7194_v33, %v4800_v2 }
 0x276   : > { %v3356_v40 = vadd.f32 %v3324_v44, %v3258_v30  ;;  %2372 = vst.msk [vmem:[#allocation3 + $0x160] sm:$0x3] %vm2329_vm4, %v7181_v3  ;;  %v1565_v11 = vadd.f32 %v1491_v22, %v1343_v4  ;;  %v1787_v50 = vadd.f32 %v1711_v15, %v1564_v36  ;;  %v1716_v44 = vpop.f32.mrf.mxu2  ;;  %v1838_v15 = vld [vmem:[#allocation2 + $0x139] sm:$0xff]  ;;  %v7195_v4 = vld [vmem:[#allocation20_spill] sm:$0xff] }
 0x277   : > { %2375 = vst.msk [vmem:[#allocation3 + $0x178] sm:$0x3] %vm2329_vm4, %v7181_v3  ;;  %v1566_v14 = vadd.f32 %v1493_v25, %v1344_v45  ;;  %v1839_v25 = vld [vmem:[#allocation2 + $0x141] sm:$0xff] }
 0x278   : > { %3425 = vst.msk [vmem:[#allocation5 + $0x18] sm:$0xff] %vm2326_vm3, %v3356_v40  ;;  %v1788_v30 = vadd.f32 %v1714_v51, %v1565_v11  ;;  %v1617_v40 = vld [vmem:[#allocation2 + $0x140] sm:$0xff]  ;;  %v2009_v22 = vadd.f32 %v5282_v0, %v1787_v50  ;;  %v1859_v43 = vpack.c.bf16 %v1839_v25, %v1838_v15  ;;  %v2230_v0 = vadd.f32 %v5233_v47, %v2008_v29  ;;  %v7197_v15 = vld [vmem:[#allocation19_spill] sm:$0xff] }
 0x279   : > { %2378 = vst.msk [vmem:[#allocation3 + $0x190] sm:$0x3] %vm2329_vm4, %v7181_v3  ;;  %v1789_v2 = vadd.f32 %v1716_v44, %v1566_v14  ;;  %v1496_v53 = vpop.f32.mrf.mxu1  ;;  %v1637_v51 = vpack.c.bf16 %v1617_v40, %v1616_v58  ;;  %v7196_v36 = vld [vmem:[#allocation18_spill] sm:$0xff] }
 0x27a   : > { %2381 = vst.msk [vmem:[#allocation3 + $0x1a8] sm:$0x3] %vm2329_vm4, %v7181_v3  ;;  %v2010_v7 = vadd.f32 %v1936_v59, %v1788_v30  ;;  %v1345_v33 = vadd.f32 %v7196_v36, %v7195_v4  ;;  %v2060_v45 = vld [vmem:[#allocation2 + $0x13a] sm:$0xff]  ;;  %4112 = vmatmul.msk.bf16.gmra.mxu3 %vm172_vm1, %v1859_v43  ;;  %v2231_v11 = vadd.f32 %v5267_v55, %v2009_v22  ;;  %v1941_v44 = vpop.f32.mrf.mxu3 }
 0x27b   : > { %2715 = vst.msk [vmem:[#allocation4 + $0x10] sm:$0x3] %vm2329_vm4, %v7181_v3  ;;  %v2011_v62 = vadd.f32 %v1938_v57, %v1789_v2  ;;  %4095 = vmatmul.msk.bf16.gmra.mxu2 %vm172_vm1, %v1637_v51  ;;  %v2081_v59 = vpack.c.bf16 %v2061_v42, %v2060_v45  ;;  %v2264_v55 = vadd.f32 %v5081_v16, %v2230_v0  ;;  %v5399_v51 = vld [vmem:[%s7102_s2 + $0x1] ss:$0 sm:$0xff]  ;;  %v2419_v4 = vld [vmem:[#allocation3 + $0x9] sm:$0xff] }
 0x27c   : > { %2718 = vst.msk [vmem:[#allocation4 + $0x28] sm:$0x3] %vm2329_vm4, %v7181_v3  ;;  %v1567_v50 = vadd.f32 %v1496_v53, %v1345_v33  ;;  %v2232_v14 = vadd.f32 %v5305_v1, %v2010_v7  ;;  %v2265_v1 = vadd.f32 %v5081_v16, %v2231_v11  ;;  %v2165_v53 = vpop.f32.mrf.mxu0  ;;  %v1346_v22 = vadd.f32 %v7197_v15, %v4816_v6  ;;  %v2418_v7 = vld [vmem:[#allocation3 + $0x1] sm:$0xff]  ;;  %v5409_v6 = vld [vmem:[%s7102_s2 + $0x4] ss:$0 sm:$0xff] }
 0x27d   : > { %2721 = vst.msk [vmem:[#allocation4 + $0x40] sm:$0x3] %vm2329_vm4, %v7181_v3  ;;  %v2233_v47 = vadd.f32 %v2160_v32, %v2011_v62  ;;  %4129 = vmatmul.msk.bf16.gmra.mxu0 %vm172_vm1, %v2081_v59  ;;  %4079 = vmatmul.msk.bf16.gmra.mxu1 %vm172_vm1, %v2081_v59  ;;  %v2296_v25 = vmax.f32 %v2264_v55, 0.0  ;;  %v5416_v42 = vld [vmem:[%s7102_s2 + $0x2] ss:$0 sm:$0xff]  ;;  %v2452_v11 = vmul.f32 %v5399_v51, %v2418_v7 }
 0x27e   : > { %2724 = vst.msk [vmem:[#allocation4 + $0x58] sm:$0x3] %vm2329_vm4, %v7181_v3  ;;  %v1719_v30 = vpop.f32.mrf.mxu2  ;;  %v2266_v32 = vadd.f32 %v5081_v16, %v2232_v14  ;;  %v2297_v43 = vmax.f32 %v2265_v1, 0.0  ;;  %v1841_v1 = vld [vmem:[#allocation2 + $0x159] sm:$0xff]  ;;  %v2550_v7 = vmul.f32 %v5416_v42, %v5293_v10 }
 0x27f   : > { %2727 = vst.msk [vmem:[#allocation4 + $0x70] sm:$0x3] %vm2329_vm4, %v7181_v3  ;;  %v1790_v57 = vadd.f32 %v1719_v30, %v1567_v50  ;;  %v2267_v58 = vadd.f32 %v5081_v16, %v2233_v47  ;;  %v1618_v30 = vld [vmem:[#allocation2 + $0x150] sm:$0xff] }
 0x280   : > { %2730 = vst.msk [vmem:[#allocation4 + $0x88] sm:$0x3] %vm2329_vm4, %v7181_v3  ;;  %v2298_v36 = vmax.f32 %v2266_v32, 0.0  ;;  %v1840_v47 = vld [vmem:[#allocation2 + $0x151] sm:$0xff] }
 0x281   : > { %2733 = vst.msk [vmem:[#allocation4 + $0xa0] sm:$0x3] %vm2329_vm4, %v7181_v3  ;;  %v1498_v2 = vpop.f32.mrf.mxu1  ;;  %v2012_v29 = vadd.f32 %v1941_v44, %v1790_v57  ;;  %v2299_v0 = vmax.f32 %v2267_v58, 0.0  ;;  %v1619_v44 = vld [vmem:[#allocation2 + $0x158] sm:$0xff]  ;;  %v2453_v57 = vmul.f32 %v5399_v51, %v2419_v4  ;;  %v3460_v4 = vld [vmem:[#allocation5 + $0x8] sm:$0xff] }
 0x282   : > { %2736 = vst.msk [vmem:[#allocation4 + $0xb8] sm:$0x3] %vm2329_vm4, %v7181_v3  ;;  %v1943_v45 = vpop.f32.mrf.mxu3  ;;  %v2062_v32 = vld [vmem:[#allocation2 + $0x152] sm:$0xff]  ;;  %v2063_v58 = vld [vmem:[#allocation2 + $0x15a] sm:$0xff] }
 0x283   : > { %2739 = vst.msk [vmem:[#allocation4 + $0xd0] sm:$0x3] %vm2329_vm4, %v7181_v3  ;;  %v2234_v40 = vadd.f32 %v2163_v21, %v2012_v29  ;;  %v1568_v21 = vadd.f32 %v1498_v2, %v1346_v22  ;;  %v1638_v2 = vpack.c.bf16 %v1619_v44, %v1618_v30  ;;  %v1860_v29 = vpack.c.bf16 %v1841_v1, %v1840_v47  ;;  %v7200_v30 = vld [vmem:[#allocation22_spill] sm:$0xff] }
 0x284   : > { %2742 = vst.msk [vmem:[#allocation4 + $0xe8] sm:$0x3] %vm2329_vm4, %v7181_v3  ;;  %v2082_v22 = vpack.c.bf16 %v2063_v58, %v2062_v32  ;;  %v5468_v44 = vadd.f32 %v7200_v30, %v4849_v28  ;;  %v3461_v30 = vld [vmem:[#allocation5 + $0x10] sm:$0xff] }
 0x285   : > { %2745 = vst.msk [vmem:[#allocation4 + $0x100] sm:$0x3] %vm2329_vm4, %v7181_v3  ;;  %v2268_v62 = vadd.f32 %v5081_v16, %v2234_v40  ;;  %v5432_v40 = vld [vmem:[%s7102_s2 + $0xd] ss:$0 sm:$0xff] }
 0x286   : > { %2748 = vst.msk [vmem:[#allocation4 + $0x118] sm:$0x3] %vm2329_vm4, %v7181_v3  ;;  %v1721_v33 = vpop.f32.mrf.mxu2 }
 0x287   : > { %7198 = vst [vmem:[#allocation14_spill] sm:$0xff] %v5399_v51  ;;  %v1791_v59 = vadd.f32 %v1721_v33, %v1568_v21  ;;  %v2300_v50 = vmax.f32 %v2268_v62, 0.0  ;;  %v5442_v62 = vld [vmem:[%s7102_s2 + $0x3] ss:$0 sm:$0xff]  ;;  %v2551_v21 = vmul.f32 %v5416_v42, %v5312_v9  ;;  %v7199_v33 = vld [vmem:[#allocation21_spill] sm:$0xff] }
 0x288   : > { %2751 = vst.msk [vmem:[#allocation4 + $0x130] sm:$0x3] %vm2329_vm4, %v7181_v3 }
 0x289   : > { %2754 = vst.msk [vmem:[#allocation4 + $0x148] sm:$0x3] %vm2329_vm4, %v7181_v3  ;;  %v5422_v14 = vpop.f32.mrf.mxu1  ;;  %v2013_v55 = vadd.f32 %v1943_v45, %v1791_v59  ;;  %v5452_v45 = vadd.f32 %v7199_v33, %v4825_v27  ;;  %v2454_v27 = vmul.f32 %v5399_v51, %v5293_v10 }
 0x28a   : > { %2757 = vst.msk [vmem:[#allocation4 + $0x160] sm:$0x3] %vm2329_vm4, %v7181_v3  ;;  %4113 = vmatmul.msk.bf16.gmra.mxu3 %vm172_vm1, %v1860_v29  ;;  %v5456_v59 = vpop.f32.mrf.mxu3 }
 0x28b   : > { %2760 = vst.msk [vmem:[#allocation4 + $0x178] sm:$0x3] %vm2329_vm4, %v7181_v3  ;;  %v5427_v3 = vpop.f32.mrf.mxu0  ;;  %v2235_v15 = vadd.f32 %v2165_v53, %v2013_v55  ;;  %4096 = vmatmul.msk.bf16.gmra.mxu2 %vm172_vm1, %v1638_v2  ;;  %v2485_v53 = vadd.f32 %v5409_v6, %v2453_v57  ;;  %v3494_v55 = vmul.f32 %v5432_v40, %v3460_v4 }
 0x28c   : > { %2385 = vst.msk [vmem:[#allocation3 + $0x31] sm:$0xff] %vm2326_vm3, %v2296_v25  ;;  %v2484_v25 = vadd.f32 %v5409_v6, %v2452_v11  ;;  %v5460_v11 = vadd.f32 %v4818_v37, %v4834_v19  ;;  %v2486_v33 = vadd.f32 %v5409_v6, %v2454_v27 }
 0x28d   : > { %2386 = vst.msk [vmem:[#allocation3 + $0x39] sm:$0xff] %vm2326_vm3, %v2297_v43  ;;  %v3459_v43 = vld [vmem:[#allocation5] sm:$0xff]  ;;  %4130 = vmatmul.msk.bf16.gmra.mxu0 %vm172_vm1, %v2082_v22  ;;  %4080 = vmatmul.msk.bf16.gmra.mxu1 %vm172_vm1, %v2082_v22  ;;  %v2583_v32 = vadd.f32 %v2551_v21, %v2485_v53 }
 0x28e   : > { %2387 = vst.msk [vmem:[#allocation3 + $0x49] sm:$0xff] %vm2326_vm3, %v2298_v36  ;;  %v2269_v36 = vadd.f32 %v5081_v16, %v2235_v15  ;;  %v5475_v16 = vld [vmem:[%s7102_s2 + $0x10] ss:$0 sm:$0xff]  ;;  %v3493_v47 = vmul.f32 %v5432_v40, %v3459_v43  ;;  %v2582_v28 = vadd.f32 %v2550_v7, %v2484_v25  ;;  %v2455_v43 = vmul.f32 %v5399_v51, %v5312_v9 }
 0x28f   : > { %2388 = vst.msk [vmem:[#allocation3 + $0x51] sm:$0xff] %vm2326_vm3, %v2299_v0  ;;  %v5454_v0 = vpop.f32.mrf.mxu2  ;;  %v7203_v25 = vld [vmem:[#allocation24_spill] sm:$0xff]  ;;  %v5511_v9 = vadd.f32 %v5475_v16, %v3494_v55 }
 0x290   : > { %2389 = vst.msk [vmem:[#allocation3 + $0x61] sm:$0xff] %vm2326_vm3, %v2300_v50  ;;  %v5464_v50 = vadd.f32 %v4827_v26, %v4842_v18  ;;  %v2301_v57 = vmax.f32 %v2269_v36, 0.0  ;;  %v7201_v26 = vld [vmem:[#allocation23_spill] sm:$0xff]  ;;  %v5495_v7 = vadd.f32 %v7203_v25, %v4863_v8 }
 0x291   : > { %v5481_v18 = vadd.f32 %v7201_v26, %v4857_v38  ;;  %v5503_v21 = vpop.f32.mrf.mxu1 }
 0x292   : > { %2390 = vst.msk [vmem:[#allocation3 + $0x69] sm:$0xff] %vm2326_vm3, %v2301_v57 }
 0x293   : > { %v2422_v37 = vld [vmem:[#allocation3 + $0x31] sm:$0xff]  ;;  %7202 = vst [vmem:[#allocation17_spill] sm:$0xff] %v5481_v18  ;;  %v5517_v25 = vpop.f32.mrf.mxu0 }
 0x294   : > { %v3095_v19 = vld [vmem:[#allocation3 + $0x30] sm:$0xff]  ;;  %v2649_v10 = vmul.f32 %v5442_v62, %v2422_v37  ;;  %v5486_v1 = vld [vmem:[#allocation3 + $0x39] sm:$0xff]  ;;  %v2552_v58 = vmul.f32 %v5416_v42, %v2422_v37  ;;  %7204 = vst [vmem:[#allocation15_spill] sm:$0xff] %v5495_v7  ;;  %v3227_v22 = vmul.f32 %v5287_v46, %v2422_v37 }
 0x295   : > { %v3129_v2 = vmul.f32 %v5263_v13, %v3095_v19  ;;  %v3096_v29 = vld [vmem:[#allocation3 + $0x38] sm:$0xff]  ;;  %v2650_v15 = vmul.f32 %v5442_v62, %v5486_v1  ;;  %v5501_v53 = vld [vmem:[#allocation3 + $0x49] sm:$0xff]  ;;  %v5507_v19 = vadd.f32 %v5475_v16, %v3493_v47  ;;  %v3228_v55 = vmul.f32 %v5287_v46, %v5486_v1 }
 0x296   : > { %v3291_v38 = vld [vmem:[#allocation3 + $0x32] sm:$0xff]  ;;  %v2681_v4 = vadd.f32 %v2649_v10, %v2582_v28  ;;  %v3130_v57 = vmul.f32 %v5263_v13, %v3096_v29  ;;  %v3097_v26 = vld [vmem:[#allocation3 + $0x48] sm:$0xff]  ;;  %v2553_v10 = vmul.f32 %v5416_v42, %v5486_v1  ;;  %v2584_v47 = vadd.f32 %v2552_v58, %v2486_v33  ;;  %v5532_v58 = vld [vmem:[%s7102_s2 + $0xe] ss:$0 sm:$0xff] }
 0x297   : > { %v3161_v36 = vadd.f32 %v5277_v56, %v3129_v2  ;;  %v2682_v8 = vadd.f32 %v2650_v15, %v2583_v32  ;;  %v3292_v2 = vld [vmem:[#allocation3 + $0x3a] sm:$0xff]  ;;  %v3325_v27 = vmul.f32 %v5301_v52, %v3291_v38  ;;  %v2651_v32 = vmul.f32 %v5442_v62, %v5501_v53  ;;  %v5525_v15 = vld [vmem:[#allocation3 + $0x51] sm:$0xff]  ;;  %7205 = vst [vmem:[#allocation16_spill] sm:$0xff] %v5532_v58 }
 0x298   : > { %2761 = vst.msk [vmem:[#allocation4 + $0x1] sm:$0xff] %vm2326_vm3, %v2681_v4  ;;  %v3162_v29 = vadd.f32 %v5277_v56, %v3130_v57  ;;  %v2487_v4 = vadd.f32 %v5409_v6, %v2455_v43  ;;  %v3098_v33 = vld [vmem:[#allocation3 + $0x50] sm:$0xff]  ;;  %v2456_v57 = vmul.f32 %v5399_v51, %v2422_v37  ;;  %v3326_v17 = vmul.f32 %v5301_v52, %v3292_v2  ;;  %v5550_v2 = vpop.f32.mrf.mxu2 }
 0x299   : > { %v3259_v28 = vadd.f32 %v3227_v22, %v3161_v36  ;;  %2762 = vst.msk [vmem:[#allocation4 + $0x9] sm:$0xff] %vm2326_vm3, %v2682_v8  ;;  %v3495_v36 = vmul.f32 %v5432_v40, %v3461_v30  ;;  %v3131_v22 = vmul.f32 %v5263_v13, %v3097_v26  ;;  %v3293_v8 = vld [vmem:[#allocation3 + $0x4a] sm:$0xff]  ;;  %v2683_v20 = vadd.f32 %v2651_v32, %v2584_v47  ;;  %v5540_v43 = vld [vmem:[%s7102_s2 + $0x5] ss:$0 sm:$0xff]  ;;  %v5552_v47 = vpop.f32.mrf.mxu3  ;;  %v5578_v39 = vpop.f32.mrf.mxu1 }
 0x29a   : > { %v3260_v35 = vadd.f32 %v3228_v55, %v3162_v29  ;;  %v2585_v61 = vadd.f32 %v2553_v10, %v2487_v4  ;;  %v3229_v26 = vmul.f32 %v5287_v46, %v5501_v53  ;;  %v2652_v37 = vmul.f32 %v5442_v62, %v5525_v15  ;;  %v3462_v29 = vld [vmem:[#allocation5 + $0x18] sm:$0xff]  ;;  %v5557_v10 = vld [vmem:[%s7102_s2 + $0x8] ss:$0 sm:$0xff] }
 0x29b   : > { %v3357_v38 = vadd.f32 %v3325_v27, %v3259_v28  ;;  %v3163_v28 = vadd.f32 %v5277_v56, %v3131_v22  ;;  %v5548_v27 = vld [vmem:[#allocation3 + $0x61] sm:$0xff]  ;;  %v2554_v32 = vmul.f32 %v5416_v42, %v5501_v53  ;;  %2763 = vst.msk [vmem:[#allocation4 + $0x19] sm:$0xff] %vm2326_vm3, %v2683_v20  ;;  %v3132_v4 = vmul.f32 %v5263_v13, %v3098_v33  ;;  %v3294_v33 = vld [vmem:[#allocation3 + $0x52] sm:$0xff]  ;;  %v5596_v12 = vpop.f32.mrf.mxu0 }
 0x29c   : > { %v3358_v55 = vadd.f32 %v3326_v17, %v3260_v35  ;;  %v5565_v22 = vadd.f32 %v5475_v16, %v3495_v36  ;;  %v3591_v49 = vmul.f32 %v5532_v58, %v3461_v30  ;;  %v5576_v17 = vld [vmem:[%s7102_s2 + $0x7] ss:$0 sm:$0xff]  ;;  %v2684_v35 = vadd.f32 %v2652_v37, %v2585_v61  ;;  %v5585_v30 = vld [vmem:[%s7102_s2 + $0xf] ss:$0 sm:$0xff]  ;;  %7206 = vst [vmem:[#allocation20_spill] sm:$0xff] %v5596_v12 }
 0x29d   : > { %3426 = vst.msk [vmem:[#allocation5 + $0x20] sm:$0xff] %vm2326_vm3, %v3357_v38  ;;  %v3327_v38 = vmul.f32 %v5301_v52, %v3293_v8  ;;  %v3261_v20 = vadd.f32 %v3229_v26, %v3163_v28  ;;  %v2488_v36 = vadd.f32 %v5409_v6, %v2456_v57  ;;  %v3164_v5 = vadd.f32 %v5277_v56, %v3132_v4 }
 0x29e   : > { %3427 = vst.msk [vmem:[#allocation5 + $0x28] sm:$0xff] %vm2326_vm3, %v3358_v55  ;;  %v3230_v28 = vmul.f32 %v5287_v46, %v5525_v15  ;;  %v2653_v61 = vmul.f32 %v5442_v62, %v5548_v27  ;;  %v3496_v26 = vmul.f32 %v5432_v40, %v3462_v29  ;;  %v3592_v57 = vmul.f32 %v5532_v58, %v3462_v29 }
 0x29f   : > { %v2796_v8 = vld [vmem:[#allocation4] sm:$0xff]  ;;  %2764 = vst.msk [vmem:[#allocation4 + $0x21] sm:$0xff] %vm2326_vm3, %v2684_v35  ;;  %v3359_v31 = vadd.f32 %v3327_v38, %v3261_v20  ;;  %v2586_v24 = vadd.f32 %v2554_v32, %v2488_v36  ;;  %v3328_v34 = vmul.f32 %v5301_v52, %v3294_v33  ;;  %v3623_v33 = vadd.f32 %v3591_v49, %v5507_v19 }
 0x2a0   : > { %v2894_v48 = vld [vmem:[#allocation4 + $0x1] sm:$0xff]  ;;  %v2830_v37 = vmul.f32 %v5540_v43, %v2796_v8  ;;  %v2895_v60 = vld [vmem:[#allocation4 + $0x9] sm:$0xff]  ;;  %v3262_v41 = vadd.f32 %v3230_v28, %v3164_v5  ;;  %v2457_v8 = vmul.f32 %v5399_v51, %v5486_v1  ;;  %v5615_v28 = vpop.f32.mrf.mxu2 }
 0x2a1   : > { %v2797_v55 = vld [vmem:[#allocation4 + $0x8] sm:$0xff]  ;;  %v2928_v29 = vmul.f32 %v5571_v54, %v2894_v48  ;;  %3428 = vst.msk [vmem:[#allocation5 + $0x30] sm:$0xff] %vm2326_vm3, %v3359_v31  ;;  %v2929_v20 = vmul.f32 %v5571_v54, %v2895_v60  ;;  %v2685_v35 = vadd.f32 %v2653_v61, %v2586_v24  ;;  %v5617_v31 = vpop.f32.mrf.mxu3  ;;  %v3528_v60 = vadd.f32 %v5475_v16, %v3496_v26  ;;  %v5635_v61 = vpop.f32.mrf.mxu1 }
 0x2a2   : > { %v2992_v23 = vld [vmem:[#allocation4 + $0x2] sm:$0xff]  ;;  %v2831_v4 = vmul.f32 %v5540_v43, %v2797_v55  ;;  %v2862_v63 = vadd.f32 %v5557_v10, %v2830_v37  ;;  %v2993_v7 = vld [vmem:[#allocation4 + $0xa] sm:$0xff]  ;;  %v3360_v5 = vadd.f32 %v3328_v34, %v3262_v41  ;;  %v2798_v1 = vld [vmem:[#allocation4 + $0x18] sm:$0xff]  ;;  %v2489_v26 = vadd.f32 %v5409_v6, %v2457_v8 }
 0x2a3   : > { %v3026_v18 = vmul.f32 %v5576_v17, %v2992_v23  ;;  %v1569_v23 = vadd.f32 %v5422_v14, %v5452_v45  ;;  %v3027_v34 = vmul.f32 %v5576_v17, %v2993_v7  ;;  %v2832_v24 = vmul.f32 %v5540_v43, %v2798_v1  ;;  %v5629_v14 = vld [vmem:[%s7102_s2 + $0x11] ss:$0 sm:$0xff]  ;;  %v2896_v45 = vld [vmem:[#allocation4 + $0x19] sm:$0xff]  ;;  %2765 = vst.msk [vmem:[#allocation4 + $0x31] sm:$0xff] %vm2326_vm3, %v2685_v35 }
 0x2a4   : > { %v2863_v38 = vadd.f32 %v5557_v10, %v2831_v4  ;;  %v5608_v32 = vld [vmem:[#allocation5 + $0x20] sm:$0xff]  ;;  %v2960_v36 = vadd.f32 %v2928_v29, %v2862_v63  ;;  %3429 = vst.msk [vmem:[#allocation5 + $0x38] sm:$0xff] %vm2326_vm3, %v3360_v5  ;;  %v3624_v63 = vadd.f32 %v3592_v57, %v5511_v9  ;;  %v2458_v57 = vmul.f32 %v5399_v51, %v5501_v53  ;;  %v3099_v35 = vld [vmem:[#allocation3 + $0x60] sm:$0xff] }
 0x2a5   : > { %v3690_v48 = vmul.f32 %v5585_v30, %v5608_v32  ;;  %v5624_v49 = vld [vmem:[#allocation5 + $0x28] sm:$0xff]  ;;  %v5633_v7 = vadd.f32 %v5454_v0, %v1569_v23  ;;  %v5645_v0 = vld [vmem:[%s7102_s2 + $0x12] ss:$0 sm:$0xff]  ;;  %v2459_v8 = vmul.f32 %v5399_v51, %v5525_v15  ;;  %v3593_v53 = vmul.f32 %v5532_v58, %v5608_v32 }
 0x2a6   : > { %v2961_v37 = vadd.f32 %v2929_v20, %v2863_v38  ;;  %v3058_v41 = vadd.f32 %v3026_v18, %v2960_v36  ;;  %v3691_v18 = vmul.f32 %v5585_v30, %v5624_v49  ;;  %v2799_v55 = vld [vmem:[#allocation4 + $0x20] sm:$0xff]  ;;  %v2864_v20 = vadd.f32 %v5557_v10, %v2832_v24 }
 0x2a7   : > { %v3722_v19 = vadd.f32 %v3690_v48, %v3623_v33  ;;  %v2897_v4 = vld [vmem:[#allocation4 + $0x21] sm:$0xff]  ;;  %v2833_v5 = vmul.f32 %v5540_v43, %v2799_v55  ;;  %v5651_v33 = vpop.f32.mrf.mxu0  ;;  %v2930_v48 = vmul.f32 %v5571_v54, %v2896_v45  ;;  %v3133_v45 = vmul.f32 %v5263_v13, %v3099_v35 }
 0x2a8   : > { %v3059_v9 = vadd.f32 %v3027_v34, %v2961_v37  ;;  %v2994_v29 = vld [vmem:[#allocation4 + $0x1a] sm:$0xff]  ;;  %7207 = vst [vmem:[#allocation18_spill] sm:$0xff] %v5651_v33  ;;  %v3723_v36 = vadd.f32 %v3691_v18, %v3624_v63  ;;  %v2995_v1 = vld [vmem:[#allocation4 + $0x22] sm:$0xff]  ;;  %v5657_v37 = vld [vmem:[#allocation5 + $0x30] sm:$0xff]  ;;  %v3594_v34 = vmul.f32 %v5532_v58, %v5624_v49 }
 0x2a9   : > { %v3754_v38 = vadd.f32 %v3722_v19, %v3058_v41  ;;  %v3028_v23 = vmul.f32 %v5576_v17, %v2994_v29  ;;  %v2865_v41 = vadd.f32 %v5557_v10, %v2833_v5  ;;  %v2931_v19 = vmul.f32 %v5571_v54, %v2897_v4  ;;  %v5674_v5 = vpop.f32.mrf.mxu2  ;;  %v5676_v4 = vpop.f32.mrf.mxu3 }
 0x2aa   : > { %v3755_v55 = vadd.f32 %v3723_v36, %v3059_v9  ;;  %v2962_v33 = vadd.f32 %v2930_v48, %v2864_v20  ;;  %v3692_v63 = vmul.f32 %v5585_v30, %v5657_v37  ;;  %v2555_v29 = vmul.f32 %v5416_v42, %v5525_v15  ;;  %7208 = vst [vmem:[#allocation19_spill] sm:$0xff] %v5676_v4 }
 0x2ab   : > { %v3788_v24 = vmul.f32 %v5629_v14, %v3754_v38  ;;  %v2963_v12 = vadd.f32 %v2931_v19, %v2865_v41  ;;  %v3029_v58 = vmul.f32 %v5576_v17, %v2995_v1  ;;  %v5672_v38 = vld [vmem:[#allocation5 + $0x38] sm:$0xff]  ;;  %v3625_v9 = vadd.f32 %v3593_v53, %v5565_v22  ;;  %v5692_v19 = vpop.f32.mrf.mxu1 }
 0x2ac   : > { %v3789_v20 = vmul.f32 %v5629_v14, %v3755_v55  ;;  %v5686_v15 = vadd.f32 %v5409_v6, %v2458_v57  ;;  %v3060_v35 = vadd.f32 %v3028_v23, %v2962_v33  ;;  %v3626_v36 = vadd.f32 %v3594_v34, %v3528_v60  ;;  %v5690_v41 = vld [vmem:[#allocation3 + $0x69] sm:$0xff]  ;;  %v2800_v23 = vld [vmem:[#allocation4 + $0x30] sm:$0xff] }
 0x2ad   : > { %v3822_v18 = vadd.f32 %v5645_v0, %v3788_v24  ;;  %v3061_v1 = vadd.f32 %v3029_v58, %v2963_v12  ;;  %v3693_v24 = vmul.f32 %v5585_v30, %v5672_v38  ;;  %v5696_v22 = vadd.f32 %v5409_v6, %v2459_v8  ;;  %v3100_v55 = vld [vmem:[#allocation3 + $0x68] sm:$0xff] }
 0x2ae   : > { %v3823_v4 = vadd.f32 %v5645_v0, %v3789_v20  ;;  %v3724_v53 = vadd.f32 %v3692_v63, %v3625_v9  ;;  %v3165_v57 = vadd.f32 %v5277_v56, %v3133_v45  ;;  %v2587_v60 = vadd.f32 %v2555_v29, %v2489_v26 }
 0x2af   : > { %v3854_v48 = vmax.f32 %v3822_v18, 0.0  ;;  %7209 = vst [vmem:[#allocation21_spill] sm:$0xff] %v5696_v22  ;;  %v3725_v12 = vadd.f32 %v3693_v24, %v3626_v36  ;;  %v2460_v58 = vmul.f32 %v5399_v51, %v5548_v27  ;;  %v5705_v33 = vmul.f32 %v5416_v42, %v5548_v27  ;;  %v5707_v34 = vpop.f32.mrf.mxu0  ;;  %v3295_v18 = vld [vmem:[#allocation3 + $0x62] sm:$0xff]  ;;  %v1842_v22 = vld [vmem:[#allocation2 + $0x169] sm:$0xff] }
 0x2b0   : > { %v3855_v8 = vmax.f32 %v3823_v4, 0.0  ;;  %v3756_v63 = vadd.f32 %v3724_v53, %v3060_v35  ;;  %v3231_v45 = vmul.f32 %v5287_v46, %v5548_v27  ;;  %v2654_v26 = vmul.f32 %v5442_v62, %v5690_v41 }
 0x2b1   : > { %3886 = vst.msk [vmem:[%s5681_s26] sm:$0xff] %vm2326_vm3, %v3854_v48  ;;  %v3497_v29 = vmul.f32 %v5432_v40, %v5608_v32  ;;  %v5717_v9 = vmul.f32 %v5432_v40, %v5624_v49  ;;  %v3757_v20 = vadd.f32 %v3725_v12, %v3061_v1  ;;  %v3134_v36 = vmul.f32 %v5263_v13, %v3100_v55  ;;  %v3296_v48 = vld [vmem:[#allocation3 + $0x6a] sm:$0xff]  ;;  %v1620_v12 = vld [vmem:[#allocation2 + $0x168] sm:$0xff]  ;;  %v1621_v55 = vld [vmem:[#allocation2 + $0x170] sm:$0xff]  ;;  %v1734_v51 = vpop.f32.mrf.mxu2 }
 0x2b2   : > { %3887 = vst.msk [vmem:[%s5681_s26 + $0x8] sm:$0xff] %vm2326_vm3, %v3855_v8  ;;  %v3790_v4 = vmul.f32 %v5629_v14, %v3756_v63  ;;  %v2834_v27 = vmul.f32 %v5540_v43, %v2800_v23  ;;  %v3263_v35 = vadd.f32 %v3231_v45, %v3165_v57  ;;  %v2686_v24 = vadd.f32 %v2654_v26, %v2587_v60  ;;  %v5729_v8 = vpop.f32.mrf.mxu3  ;;  %v1843_v23 = vld [vmem:[#allocation2 + $0x171] sm:$0xff] }
 0x2b3   : > { %v3791_v53 = vmul.f32 %v5629_v14, %v3757_v20  ;;  %v3166_v32 = vadd.f32 %v5277_v56, %v3134_v36  ;;  %v3232_v49 = vmul.f32 %v5287_v46, %v5690_v41  ;;  %v3329_v1 = vmul.f32 %v5301_v52, %v3295_v18  ;;  %v2064_v45 = vld [vmem:[#allocation2 + $0x16a] sm:$0xff]  ;;  %v2065_v26 = vld [vmem:[#allocation2 + $0x172] sm:$0xff] }
 0x2b4   : > { %v3824_v63 = vadd.f32 %v5645_v0, %v3790_v4  ;;  %2766 = vst.msk [vmem:[#allocation4 + $0x39] sm:$0xff] %vm2326_vm3, %v2686_v24  ;;  %v3330_v57 = vmul.f32 %v5301_v52, %v3296_v48  ;;  %v2014_v60 = vadd.f32 %v5456_v59, %v5633_v7  ;;  %v1570_v46 = vadd.f32 %v5503_v21, %v5460_v11  ;;  %v5741_v24 = vpop.f32.mrf.mxu1 }
 0x2b5   : > { %v3825_v18 = vadd.f32 %v5645_v0, %v3791_v53  ;;  %v3264_v20 = vadd.f32 %v3232_v49, %v3166_v32  ;;  %v3361_v36 = vadd.f32 %v3329_v1, %v3263_v35  ;;  %v1571_v4 = vadd.f32 %v5578_v39, %v5464_v50  ;;  %v2898_v39 = vld [vmem:[#allocation4 + $0x31] sm:$0xff]  ;;  %v5753_v50 = vld [vmem:[%s7102_s2] ss:$0 sm:$0xff] }
 0x2b6   : > { %v3856_v52 = vmax.f32 %v3824_v63, 0.0  ;;  %v2236_v48 = vadd.f32 %v5427_v3, %v2014_v60  ;;  %v1793_v59 = vadd.f32 %v5550_v2, %v1570_v46  ;;  %v1639_v11 = vpack.c.bf16 %v1621_v55, %v1620_v12 }
 0x2b7   : > { %v3857_v21 = vmax.f32 %v3825_v18, 0.0  ;;  %v3362_v7 = vadd.f32 %v3330_v57, %v3264_v20  ;;  %3430 = vst.msk [vmem:[#allocation5 + $0x40] sm:$0xff] %vm2326_vm3, %v3361_v36  ;;  %v1861_v56 = vpack.c.bf16 %v1843_v23, %v1842_v22  ;;  %v2083_v53 = vpack.c.bf16 %v2065_v26, %v2064_v45  ;;  %v5746_v32 = vpop.f32.mrf.mxu0  ;;  %v7212_v36 = vld [vmem:[#allocation20_spill] sm:$0xff] }
 0x2b8   : > { %3888 = vst.msk [vmem:[%s5681_s26 + $0x10] sm:$0xff] %vm2326_vm3, %v3856_v52  ;;  %v2270_v3 = vadd.f32 %v5753_v50, %v2236_v48  ;;  %v2015_v2 = vadd.f32 %v5552_v47, %v1793_v59  ;;  %4097 = vmatmul.msk.bf16.gmra.mxu2 %vm172_vm1, %v1639_v11  ;;  %v1794_v35 = vadd.f32 %v5615_v28, %v1571_v4  ;;  %v7213_v4 = vld [vmem:[#allocation19_spill] sm:$0xff] }
 0x2b9   : > { %3889 = vst.msk [vmem:[%s5681_s26 + $0x18] sm:$0xff] %vm2326_vm3, %v3857_v21  ;;  %v5762_v22 = vadd.f32 %v5409_v6, %v2460_v58  ;;  %v2866_v49 = vadd.f32 %v5557_v10, %v2834_v27  ;;  %4114 = vmatmul.msk.bf16.gmra.mxu3 %vm172_vm1, %v1861_v56  ;;  %4131 = vmatmul.msk.bf16.gmra.mxu0 %vm172_vm1, %v2083_v53  ;;  %v7210_v58 = vld [vmem:[#allocation16_spill] sm:$0xff]  ;;  %v1736_v46 = vpop.f32.mrf.mxu2 }
 0x2ba   : > { %v1572_v1 = vadd.f32 %v5635_v61, %v5468_v44  ;;  %v3529_v47 = vadd.f32 %v5475_v16, %v3497_v29  ;;  %3431 = vst.msk [vmem:[#allocation5 + $0x48] sm:$0xff] %vm2326_vm3, %v3362_v7  ;;  %v2302_v12 = vmax.f32 %v2270_v3, 0.0  ;;  %v2237_v28 = vadd.f32 %v5517_v25, %v2015_v2  ;;  %4081 = vmatmul.msk.bf16.gmra.mxu1 %vm172_vm1, %v2083_v53  ;;  %v7211_v61 = vld [vmem:[#allocation17_spill] sm:$0xff]  ;;  %v1958_v23 = vpop.f32.mrf.mxu3 }
 0x2bb   : > { %v2016_v55 = vadd.f32 %v5617_v31, %v1794_v35  ;;  %v3595_v27 = vmul.f32 %v7210_v58, %v5657_v37  ;;  %v2932_v56 = vmul.f32 %v5571_v54, %v2898_v39  ;;  %v2801_v63 = vld [vmem:[#allocation4 + $0x38] sm:$0xff]  ;;  %v1573_v29 = vadd.f32 %v5692_v19, %v7211_v61 }
 0x2bc   : > { %v2899_v57 = vld [vmem:[#allocation4 + $0x39] sm:$0xff]  ;;  %v1795_v44 = vadd.f32 %v5674_v5, %v1572_v1  ;;  %v3530_v25 = vadd.f32 %v5475_v16, %v5717_v9  ;;  %v2835_v31 = vmul.f32 %v5540_v43, %v2801_v63  ;;  %2391 = vst.msk [vmem:[#allocation3 + $0x79] sm:$0xff] %vm2326_vm3, %v2302_v12  ;;  %v2271_v26 = vadd.f32 %v5753_v50, %v2237_v28  ;;  %v5797_v2 = vpop.f32.mrf.mxu1  ;;  %v1623_v28 = vld [vmem:[#allocation2 + $0x188] sm:$0xff] }
 0x2bd   : > { %v2996_v60 = vld [vmem:[#allocation4 + $0x32] sm:$0xff]  ;;  %v2964_v18 = vadd.f32 %v2932_v56, %v2866_v49  ;;  %v2997_v20 = vld [vmem:[#allocation4 + $0x3a] sm:$0xff]  ;;  %v2238_v5 = vadd.f32 %v7212_v36, %v2016_v55  ;;  %v1796_v19 = vadd.f32 %v1734_v51, %v1573_v29  ;;  %v3596_v48 = vmul.f32 %v7210_v58, %v5672_v38  ;;  %v7215_v55 = vld [vmem:[#allocation15_spill] sm:$0xff] }
 0x2be   : > { %v3030_v45 = vmul.f32 %v5576_v17, %v2996_v60  ;;  %v2017_v52 = vadd.f32 %v7213_v4, %v1795_v44  ;;  %v2867_v9 = vadd.f32 %v5557_v10, %v2835_v31  ;;  %v2933_v59 = vmul.f32 %v5571_v54, %v2899_v57  ;;  %v5792_v11 = vld [vmem:[#allocation5 + $0x40] sm:$0xff]  ;;  %v1845_v44 = vld [vmem:[#allocation2 + $0x189] sm:$0xff] }
 0x2bf   : > { %v2303_v21 = vmax.f32 %v2271_v26, 0.0  ;;  %v3627_v7 = vadd.f32 %v3595_v27, %v3529_v47  ;;  %v3694_v39 = vmul.f32 %v5585_v30, %v5792_v11  ;;  %v2272_v3 = vadd.f32 %v5753_v50, %v2238_v5  ;;  %v7214_v49 = vld [vmem:[#allocation18_spill] sm:$0xff]  ;;  %v5809_v29 = vpop.f32.mrf.mxu0 }
 0x2c0   : > { %v3062_v53 = vadd.f32 %v3030_v45, %v2964_v18  ;;  %v2965_v51 = vadd.f32 %v2933_v59, %v2867_v9  ;;  %v3031_v35 = vmul.f32 %v5576_v17, %v2997_v20  ;;  %v2239_v1 = vadd.f32 %v7214_v49, %v2017_v52  ;;  %v1622_v12 = vld [vmem:[#allocation2 + $0x180] sm:$0xff] }
 0x2c1   : > { %2392 = vst.msk [vmem:[#allocation3 + $0x81] sm:$0xff] %vm2326_vm3, %v2303_v21  ;;  %v1574_v47 = vadd.f32 %v5741_v24, %v7215_v55  ;;  %v2588_v27 = vadd.f32 %v5705_v33, %v5686_v15  ;;  %v5806_v56 = vld [vmem:[#allocation5 + $0x48] sm:$0xff]  ;;  %v3726_v63 = vadd.f32 %v3694_v39, %v3627_v7  ;;  %v2304_v57 = vmax.f32 %v2272_v3, 0.0  ;;  %v5832_v59 = vpop.f32.mrf.mxu2  ;;  %v7218_v55 = vld [vmem:[#allocation21_spill] sm:$0xff] }
 0x2c2   : > { %v1844_v60 = vld [vmem:[#allocation2 + $0x181] sm:$0xff]  ;;  %v2018_v61 = vadd.f32 %v5729_v8, %v1796_v19  ;;  %v3628_v31 = vadd.f32 %v3596_v48, %v3530_v25  ;;  %v3063_v45 = vadd.f32 %v3031_v35, %v2965_v51  ;;  %v3695_v26 = vmul.f32 %v5585_v30, %v5806_v56  ;;  %v2067_v48 = vld [vmem:[#allocation2 + $0x18a] sm:$0xff]  ;;  %v5834_v21 = vpop.f32.mrf.mxu3 }
 0x2c3   : > { %v1797_v18 = vadd.f32 %v1736_v46, %v1574_v47  ;;  %v5815_v24 = vmul.f32 %v5432_v40, %v5657_v37  ;;  %v5819_v15 = vmul.f32 %v5432_v40, %v5672_v38  ;;  %v3758_v33 = vadd.f32 %v3726_v63, %v3062_v53  ;;  %v5821_v20 = vld [vmem:[#allocation3 + $0x79] sm:$0xff]  ;;  %2393 = vst.msk [vmem:[#allocation3 + $0x91] sm:$0xff] %vm2326_vm3, %v2304_v57  ;;  %v7216_v51 = vld [vmem:[#allocation14_spill] sm:$0xff] }
 0x2c4   : > { %v3101_v8 = vld [vmem:[#allocation3 + $0x78] sm:$0xff]  ;;  %v2273_v25 = vadd.f32 %v5753_v50, %v2239_v1  ;;  %v2557_v36 = vmul.f32 %v5416_v42, %v5690_v41  ;;  %v3727_v46 = vadd.f32 %v3695_v26, %v3628_v31  ;;  %v1640_v5 = vpack.c.bf16 %v1623_v28, %v1622_v12  ;;  %v7217_v1 = vld [vmem:[#allocation62_spill] sm:$0xff]  ;;  %v5867_v26 = vpop.f32.mrf.mxu1 }
 0x2c5   : > { %v1862_v4 = vpack.c.bf16 %v1845_v44, %v1844_v60  ;;  %v3792_v37 = vmul.f32 %v5629_v14, %v3758_v33  ;;  %v2655_v38 = vmul.f32 %v5442_v62, %v5821_v20  ;;  %v3135_v52 = vmul.f32 %v5263_v13, %v3101_v8  ;;  %v2066_v19 = vld [vmem:[#allocation2 + $0x182] sm:$0xff] }
 0x2c6   : > { %v2240_v9 = vadd.f32 %v5707_v34, %v2018_v61  ;;  %v3759_v7 = vadd.f32 %v3727_v46, %v3063_v45  ;;  %v2558_v53 = vmul.f32 %v5416_v42, %v5821_v20  ;;  %v2305_v39 = vmax.f32 %v2273_v25, 0.0  ;;  %v5860_v61 = vld [vmem:[%s7102_s2 + $0x9] ss:$0 sm:$0xff] }
 0x2c7   : > { %v2019_v3 = vadd.f32 %v1958_v23, %v1797_v18  ;;  %v2461_v35 = vmul.f32 %v7216_v51, %v5690_v41  ;;  %v3826_v49 = vadd.f32 %v5645_v0, %v3792_v37  ;;  %v2687_v13 = vadd.f32 %v2655_v38, %v2588_v27  ;;  %v5853_v27 = vld [vmem:[%s7102_s2 + $0xa] ss:$0 sm:$0xff]  ;;  %v5880_v38 = vld [vmem:[%s7102_s2 + $0xc] ss:$0 sm:$0xff] }
 0x2c8   : > { %v3167_v12 = vadd.f32 %v7217_v1, %v3135_v52  ;;  %v5842_v28 = vld [vmem:[#allocation3 + $0x81] sm:$0xff]  ;;  %v2589_v47 = vadd.f32 %v2557_v36, %v7218_v55  ;;  %v3793_v63 = vmul.f32 %v5629_v14, %v3759_v7  ;;  %2394 = vst.msk [vmem:[#allocation3 + $0x99] sm:$0xff] %vm2326_vm3, %v2305_v39  ;;  %v2084_v23 = vpack.c.bf16 %v2067_v48, %v2066_v19  ;;  %v5891_v19 = vpop.f32.mrf.mxu0 }
 0x2c9   : > { %v3102_v34 = vld [vmem:[#allocation3 + $0x80] sm:$0xff]  ;;  %v2656_v57 = vmul.f32 %v5442_v62, %v5842_v28  ;;  %v3858_v41 = vmax.f32 %v3826_v49, 0.0  ;;  %2767 = vst.msk [vmem:[#allocation4 + $0x49] sm:$0xff] %vm2326_vm3, %v2687_v13  ;;  %v3233_v44 = vmul.f32 %v5853_v27, %v5821_v20  ;;  %4098 = vmatmul.msk.bf16.gmra.mxu2 %vm172_vm1, %v1640_v5  ;;  %v5865_v45 = vadd.f32 %v5753_v50, %v2240_v9 }
 0x2ca   : > { %v3297_v60 = vld [vmem:[#allocation3 + $0x7a] sm:$0xff]  ;;  %v3136_v31 = vmul.f32 %v5860_v61, %v3102_v34  ;;  %v3827_v18 = vadd.f32 %v5645_v0, %v3793_v63  ;;  %v2590_v33 = vadd.f32 %v2558_v53, %v5762_v22  ;;  %v3298_v25 = vld [vmem:[#allocation3 + $0x82] sm:$0xff]  ;;  %v5871_v36 = vld [vmem:[#allocation3 + $0x91] sm:$0xff]  ;;  %4115 = vmatmul.msk.bf16.gmra.mxu3 %vm172_vm1, %v1862_v4  ;;  %v2241_v37 = vadd.f32 %v5746_v32, %v2019_v3 }
 0x2cb   : > { %v2688_v8 = vadd.f32 %v2656_v57, %v2589_v47  ;;  %v3103_v46 = vld [vmem:[#allocation3 + $0x90] sm:$0xff]  ;;  %3890 = vst.msk [vmem:[%s5681_s26 + $0x20] sm:$0xff] %vm2326_vm3, %v3858_v41  ;;  %v3265_v5 = vadd.f32 %v3233_v44, %v3167_v12  ;;  %v3234_v22 = vmul.f32 %v5853_v27, %v5842_v28  ;;  %v5888_v4 = vld [vmem:[%s7102_s2 + $0xb] ss:$0 sm:$0xff]  ;;  %v2559_v9 = vmul.f32 %v5416_v42, %v5842_v28 }
 0x2cc   : > { %v3168_v52 = vadd.f32 %v5880_v38, %v3136_v31  ;;  %v3331_v32 = vmul.f32 %v5888_v4, %v3297_v60  ;;  %v3859_v48 = vmax.f32 %v3827_v18, 0.0  ;;  %v2657_v7 = vmul.f32 %v5442_v62, %v5871_v36  ;;  %4132 = vmatmul.msk.bf16.gmra.mxu0 %vm172_vm1, %v2084_v23  ;;  %4082 = vmatmul.msk.bf16.gmra.mxu1 %vm172_vm1, %v2084_v23  ;;  %v5919_v31 = vpop.f32.mrf.mxu2  ;;  %v5921_v18 = vpop.f32.mrf.mxu3 }
 0x2cd   : > { %2768 = vst.msk [vmem:[#allocation4 + $0x51] sm:$0xff] %vm2326_vm3, %v2688_v8  ;;  %v3137_v53 = vmul.f32 %v5860_v61, %v3103_v46  ;;  %v3597_v39 = vmul.f32 %v7210_v58, %v5792_v11  ;;  %v3332_v49 = vmul.f32 %v5888_v4, %v3298_v25  ;;  %v2493_v1 = vadd.f32 %v5409_v6, %v2461_v35  ;;  %v7219_v6 = vld [vmem:[#allocation27_spill] sm:$0xff]  ;;  %v7220_v35 = vld [vmem:[#allocation25_spill] sm:$0xff] }
 0x2ce   : > { %v3266_v3 = vadd.f32 %v3234_v22, %v3168_v52  ;;  %v3363_v13 = vadd.f32 %v3331_v32, %v3265_v5  ;;  %3891 = vst.msk [vmem:[%s5681_s26 + $0x28] sm:$0xff] %vm2326_vm3, %v3859_v48  ;;  %v2689_v12 = vadd.f32 %v2657_v7, %v2590_v33  ;;  %v2306_v55 = vmax.f32 %v5865_v45, 0.0  ;;  %v1624_v22 = vld [vmem:[#allocation2 + $0x198] sm:$0xff]  ;;  %v1625_v32 = vld [vmem:[#allocation2 + $0x1a0] sm:$0xff]  ;;  %v5939_v48 = vpop.f32.mrf.mxu1 }
 0x2cf   : > { %v3169_v34 = vadd.f32 %v5880_v38, %v3137_v53  ;;  %v3531_v47 = vadd.f32 %v5475_v16, %v5815_v24  ;;  %v5912_v57 = vld [vmem:[#allocation3 + $0x99] sm:$0xff]  ;;  %v2275_v23 = vadd.f32 %v5753_v50, %v2241_v37  ;;  %v5917_v44 = vadd.f32 %v7220_v35, %v7219_v6 }
 0x2d0   : > { %v3364_v63 = vadd.f32 %v3332_v49, %v3266_v3  ;;  %3432 = vst.msk [vmem:[#allocation5 + $0x50] sm:$0xff] %vm2326_vm3, %v3363_v13  ;;  %v3104_v60 = vld [vmem:[#allocation3 + $0x98] sm:$0xff]  ;;  %v5925_v24 = vadd.f32 %v5475_v16, %v5819_v15  ;;  %v2591_v33 = vadd.f32 %v2559_v9, %v2493_v1  ;;  %v3235_v8 = vmul.f32 %v5853_v27, %v5871_v36 }
 0x2d1   : > { %v3299_v41 = vld [vmem:[#allocation3 + $0x92] sm:$0xff]  ;;  %2769 = vst.msk [vmem:[#allocation4 + $0x61] sm:$0xff] %vm2326_vm3, %v2689_v12  ;;  %v2658_v25 = vmul.f32 %v5442_v62, %v5912_v57  ;;  %v3501_v46 = vmul.f32 %v5432_v40, %v5792_v11  ;;  %v5934_v37 = vadd.f32 %v3597_v39, %v3531_v47  ;;  %v3138_v15 = vmul.f32 %v5860_v61, %v3104_v60  ;;  %v3300_v53 = vld [vmem:[#allocation3 + $0x9a] sm:$0xff]  ;;  %v1846_v39 = vld [vmem:[#allocation2 + $0x199] sm:$0xff] }
 0x2d2   : > { %v2802_v45 = vld [vmem:[#allocation4 + $0x48] sm:$0xff]  ;;  %3433 = vst.msk [vmem:[#allocation5 + $0x58] sm:$0xff] %vm2326_vm3, %v3364_v63  ;;  %v3502_v9 = vmul.f32 %v5432_v40, %v5806_v56  ;;  %v3267_v62 = vadd.f32 %v3235_v8, %v3169_v34  ;;  %v3333_v11 = vmul.f32 %v5888_v4, %v3299_v41  ;;  %v3236_v63 = vmul.f32 %v5853_v27, %v5912_v57  ;;  %v5949_v34 = vpop.f32.mrf.mxu0 }
 0x2d3   : > { %v2836_v5 = vmul.f32 %v5540_v43, %v2802_v45  ;;  %v2900_v52 = vld [vmem:[#allocation4 + $0x49] sm:$0xff]  ;;  %v2690_v7 = vadd.f32 %v2658_v25, %v2591_v33  ;;  %2395 = vst.msk [vmem:[#allocation3 + $0xa9] sm:$0xff] %vm2326_vm3, %v2306_v55  ;;  %v1847_v3 = vld [vmem:[#allocation2 + $0x1a1] sm:$0xff]  ;;  %v3170_v47 = vadd.f32 %v5880_v38, %v3138_v15  ;;  %v2307_v40 = vmax.f32 %v2275_v23, 0.0 }
 0x2d4   : > { %v2803_v13 = vld [vmem:[#allocation4 + $0x50] sm:$0xff]  ;;  %v2934_v60 = vmul.f32 %v5571_v54, %v2900_v52  ;;  %v3365_v35 = vadd.f32 %v3333_v11, %v3267_v62  ;;  %v2068_v45 = vld [vmem:[#allocation2 + $0x19a] sm:$0xff]  ;;  %v2069_v33 = vld [vmem:[#allocation2 + $0x1a2] sm:$0xff]  ;;  %v3598_v8 = vmul.f32 %v7210_v58, %v5806_v56  ;;  %v2462_v23 = vmul.f32 %v7216_v51, %v5821_v20 }
 0x2d5   : > { %v2868_v49 = vadd.f32 %v5557_v10, %v2836_v5  ;;  %v2901_v1 = vld [vmem:[#allocation4 + $0x51] sm:$0xff]  ;;  %v2837_v41 = vmul.f32 %v5540_v43, %v2803_v13  ;;  %2770 = vst.msk [vmem:[#allocation4 + $0x69] sm:$0xff] %vm2326_vm3, %v2690_v7  ;;  %v3268_v25 = vadd.f32 %v3236_v63, %v3170_v47  ;;  %v1641_v5 = vpack.c.bf16 %v1625_v32, %v1624_v22  ;;  %v5969_v22 = vpop.f32.mrf.mxu2  ;;  %v5971_v32 = vpop.f32.mrf.mxu3 }
 0x2d6   : > { %v2998_v12 = vld [vmem:[#allocation4 + $0x4a] sm:$0xff]  ;;  %v2999_v55 = vld [vmem:[#allocation4 + $0x52] sm:$0xff]  ;;  %2396 = vst.msk [vmem:[#allocation3 + $0xb1] sm:$0xff] %vm2326_vm3, %v2307_v40  ;;  %v2935_v13 = vmul.f32 %v5571_v54, %v2901_v1  ;;  %v3334_v62 = vmul.f32 %v5888_v4, %v3300_v53  ;;  %v1863_v7 = vpack.c.bf16 %v1847_v3, %v1846_v39  ;;  %v2085_v11 = vpack.c.bf16 %v2069_v33, %v2068_v45  ;;  %v7222_v3 = vld [vmem:[#allocation26_spill] sm:$0xff] }
 0x2d7   : > { %v3032_v6 = vmul.f32 %v5576_v17, %v2998_v12  ;;  %v2966_v52 = vadd.f32 %v2934_v60, %v2868_v49  ;;  %v2869_v15 = vadd.f32 %v5557_v10, %v2837_v41  ;;  %v5962_v12 = vld [vmem:[#allocation5 + $0x50] sm:$0xff]  ;;  %3434 = vst.msk [vmem:[#allocation5 + $0x60] sm:$0xff] %vm2326_vm3, %v3365_v35  ;;  %v3033_v56 = vmul.f32 %v5576_v17, %v2999_v55  ;;  %v7221_v39 = vld [vmem:[#allocation29_spill] sm:$0xff]  ;;  %v7223_v35 = vld [vmem:[#allocation31_spill] sm:$0xff] }
 0x2d8   : > { %v3696_v20 = vmul.f32 %v5585_v30, %v5962_v12  ;;  %v2804_v51 = vld [vmem:[#allocation4 + $0x60] sm:$0xff]  ;;  %v3366_v40 = vadd.f32 %v3334_v62, %v3268_v25  ;;  %v3533_v60 = vadd.f32 %v5475_v16, %v3501_v46  ;;  %v3630_v41 = vadd.f32 %v3598_v8, %v5925_v24  ;;  %v7224_v45 = vld [vmem:[#allocation28_spill] sm:$0xff] }
 0x2d9   : > { %v2967_v49 = vadd.f32 %v2935_v13, %v2869_v15  ;;  %v3064_v1 = vadd.f32 %v3032_v6, %v2966_v52  ;;  %v5973_v47 = vld [vmem:[#allocation5 + $0x58] sm:$0xff]  ;;  %v2838_v53 = vmul.f32 %v5540_v43, %v2804_v51  ;;  %v2902_v63 = vld [vmem:[#allocation4 + $0x61] sm:$0xff]  ;;  %4099 = vmatmul.msk.bf16.gmra.mxu2 %vm172_vm1, %v1641_v5  ;;  %v5981_v55 = vadd.f32 %v7222_v3, %v7221_v39  ;;  %v5987_v6 = vpop.f32.mrf.mxu1 }
 0x2da   : > { %v5985_v33 = vadd.f32 %v7224_v45, %v7223_v35  ;;  %v3697_v25 = vmul.f32 %v5585_v30, %v5973_v47  ;;  %v3728_v46 = vadd.f32 %v3696_v20, %v5934_v37  ;;  %3435 = vst.msk [vmem:[#allocation5 + $0x68] sm:$0xff] %vm2326_vm3, %v3366_v40  ;;  %v3534_v8 = vadd.f32 %v5475_v16, %v3502_v9  ;;  %v6004_v37 = vld [vmem:[%s7102_s2 + $0x4] ss:$0 sm:$0xff]  ;;  %v6026_v45 = vld [vmem:[#allocation3 + $0xa9] sm:$0xff] }
 0x2db   : > { %v3065_v52 = vadd.f32 %v3033_v56, %v2967_v49  ;;  %v2870_v24 = vadd.f32 %v5557_v10, %v2838_v53  ;;  %v3599_v5 = vmul.f32 %v7210_v58, %v5962_v12  ;;  %v2560_v15 = vmul.f32 %v5416_v42, %v5871_v36  ;;  %4116 = vmatmul.msk.bf16.gmra.mxu3 %vm172_vm1, %v1863_v7  ;;  %v6009_v42 = vpop.f32.mrf.mxu0  ;;  %v6014_v53 = vld [vmem:[%s7102_s2 + $0x1] ss:$0 sm:$0xff] }
 0x2dc   : > { %v2936_v13 = vmul.f32 %v5571_v54, %v2902_v63  ;;  %v2805_v62 = vld [vmem:[#allocation4 + $0x68] sm:$0xff]  ;;  %v2494_v16 = vadd.f32 %v6004_v37, %v2462_v23  ;;  %v3729_v9 = vadd.f32 %v3697_v25, %v3630_v41  ;;  %v3760_v20 = vadd.f32 %v3728_v46, %v3064_v1  ;;  %4133 = vmatmul.msk.bf16.gmra.mxu0 %vm172_vm1, %v2085_v11  ;;  %v3105_v25 = vld [vmem:[#allocation3 + $0xa8] sm:$0xff] }
 0x2dd   : > { %v2903_v56 = vld [vmem:[#allocation4 + $0x69] sm:$0xff]  ;;  %v2839_v49 = vmul.f32 %v5540_v43, %v2805_v62  ;;  %v2463_v7 = vmul.f32 %v6014_v53, %v5842_v28  ;;  %v3600_v63 = vmul.f32 %v7210_v58, %v5973_v47  ;;  %v3631_v28 = vadd.f32 %v3599_v5, %v3533_v60 }
 0x2de   : > { %v3000_v51 = vld [vmem:[#allocation4 + $0x62] sm:$0xff]  ;;  %v2968_v23 = vadd.f32 %v2936_v13, %v2870_v24  ;;  %v3761_v41 = vadd.f32 %v3729_v9, %v3065_v52  ;;  %v3794_v11 = vmul.f32 %v5629_v14, %v3760_v20  ;;  %v2937_v3 = vmul.f32 %v5571_v54, %v2903_v56  ;;  %v3001_v35 = vld [vmem:[#allocation4 + $0x6a] sm:$0xff]  ;;  %v6034_v9 = vpop.f32.mrf.mxu2  ;;  %v6036_v56 = vpop.f32.mrf.mxu3 }
 0x2df   : > { %v3034_v1 = vmul.f32 %v5576_v17, %v3000_v51  ;;  %v6021_v40 = vld [vmem:[#allocation5 + $0x60] sm:$0xff]  ;;  %v2871_v39 = vadd.f32 %v5557_v10, %v2839_v49  ;;  %v2592_v46 = vadd.f32 %v2560_v15, %v2494_v16  ;;  %v1575_v51 = vadd.f32 %v5797_v2, %v5917_v44 }
 0x2e0   : > { %v3698_v58 = vmul.f32 %v5585_v30, %v6021_v40  ;;  %v3795_v24 = vmul.f32 %v5629_v14, %v3761_v41  ;;  %v3828_v52 = vadd.f32 %v5645_v0, %v3794_v11  ;;  %v3035_v20 = vmul.f32 %v5576_v17, %v3001_v35  ;;  %v6044_v15 = vld [vmem:[%s7102_s2 + $0x3] ss:$0 sm:$0xff]  ;;  %v6053_v17 = vld [vmem:[%s7102_s2 + $0x2] ss:$0 sm:$0xff] }
 0x2e1   : > { %v3066_v62 = vadd.f32 %v3034_v1, %v2968_v23  ;;  %v2969_v13 = vadd.f32 %v2937_v3, %v2871_v39  ;;  %v6039_v60 = vld [vmem:[#allocation5 + $0x68] sm:$0xff]  ;;  %v2659_v16 = vmul.f32 %v6044_v15, %v6026_v45  ;;  %v3139_v2 = vmul.f32 %v5860_v61, %v3105_v25  ;;  %7225 = vst [vmem:[#allocation22_spill] sm:$0xff] %v6053_v17  ;;  %v1526_v41 = vpop.f32.mrf.mxu1 }
 0x2e2   : > { %v3730_v5 = vadd.f32 %v3698_v58, %v3631_v28  ;;  %v3632_v44 = vadd.f32 %v3600_v63, %v3534_v8  ;;  %v3829_v49 = vadd.f32 %v5645_v0, %v3795_v24  ;;  %v3860_v23 = vmax.f32 %v3828_v52, 0.0  ;;  %v6059_v8 = vld [vmem:[#allocation3 + $0xb1] sm:$0xff]  ;;  %v7226_v24 = vld [vmem:[#allocation33_spill] sm:$0xff] }
 0x2e3   : > { %v2561_v1 = vmul.f32 %v6053_v17, %v5912_v57  ;;  %v3067_v11 = vadd.f32 %v3035_v20, %v2969_v13  ;;  %v3699_v39 = vmul.f32 %v5585_v30, %v6039_v60  ;;  %v2691_v35 = vadd.f32 %v2659_v16, %v2592_v46  ;;  %v3106_v63 = vld [vmem:[#allocation3 + $0xb0] sm:$0xff] }
 0x2e4   : > { %v3762_v3 = vadd.f32 %v3730_v5, %v3066_v62  ;;  %v2495_v25 = vadd.f32 %v6004_v37, %v2463_v7  ;;  %v3861_v28 = vmax.f32 %v3829_v49, 0.0  ;;  %3892 = vst.msk [vmem:[%s5681_s26 + $0x30] sm:$0xff] %vm2326_vm3, %v3860_v23  ;;  %v3171_v58 = vadd.f32 %v5880_v38, %v3139_v2  ;;  %v7227_v52 = vld [vmem:[#allocation30_spill] sm:$0xff]  ;;  %v7229_v49 = vld [vmem:[#allocation32_spill] sm:$0xff] }
 0x2e5   : > { %v1356_v17 = vadd.f32 %v7227_v52, %v7226_v24  ;;  %v3731_v13 = vadd.f32 %v3699_v39, %v3632_v44  ;;  %2771 = vst.msk [vmem:[#allocation4 + $0x79] sm:$0xff] %vm2326_vm3, %v2691_v35  ;;  %v3237_v30 = vmul.f32 %v5853_v27, %v6026_v45  ;;  %v3301_v46 = vld [vmem:[#allocation3 + $0xaa] sm:$0xff]  ;;  %v1798_v62 = vadd.f32 %v5832_v59, %v1575_v51  ;;  %v3302_v2 = vld [vmem:[#allocation3 + $0xb2] sm:$0xff]  ;;  %v6079_v39 = vpop.f32.mrf.mxu0 }
 0x2e6   : > { %v3796_v20 = vmul.f32 %v5629_v14, %v3762_v3  ;;  %3893 = vst.msk [vmem:[%s5681_s26 + $0x38] sm:$0xff] %vm2326_vm3, %v3861_v28  ;;  %v2593_v7 = vadd.f32 %v2561_v1, %v2495_v25  ;;  %v2660_v5 = vmul.f32 %v6044_v15, %v6059_v8  ;;  %v3140_v16 = vmul.f32 %v5860_v61, %v3106_v63  ;;  %v7228_v44 = vld [vmem:[#allocation35_spill] sm:$0xff] }
 0x2e7   : > { %v1357_v23 = vadd.f32 %v7229_v49, %v7228_v44  ;;  %v3763_v3 = vadd.f32 %v3731_v13, %v3067_v11  ;;  %v3269_v24 = vadd.f32 %v3237_v30, %v3171_v58  ;;  %v1576_v59 = vadd.f32 %v5867_v26, %v5981_v55  ;;  %v1749_v30 = vpop.f32.mrf.mxu2 }
 0x2e8   : > { %v3830_v35 = vadd.f32 %v5645_v0, %v3796_v20  ;;  %v2692_v51 = vadd.f32 %v2660_v5, %v2593_v7  ;;  %v3172_v1 = vadd.f32 %v5880_v38, %v3140_v16  ;;  %v3238_v25 = vmul.f32 %v5853_v27, %v6059_v8  ;;  %v1971_v7 = vpop.f32.mrf.mxu3 }
 0x2e9   : > { %v3335_v63 = vmul.f32 %v5888_v4, %v3301_v46  ;;  %v3797_v28 = vmul.f32 %v5629_v14, %v3763_v3  ;;  %v3336_v11 = vmul.f32 %v5888_v4, %v3302_v2  ;;  %v2020_v13 = vadd.f32 %v5834_v21, %v1798_v62  ;;  %v6098_v46 = vld [vmem:[%s7102_s2 + $0xd] ss:$0 sm:$0xff] }
 0x2ea   : > { %v3862_v52 = vmax.f32 %v3830_v35, 0.0  ;;  %2772 = vst.msk [vmem:[#allocation4 + $0x81] sm:$0xff] %vm2326_vm3, %v2692_v51  ;;  %v3270_v58 = vadd.f32 %v3238_v25, %v3172_v1  ;;  %v1799_v55 = vadd.f32 %v5919_v31, %v1576_v59  ;;  %v1577_v20 = vadd.f32 %v5939_v48, %v5985_v33  ;;  %v6139_v25 = vld [vmem:[%s7102_s2 + $0x10] ss:$0 sm:$0xff] }
 0x2eb   : > { %v3367_v26 = vadd.f32 %v3335_v63, %v3269_v24  ;;  %v3503_v5 = vmul.f32 %v6098_v46, %v5962_v12  ;;  %v3831_v21 = vadd.f32 %v5645_v0, %v3797_v28  ;;  %v2242_v62 = vadd.f32 %v5809_v29, %v2020_v13  ;;  %v6110_v12 = vpop.f32.mrf.mxu1  ;;  %v6151_v13 = vld [vmem:[%s7102_s2 + $0x5] ss:$0 sm:$0xff] }
 0x2ec   : > { %3894 = vst.msk [vmem:[%s5681_s26 + $0x40] sm:$0xff] %vm2326_vm3, %v3862_v52  ;;  %v1578_v31 = vadd.f32 %v5987_v6, %v1356_v17  ;;  %v2806_v16 = vld [vmem:[#allocation4 + $0x78] sm:$0xff]  ;;  %v3368_v33 = vadd.f32 %v3336_v11, %v3270_v58  ;;  %v2021_v2 = vadd.f32 %v5921_v18, %v1799_v55  ;;  %v1800_v44 = vadd.f32 %v5969_v22, %v1577_v20 }
 0x2ed   : > { %v2904_v48 = vld [vmem:[#allocation4 + $0x79] sm:$0xff]  ;;  %3436 = vst.msk [vmem:[#allocation5 + $0x70] sm:$0xff] %vm2326_vm3, %v3367_v26  ;;  %v1579_v49 = vadd.f32 %v1526_v41, %v1357_v23  ;;  %v3504_v3 = vmul.f32 %v6098_v46, %v5973_v47  ;;  %v3863_v35 = vmax.f32 %v3831_v21, 0.0  ;;  %v2840_v29 = vmul.f32 %v5540_v43, %v2806_v16  ;;  %v6123_v41 = vld [vmem:[%s7102_s2 + $0xe] ss:$0 sm:$0xff]  ;;  %v6134_v1 = vpop.f32.mrf.mxu0 }
 0x2ee   : > { %v2276_v6 = vadd.f32 %v5753_v50, %v2242_v62  ;;  %3437 = vst.msk [vmem:[#allocation5 + $0x78] sm:$0xff] %vm2326_vm3, %v3368_v33  ;;  %v2243_v17 = vadd.f32 %v5891_v19, %v2021_v2  ;;  %v2022_v24 = vadd.f32 %v5971_v32, %v1800_v44  ;;  %v1801_v18 = vadd.f32 %v6034_v9, %v1578_v31  ;;  %v6170_v31 = vld [vmem:[%s7102_s2 + $0x8] ss:$0 sm:$0xff] }
 0x2ef   : > { %v1802_v22 = vadd.f32 %v1749_v30, %v1579_v49  ;;  %v3601_v47 = vmul.f32 %v6123_v41, %v6021_v40  ;;  %3895 = vst.msk [vmem:[%s5681_s26 + $0x48] sm:$0xff] %vm2326_vm3, %v3863_v35  ;;  %v2872_v43 = vadd.f32 %v5557_v10, %v2840_v29  ;;  %v2938_v23 = vmul.f32 %v5571_v54, %v2904_v48  ;;  %v6176_v48 = vld [vmem:[%s7102_s2 + $0x6] ss:$0 sm:$0xff]  ;;  %v6189_v49 = vld [vmem:[%s7102_s2 + $0xf] ss:$0 sm:$0xff] }
 0x2f0   : > { %v2308_v19 = vmax.f32 %v2276_v6, 0.0  ;;  %v2277_v32 = vadd.f32 %v5753_v50, %v2243_v17  ;;  %v2244_v9 = vadd.f32 %v5949_v34, %v2022_v24  ;;  %v2023_v59 = vadd.f32 %v6036_v56, %v1801_v18  ;;  %7231 = vst [vmem:[#allocation24_spill] sm:$0xff] %v6176_v48  ;;  %v7233_v24 = vld [vmem:[#allocation22_spill] sm:$0xff] }
 0x2f1   : > { %v2024_v51 = vadd.f32 %v1971_v7, %v1802_v22  ;;  %v3535_v63 = vadd.f32 %v6139_v25, %v3503_v5  ;;  %v3536_v10 = vadd.f32 %v6139_v25, %v3504_v3  ;;  %v2464_v54 = vmul.f32 %v6014_v53, %v5871_v36  ;;  %v2807_v28 = vld [vmem:[#allocation4 + $0x80] sm:$0xff]  ;;  %7232 = vst [vmem:[#allocation16_spill] sm:$0xff] %v6189_v49 }
 0x2f2   : > { %v2465_v34 = vmul.f32 %v6014_v53, %v5912_v57  ;;  %v2905_v56 = vld [vmem:[#allocation4 + $0x81] sm:$0xff]  ;;  %2397 = vst.msk [vmem:[#allocation3 + $0xc1] sm:$0xff] %vm2326_vm3, %v2308_v19  ;;  %v2970_v11 = vadd.f32 %v2938_v23, %v2872_v43  ;;  %v2841_v58 = vmul.f32 %v6151_v13, %v2807_v28  ;;  %v2309_v26 = vmax.f32 %v2277_v32, 0.0 }
 0x2f3   : > { %v3002_v52 = vld [vmem:[#allocation4 + $0x7a] sm:$0xff]  ;;  %v6157_v36 = vld [vmem:[%s7102_s2 + $0x7] ss:$0 sm:$0xff]  ;;  %v3602_v55 = vmul.f32 %v6123_v41, %v6039_v60  ;;  %v2278_v7 = vadd.f32 %v5753_v50, %v2244_v9  ;;  %v2245_v5 = vadd.f32 %v6009_v42, %v2023_v59  ;;  %v2246_v21 = vadd.f32 %v6079_v39, %v2024_v51  ;;  %v6180_v42 = vpop.f32.mrf.mxu2  ;;  %v6182_v39 = vpop.f32.mrf.mxu3 }
 0x2f4   : > { %7230 = vst [vmem:[#allocation23_spill] sm:$0xff] %v6157_v36  ;;  %v3036_v57 = vmul.f32 %v6157_v36, %v3002_v52  ;;  %v3003_v20 = vld [vmem:[#allocation4 + $0x82] sm:$0xff]  ;;  %v6162_v30 = vld [vmem:[#allocation5 + $0x70] sm:$0xff]  ;;  %v3633_v62 = vadd.f32 %v3601_v47, %v3535_v63  ;;  %v2873_v16 = vadd.f32 %v6170_v31, %v2841_v58  ;;  %v2939_v33 = vmul.f32 %v6176_v48, %v2905_v56  ;;  %v6199_v43 = vpop.f32.mrf.mxu1 }
 0x2f5   : > { %2398 = vst.msk [vmem:[#allocation3 + $0xc9] sm:$0xff] %vm2326_vm3, %v2309_v26  ;;  %v6184_v44 = vld [vmem:[#allocation5 + $0x78] sm:$0xff]  ;;  %v3700_v3 = vmul.f32 %v6189_v49, %v6162_v30  ;;  %v2310_v35 = vmax.f32 %v2278_v7, 0.0  ;;  %v2279_v29 = vadd.f32 %v5753_v50, %v2245_v5  ;;  %v2280_v6 = vadd.f32 %v5753_v50, %v2246_v21  ;;  %v6214_v26 = vpop.f32.mrf.mxu0 }
 0x2f6   : > { %v3068_v2 = vadd.f32 %v3036_v57, %v2970_v11  ;;  %v2496_v17 = vadd.f32 %v6004_v37, %v2464_v54  ;;  %v2562_v18 = vmul.f32 %v7233_v24, %v6026_v45  ;;  %v2971_v22 = vadd.f32 %v2939_v33, %v2873_v16  ;;  %v6224_v33 = vld [vmem:[%s7102_s2 + $0x11] ss:$0 sm:$0xff] }
 0x2f7   : > { %v3037_v47 = vmul.f32 %v6157_v36, %v3003_v20  ;;  %v3634_v23 = vadd.f32 %v3602_v55, %v3536_v10  ;;  %v3701_v19 = vmul.f32 %v6189_v49, %v6184_v44  ;;  %v3732_v32 = vadd.f32 %v3700_v3, %v3633_v62  ;;  %2399 = vst.msk [vmem:[#allocation3 + $0xd9] sm:$0xff] %vm2326_vm3, %v2310_v35 }
 0x2f8   : > { %v2311_v9 = vmax.f32 %v2279_v29, 0.0  ;;  %v2466_v50 = vmul.f32 %v6014_v53, %v6026_v45  ;;  %v2563_v59 = vmul.f32 %v7233_v24, %v6059_v8  ;;  %v2312_v28 = vmax.f32 %v2280_v6, 0.0 }
 0x2f9   : > { %v3069_v51 = vadd.f32 %v3037_v47, %v2971_v22  ;;  %v2434_v63 = vld [vmem:[#allocation3 + $0xc1] sm:$0xff]  ;;  %v2497_v56 = vadd.f32 %v6004_v37, %v2465_v34  ;;  %v3733_v10 = vadd.f32 %v3701_v19, %v3634_v23  ;;  %v3764_v52 = vadd.f32 %v3732_v32, %v3068_v2 }
 0x2fa   : > { %v3107_v54 = vld [vmem:[#allocation3 + $0xc0] sm:$0xff]  ;;  %2400 = vst.msk [vmem:[#allocation3 + $0xe1] sm:$0xff] %vm2326_vm3, %v2311_v9  ;;  %v2594_v11 = vadd.f32 %v2562_v18, %v2496_v17  ;;  %v2564_v58 = vmul.f32 %v7233_v24, %v2434_v63  ;;  %v2661_v57 = vmul.f32 %v6044_v15, %v2434_v63  ;;  %v2498_v5 = vadd.f32 %v6004_v37, %v2466_v50 }
 0x2fb   : > { %v3141_v45 = vmul.f32 %v5860_v61, %v3107_v54  ;;  %2401 = vst.msk [vmem:[#allocation3 + $0xf1] sm:$0xff] %vm2326_vm3, %v2312_v28  ;;  %v3765_v55 = vadd.f32 %v3733_v10, %v3069_v51  ;;  %v3798_v20 = vmul.f32 %v5629_v14, %v3764_v52  ;;  %v2595_v21 = vadd.f32 %v2563_v59, %v2497_v56  ;;  %v6239_v19 = vpop.f32.mrf.mxu2  ;;  %v6241_v32 = vpop.f32.mrf.mxu3 }
 0x2fc   : > { %v6217_v7 = vld [vmem:[#allocation3 + $0xc9] sm:$0xff]  ;;  %v2693_v62 = vadd.f32 %v2661_v57, %v2594_v11  ;;  %v2467_v17 = vmul.f32 %v6014_v53, %v6059_v8  ;;  %v2596_v18 = vadd.f32 %v2564_v58, %v2498_v5  ;;  %v3239_v22 = vmul.f32 %v5853_v27, %v2434_v63  ;;  %v6246_v8 = vld [vmem:[%s7102_s2 + $0x12] ss:$0 sm:$0xff]  ;;  %v6254_v52 = vpop.f32.mrf.mxu1 }
 0x2fd   : > { %v3108_v34 = vld [vmem:[#allocation3 + $0xc8] sm:$0xff]  ;;  %v3173_v16 = vadd.f32 %v5880_v38, %v3141_v45  ;;  %v3799_v2 = vmul.f32 %v6224_v33, %v3765_v55  ;;  %v3832_v3 = vadd.f32 %v5645_v0, %v3798_v20  ;;  %v2662_v14 = vmul.f32 %v6044_v15, %v6217_v7 }
 0x2fe   : > { %v3142_v35 = vmul.f32 %v5860_v61, %v3108_v34  ;;  %v3303_v29 = vld [vmem:[#allocation3 + $0xc2] sm:$0xff]  ;;  %v3304_v6 = vld [vmem:[#allocation3 + $0xca] sm:$0xff]  ;;  %2773 = vst.msk [vmem:[#allocation4 + $0x91] sm:$0xff] %vm2326_vm3, %v2693_v62  ;;  %v3240_v47 = vmul.f32 %v5853_v27, %v6217_v7  ;;  %v6237_v0 = vld [vmem:[#allocation3 + $0xd9] sm:$0xff]  ;;  %v2565_v28 = vmul.f32 %v7233_v24, %v6217_v7  ;;  %v3505_v34 = vmul.f32 %v6098_v46, %v6021_v40 }
 0x2ff   : > { %v3109_v23 = vld [vmem:[#allocation3 + $0xd8] sm:$0xff]  ;;  %v3833_v9 = vadd.f32 %v6246_v8, %v3799_v2  ;;  %v3864_v50 = vmax.f32 %v3832_v3, 0.0  ;;  %v2694_v59 = vadd.f32 %v2662_v14, %v2595_v21  ;;  %v3271_v54 = vadd.f32 %v3239_v22, %v3173_v16 }
 0x300   : > { %v3174_v51 = vadd.f32 %v5880_v38, %v3142_v35  ;;  %v3337_v56 = vmul.f32 %v5888_v4, %v3303_v29  ;;  %v3338_v10 = vmul.f32 %v5888_v4, %v3304_v6  ;;  %v2663_v57 = vmul.f32 %v6044_v15, %v6237_v0  ;;  %v6273_v29 = vpop.f32.mrf.mxu0 }
 0x301   : > { %v3865_v11 = vmax.f32 %v3833_v9, 0.0  ;;  %3896 = vst.msk [vmem:[%s5681_s26 + $0x50] sm:$0xff] %vm2326_vm3, %v3864_v50  ;;  %v3143_v45 = vmul.f32 %v5860_v61, %v3109_v23  ;;  %v6261_v55 = vld [vmem:[#allocation3 + $0xe1] sm:$0xff]  ;;  %v2499_v5 = vadd.f32 %v6004_v37, %v2467_v17  ;;  %v2468_v21 = vmul.f32 %v6014_v53, %v2434_v63  ;;  %v7235_v50 = vld [vmem:[#allocation34_spill] sm:$0xff] }
 0x302   : > { %v3272_v58 = vadd.f32 %v3240_v47, %v3174_v51  ;;  %v3110_v20 = vld [vmem:[#allocation3 + $0xe0] sm:$0xff]  ;;  %2774 = vst.msk [vmem:[#allocation4 + $0x99] sm:$0xff] %vm2326_vm3, %v2694_v59  ;;  %v3369_v62 = vadd.f32 %v3337_v56, %v3271_v54  ;;  %v2695_v3 = vadd.f32 %v2663_v57, %v2596_v18  ;;  %v3241_v35 = vmul.f32 %v5853_v27, %v6237_v0  ;;  %v6283_v23 = vld [vmem:[#allocation3 + $0xf1] sm:$0xff]  ;;  %v7234_v9 = vld [vmem:[#allocation37_spill] sm:$0xff] }
 0x303   : > { %v3305_v16 = vld [vmem:[#allocation3 + $0xda] sm:$0xff]  ;;  %3897 = vst.msk [vmem:[%s5681_s26 + $0x58] sm:$0xff] %vm2326_vm3, %v3865_v11  ;;  %v3175_v14 = vadd.f32 %v5880_v38, %v3143_v45  ;;  %v2597_v40 = vadd.f32 %v2565_v28, %v2499_v5  ;;  %v2664_v63 = vmul.f32 %v6044_v15, %v6261_v55  ;;  %v3144_v6 = vmul.f32 %v5860_v61, %v3110_v20  ;;  %v3306_v11 = vld [vmem:[#allocation3 + $0xe2] sm:$0xff]  ;;  %v6294_v57 = vpop.f32.mrf.mxu3 }
 0x304   : > { %v3370_v2 = vadd.f32 %v3338_v10, %v3272_v58  ;;  %3438 = vst.msk [vmem:[#allocation5 + $0x80] sm:$0xff] %vm2326_vm3, %v3369_v62  ;;  %v2566_v18 = vmul.f32 %v7233_v24, %v6237_v0  ;;  %v3339_v47 = vmul.f32 %v5888_v4, %v3305_v16  ;;  %v1358_v59 = vadd.f32 %v7235_v50, %v7234_v9  ;;  %v6292_v58 = vpop.f32.mrf.mxu2 }
 0x305   : > { %v2808_v17 = vld [vmem:[#allocation4 + $0x90] sm:$0xff]  ;;  %v3273_v22 = vadd.f32 %v3241_v35, %v3175_v14  ;;  %v3506_v51 = vmul.f32 %v6098_v46, %v6039_v60  ;;  %v3537_v54 = vadd.f32 %v6139_v25, %v3505_v34  ;;  %2775 = vst.msk [vmem:[#allocation4 + $0xa9] sm:$0xff] %vm2326_vm3, %v2695_v3  ;;  %v2696_v10 = vadd.f32 %v2664_v63, %v2597_v40 }
 0x306   : > { %3439 = vst.msk [vmem:[#allocation5 + $0x88] sm:$0xff] %vm2326_vm3, %v3370_v2  ;;  %v2842_v28 = vmul.f32 %v6151_v13, %v2808_v17  ;;  %v2906_v56 = vld [vmem:[#allocation4 + $0x91] sm:$0xff]  ;;  %v2500_v45 = vadd.f32 %v6004_v37, %v2468_v21  ;;  %v3176_v20 = vadd.f32 %v5880_v38, %v3144_v6  ;;  %v3242_v60 = vmul.f32 %v5853_v27, %v6261_v55  ;;  %v6308_v21 = vpop.f32.mrf.mxu1 }
 0x307   : > { %v3371_v5 = vadd.f32 %v3339_v47, %v3273_v22  ;;  %v3603_v34 = vmul.f32 %v6123_v41, %v6162_v30  ;;  %v3604_v62 = vmul.f32 %v6123_v41, %v6184_v44  ;;  %2776 = vst.msk [vmem:[#allocation4 + $0xb1] sm:$0xff] %vm2326_vm3, %v2696_v10  ;;  %v2665_v2 = vmul.f32 %v6044_v15, %v6283_v23 }
 0x308   : > { %v2874_v16 = vadd.f32 %v6170_v31, %v2842_v28  ;;  %v2940_v3 = vmul.f32 %v6176_v48, %v2906_v56  ;;  %v2598_v40 = vadd.f32 %v2566_v18, %v2500_v45  ;;  %v3274_v63 = vadd.f32 %v3242_v60, %v3176_v20 }
 0x309   : > { %v2809_v14 = vld [vmem:[#allocation4 + $0x98] sm:$0xff]  ;;  %v3340_v6 = vmul.f32 %v5888_v4, %v3306_v11  ;;  %3440 = vst.msk [vmem:[#allocation5 + $0x90] sm:$0xff] %vm2326_vm3, %v3371_v5  ;;  %v3538_v17 = vadd.f32 %v6139_v25, %v3506_v51  ;;  %v1580_v9 = vadd.f32 %v6110_v12, %v1358_v59  ;;  %v3507_v50 = vmul.f32 %v6098_v46, %v6162_v30 }
 0x30a   : > { %v2907_v27 = vld [vmem:[#allocation4 + $0x99] sm:$0xff]  ;;  %v2843_v22 = vmul.f32 %v6151_v13, %v2809_v14  ;;  %v2972_v28 = vadd.f32 %v2940_v3, %v2874_v16  ;;  %v2697_v45 = vadd.f32 %v2665_v2, %v2598_v40  ;;  %v3635_v4 = vadd.f32 %v3603_v34, %v3537_v54  ;;  %v6331_v54 = vpop.f32.mrf.mxu0 }
 0x30b   : > { %v3004_v35 = vld [vmem:[#allocation4 + $0x92] sm:$0xff]  ;;  %v3005_v56 = vld [vmem:[#allocation4 + $0x9a] sm:$0xff]  ;;  %v3372_v18 = vadd.f32 %v3340_v6, %v3274_v63  ;;  %v2941_v51 = vmul.f32 %v6176_v48, %v2907_v27  ;;  %v1803_v60 = vadd.f32 %v6180_v42, %v1580_v9  ;;  %v3636_v5 = vadd.f32 %v3604_v62, %v3538_v17  ;;  %v6340_v27 = vpop.f32.mrf.mxu3 }
 0x30c   : > { %v3038_v47 = vmul.f32 %v6157_v36, %v3004_v35  ;;  %v6319_v10 = vld [vmem:[#allocation5 + $0x80] sm:$0xff]  ;;  %v2875_v11 = vadd.f32 %v6170_v31, %v2843_v22  ;;  %v2810_v16 = vld [vmem:[#allocation4 + $0xa8] sm:$0xff]  ;;  %v3508_v34 = vmul.f32 %v6098_v46, %v6184_v44  ;;  %v3039_v42 = vmul.f32 %v6157_v36, %v3005_v56  ;;  %2777 = vst.msk [vmem:[#allocation4 + $0xc1] sm:$0xff] %vm2326_vm3, %v2697_v45  ;;  %v6338_v14 = vpop.f32.mrf.mxu2 }
 0x30d   : > { %v6323_v20 = vld [vmem:[#allocation5 + $0x88] sm:$0xff]  ;;  %v3702_v30 = vmul.f32 %v6189_v49, %v6319_v10  ;;  %3441 = vst.msk [vmem:[#allocation5 + $0x98] sm:$0xff] %vm2326_vm3, %v3372_v18  ;;  %v2844_v62 = vmul.f32 %v6151_v13, %v2810_v16  ;;  %v3539_v35 = vadd.f32 %v6139_v25, %v3507_v50  ;;  %v3605_v40 = vmul.f32 %v6123_v41, %v6319_v10 }
 0x30e   : > { %v3070_v12 = vadd.f32 %v3038_v47, %v2972_v28  ;;  %v3703_v59 = vmul.f32 %v6189_v49, %v6323_v20  ;;  %v2908_v3 = vld [vmem:[#allocation4 + $0xa9] sm:$0xff]  ;;  %v2973_v2 = vadd.f32 %v2941_v51, %v2875_v11  ;;  %v2909_v44 = vld [vmem:[#allocation4 + $0xb1] sm:$0xff]  ;;  %v1538_v45 = vpop.f32.mrf.mxu1  ;;  %v3606_v50 = vmul.f32 %v6123_v41, %v6323_v20 }
 0x30f   : > { %v3734_v63 = vadd.f32 %v3702_v30, %v3635_v4  ;;  %v2811_v17 = vld [vmem:[#allocation4 + $0xb0] sm:$0xff]  ;;  %v2876_v9 = vadd.f32 %v6170_v31, %v2844_v62  ;;  %v2942_v28 = vmul.f32 %v6176_v48, %v2908_v3  ;;  %v2943_v3 = vmul.f32 %v6176_v48, %v2909_v44 }
 0x310   : > { %v3735_v6 = vadd.f32 %v3703_v59, %v3636_v5  ;;  %v3006_v22 = vld [vmem:[#allocation4 + $0xaa] sm:$0xff]  ;;  %v3071_v47 = vadd.f32 %v3039_v42, %v2973_v2  ;;  %v2845_v56 = vmul.f32 %v6151_v13, %v2811_v17  ;;  %v3007_v51 = vld [vmem:[#allocation4 + $0xb2] sm:$0xff]  ;;  %v2025_v5 = vadd.f32 %v6182_v39, %v1803_v60 }
 0x311   : > { %v6348_v18 = vld [vmem:[#allocation5 + $0x90] sm:$0xff]  ;;  %v3766_v11 = vadd.f32 %v3734_v63, %v3070_v12  ;;  %v3040_v4 = vmul.f32 %v6157_v36, %v3006_v22  ;;  %v2974_v59 = vadd.f32 %v2942_v28, %v2876_v9  ;;  %v3540_v2 = vadd.f32 %v6139_v25, %v3508_v34 }
 0x312   : > { %v3767_v30 = vadd.f32 %v3735_v6, %v3071_v47  ;;  %v2877_v16 = vadd.f32 %v6170_v31, %v2845_v56  ;;  %v3637_v42 = vadd.f32 %v3605_v40, %v3539_v35  ;;  %v3704_v17 = vmul.f32 %v6189_v49, %v6348_v18 }
 0x313   : > { %v3800_v62 = vmul.f32 %v6224_v33, %v3766_v11  ;;  %v3041_v22 = vmul.f32 %v6157_v36, %v3007_v51  ;;  %v3072_v39 = vadd.f32 %v3040_v4, %v2974_v59  ;;  %v3638_v6 = vadd.f32 %v3606_v50, %v3540_v2  ;;  %v1983_v56 = vpop.f32.mrf.mxu3  ;;  %v7236_v51 = vld [vmem:[#allocation39_spill] sm:$0xff]  ;;  %v7237_v4 = vld [vmem:[#allocation36_spill] sm:$0xff]  ;;  %v7238_v50 = vld [vmem:[#allocation41_spill] sm:$0xff] }
 0x314   : > { %v3801_v12 = vmul.f32 %v6224_v33, %v3767_v30  ;;  %v2975_v63 = vadd.f32 %v2943_v3, %v2877_v16  ;;  %v6362_v60 = vld [vmem:[#allocation5 + $0x98] sm:$0xff]  ;;  %v2247_v44 = vadd.f32 %v6134_v1, %v2025_v5  ;;  %v3736_v9 = vadd.f32 %v3704_v17, %v3637_v42  ;;  %v1761_v28 = vpop.f32.mrf.mxu2  ;;  %v7239_v59 = vld [vmem:[#allocation38_spill] sm:$0xff]  ;;  %v7240_v3 = vld [vmem:[#allocation43_spill] sm:$0xff]  ;;  %v2205_v42 = vpop.f32.mrf.mxu0 }
 0x315   : > { %v3834_v47 = vadd.f32 %v6246_v8, %v3800_v62  ;;  %v3705_v40 = vmul.f32 %v6189_v49, %v6362_v60  ;;  %v1359_v30 = vadd.f32 %v7237_v4, %v7236_v51  ;;  %v1360_v16 = vadd.f32 %v7239_v59, %v7238_v50  ;;  %v7241_v1 = vld [vmem:[#allocation40_spill] sm:$0xff]  ;;  %v7244_v17 = vld [vmem:[#allocation6_spill] sm:$0xff]  ;;  %v7245_v36 = vld [vmem:[#allocation49_spill] sm:$0xff] }
 0x316   : > { %v3835_v34 = vadd.f32 %v6246_v8, %v3801_v12  ;;  %v3073_v35 = vadd.f32 %v3041_v22, %v2975_v63  ;;  %v1361_v5 = vadd.f32 %v7241_v1, %v7240_v3  ;;  %v3768_v12 = vadd.f32 %v3736_v9, %v3072_v39  ;;  %v7242_v63 = vld [vmem:[#allocation45_spill] sm:$0xff]  ;;  %v7243_v22 = vld [vmem:[#allocation42_spill] sm:$0xff]  ;;  %v1541_v4 = vpop.f32.mrf.mxu1  ;;  %v7247_v1 = vld [vmem:[#allocation44_spill] sm:$0xff] }
 0x317   : > { %v3866_v11 = vmax.f32 %v3834_v47, 0.0  ;;  %v3737_v62 = vadd.f32 %v3705_v40, %v3638_v6  ;;  %v1362_v49 = vadd.f32 %v7243_v22, %v7242_v63  ;;  %v693_v48 = vadd.f32 %v7245_v36, %v7244_v17  ;;  %v6384_v47 = vld [vmem:[%s7102_s2] ss:$0 sm:$0xff]  ;;  %v7249_v22 = vld [vmem:[#allocation9_spill] sm:$0xff] }
 0x318   : > { %v3867_v2 = vmax.f32 %v3835_v34, 0.0  ;;  %v2281_v51 = vadd.f32 %v6384_v47, %v2247_v44  ;;  %v1581_v34 = vadd.f32 %v6199_v43, %v1359_v30  ;;  %v1582_v39 = vadd.f32 %v6254_v52, %v1360_v16  ;;  %v3111_v9 = vld [vmem:[#allocation3 + $0xf0] sm:$0xff]  ;;  %v7246_v44 = vld [vmem:[#allocation47_spill] sm:$0xff] }
 0x319   : > { %3898 = vst.msk [vmem:[%s5681_s26 + $0x60] sm:$0xff] %vm2326_vm3, %v3866_v11  ;;  %v3769_v6 = vadd.f32 %v3737_v62, %v3073_v35  ;;  %v3802_v40 = vmul.f32 %v6224_v33, %v3768_v12  ;;  %v1583_v36 = vadd.f32 %v6308_v21, %v1361_v5  ;;  %v1584_v11 = vadd.f32 %v1538_v45, %v1362_v49 }
 0x31a   : > { %3899 = vst.msk [vmem:[%s5681_s26 + $0x68] sm:$0xff] %vm2326_vm3, %v3867_v2  ;;  %v2313_v50 = vmax.f32 %v2281_v51, 0.0  ;;  %v1804_v59 = vadd.f32 %v6239_v19, %v1581_v34  ;;  %v1805_v3 = vadd.f32 %v6292_v58, %v1582_v39  ;;  %v1363_v43 = vadd.f32 %v7247_v1, %v7246_v44 }
 0x31b   : > { %v3803_v52 = vmul.f32 %v6224_v33, %v3769_v6  ;;  %v3836_v30 = vadd.f32 %v6246_v8, %v3802_v40  ;;  %v1806_v35 = vadd.f32 %v6338_v14, %v1583_v36  ;;  %v1807_v16 = vadd.f32 %v1761_v28, %v1584_v11 }
 0x31c   : > { %v3145_v2 = vmul.f32 %v5860_v61, %v3111_v9  ;;  %2402 = vst.msk [vmem:[#allocation3 + $0xf9] sm:$0xff] %vm2326_vm3, %v2313_v50  ;;  %v2026_v49 = vadd.f32 %v6241_v32, %v1804_v59  ;;  %v2027_v19 = vadd.f32 %v6294_v57, %v1805_v3  ;;  %v1585_v58 = vadd.f32 %v1541_v4, %v1363_v43  ;;  %v1764_v12 = vpop.f32.mrf.mxu2  ;;  %v7248_v32 = vld [vmem:[#allocation8_spill] sm:$0xff]  ;;  %v7252_v3 = vld [vmem:[#allocation10_spill] sm:$0xff] }
 0x31d   : > { %v3837_v21 = vadd.f32 %v6246_v8, %v3803_v52  ;;  %v3868_v45 = vmax.f32 %v3836_v30, 0.0  ;;  %v2028_v5 = vadd.f32 %v6340_v27, %v1806_v35  ;;  %v2029_v62 = vadd.f32 %v1983_v56, %v1807_v16  ;;  %v1986_v56 = vpop.f32.mrf.mxu3  ;;  %v7251_v59 = vld [vmem:[#allocation12_spill] sm:$0xff] }
 0x31e   : > { %v2469_v14 = vmul.f32 %v6014_v53, %v6217_v7  ;;  %v2248_v61 = vadd.f32 %v6214_v26, %v2026_v49  ;;  %v2249_v28 = vadd.f32 %v6273_v29, %v2027_v19  ;;  %v1808_v63 = vadd.f32 %v1764_v12, %v1585_v58  ;;  %v7250_v29 = vld [vmem:[#allocation11_spill] sm:$0xff]  ;;  %v7253_v16 = vld [vmem:[#allocation56_spill] sm:$0xff] }
 0x31f   : > { %v698_v57 = vadd.f32 %v7249_v22, %v7248_v32  ;;  %v3869_v17 = vmax.f32 %v3837_v21, 0.0  ;;  %3900 = vst.msk [vmem:[%s5681_s26 + $0x70] sm:$0xff] %vm2326_vm3, %v3868_v45  ;;  %v2250_v51 = vadd.f32 %v6331_v54, %v2028_v5  ;;  %v2251_v27 = vadd.f32 %v2205_v42, %v2029_v62  ;;  %v2208_v42 = vpop.f32.mrf.mxu0  ;;  %v6443_v58 = vld [vmem:[%s7102_s2 + $0x9] ss:$0 sm:$0xff]  ;;  %v2812_v5 = vld [vmem:[#allocation4 + $0xc0] sm:$0xff] }
 0x320   : > { %v2567_v34 = vmul.f32 %v7233_v24, %v6261_v55  ;;  %v2282_v7 = vadd.f32 %v6384_v47, %v2248_v61  ;;  %v2283_v26 = vadd.f32 %v6384_v47, %v2249_v28  ;;  %v2030_v39 = vadd.f32 %v1986_v56, %v1808_v63  ;;  %v6457_v63 = vpop.f32.mrf.mxu1  ;;  %v7254_v32 = vld [vmem:[#allocation59_spill] sm:$0xff] }
 0x321   : > { %v922_v6 = vadd.f32 %v7250_v29, %v693_v48  ;;  %3901 = vst.msk [vmem:[%s5681_s26 + $0x78] sm:$0xff] %vm2326_vm3, %v3869_v17  ;;  %v3177_v40 = vadd.f32 %v5880_v38, %v3145_v2  ;;  %v2284_v9 = vadd.f32 %v6384_v47, %v2250_v51  ;;  %v2285_v54 = vadd.f32 %v6384_v47, %v2251_v27  ;;  %v6431_v48 = vld [vmem:[%s7102_s2 + $0xa] ss:$0 sm:$0xff] }
 0x322   : > { %v2501_v36 = vadd.f32 %v6004_v37, %v2469_v14  ;;  %v2314_v11 = vmax.f32 %v2282_v7, 0.0  ;;  %v2315_v4 = vmax.f32 %v2283_v26, 0.0  ;;  %v2252_v50 = vadd.f32 %v2208_v42, %v2030_v39  ;;  %v6452_v14 = vld [vmem:[%s7102_s2 + $0xb] ss:$0 sm:$0xff]  ;;  %v7256_v42 = vld [vmem:[#allocation57_spill] sm:$0xff] }
 0x323   : > { %v703_v44 = vadd.f32 %v7252_v3, %v7251_v59  ;;  %v3243_v38 = vmul.f32 %v6431_v48, %v6283_v23  ;;  %v6435_v1 = vld [vmem:[#allocation3 + $0xf9] sm:$0xff]  ;;  %v2316_v30 = vmax.f32 %v2284_v9, 0.0  ;;  %v2317_v35 = vmax.f32 %v2285_v54, 0.0 }
 0x324   : > { %v3112_v43 = vld [vmem:[#allocation3 + $0xf8] sm:$0xff]  ;;  %v924_v2 = vadd.f32 %v7253_v16, %v698_v57  ;;  %v2599_v49 = vadd.f32 %v2567_v34, %v2501_v36  ;;  %v2666_v19 = vmul.f32 %v6044_v15, %v6435_v1  ;;  %2403 = vst.msk [vmem:[#allocation3 + $0x109] sm:$0xff] %vm2326_vm3, %v2314_v11  ;;  %v2470_v45 = vmul.f32 %v6014_v53, %v6237_v0 }
 0x325   : > { %v3307_v52 = vld [vmem:[#allocation3 + $0xf2] sm:$0xff]  ;;  %v3146_v21 = vmul.f32 %v6443_v58, %v3112_v43  ;;  %v3275_v62 = vadd.f32 %v3243_v38, %v3177_v40  ;;  %v3308_v12 = vld [vmem:[#allocation3 + $0xfa] sm:$0xff]  ;;  %2404 = vst.msk [vmem:[#allocation3 + $0x111] sm:$0xff] %vm2326_vm3, %v2315_v4  ;;  %v2286_v28 = vadd.f32 %v6384_v47, %v2252_v50  ;;  %v926_v22 = vadd.f32 %v7254_v32, %v703_v44  ;;  %v7255_v40 = vld [vmem:[#allocation53_spill] sm:$0xff] }
 0x326   : > { %v3341_v61 = vmul.f32 %v6452_v14, %v3307_v52  ;;  %v2698_v57 = vadd.f32 %v2666_v19, %v2599_v49  ;;  %v6463_v0 = vld [vmem:[%s7102_s2 + $0xc] ss:$0 sm:$0xff]  ;;  %v3244_v51 = vmul.f32 %v6431_v48, %v6435_v1  ;;  %2405 = vst.msk [vmem:[#allocation3 + $0x121] sm:$0xff] %vm2326_vm3, %v2316_v30  ;;  %v2471_v27 = vmul.f32 %v6014_v53, %v6261_v55  ;;  %v2910_v38 = vld [vmem:[#allocation4 + $0xc1] sm:$0xff]  ;;  %v7261_v32 = vld [vmem:[#allocation24_spill] sm:$0xff] }
 0x327   : > { %v3178_v17 = vadd.f32 %v6463_v0, %v3146_v21  ;;  %v2568_v56 = vmul.f32 %v7233_v24, %v6283_v23  ;;  %2406 = vst.msk [vmem:[#allocation3 + $0x129] sm:$0xff] %vm2326_vm3, %v2317_v35  ;;  %v2318_v7 = vmax.f32 %v2286_v28, 0.0  ;;  %v2846_v26 = vmul.f32 %v6151_v13, %v2812_v5  ;;  %v7259_v30 = vld [vmem:[#allocation50_spill] sm:$0xff] }
 0x328   : > { %v3373_v34 = vadd.f32 %v3341_v61, %v3275_v62  ;;  %2778 = vst.msk [vmem:[#allocation4 + $0xc9] sm:$0xff] %vm2326_vm3, %v2698_v57  ;;  %v3342_v29 = vmul.f32 %v6452_v14, %v3308_v12  ;;  %v6478_v9 = vadd.f32 %v7255_v40, %v922_v6  ;;  %v2502_v54 = vadd.f32 %v6004_v37, %v2470_v45  ;;  %v7257_v6 = vld [vmem:[#allocation61_spill] sm:$0xff]  ;;  %v7260_v35 = vld [vmem:[#allocation46_spill] sm:$0xff] }
 0x329   : > { %v3276_v39 = vadd.f32 %v3244_v51, %v3178_v17  ;;  %v2569_v55 = vmul.f32 %v7233_v24, %v6435_v1  ;;  %v6485_v36 = vadd.f32 %v7256_v42, %v924_v2  ;;  %v3509_v11 = vmul.f32 %v6098_v46, %v6319_v10  ;;  %2407 = vst.msk [vmem:[#allocation3 + $0x139] sm:$0xff] %vm2326_vm3, %v2318_v7  ;;  %v6520_v17 = vpop.f32.mrf.mxu0 }
 0x32a   : > { %3442 = vst.msk [vmem:[#allocation5 + $0xa0] sm:$0xff] %vm2326_vm3, %v3373_v34  ;;  %v3510_v4 = vmul.f32 %v6098_v46, %v6323_v20  ;;  %v6493_v59 = vadd.f32 %v7257_v6, %v926_v22  ;;  %v2503_v3 = vadd.f32 %v6004_v37, %v2471_v27  ;;  %v2600_v44 = vadd.f32 %v2568_v56, %v2502_v54 }
 0x32b   : > { %v3374_v50 = vadd.f32 %v3342_v29, %v3276_v39  ;;  %v6496_v43 = vld [vmem:[#allocation3 + $0x109] sm:$0xff]  ;;  %v6500_v16 = vadd.f32 %v7260_v35, %v7259_v30  ;;  %v3607_v10 = vmul.f32 %v6123_v41, %v6348_v18  ;;  %v2878_v20 = vadd.f32 %v6170_v31, %v2846_v26  ;;  %v6526_v39 = vpop.f32.mrf.mxu1  ;;  %v6540_v30 = vpop.f32.mrf.mxu3 }
 0x32c   : > { %7258 = vst [vmem:[#allocation17_spill] sm:$0xff] %v6493_v59  ;;  %v3113_v52 = vld [vmem:[#allocation3 + $0x108] sm:$0xff]  ;;  %v2667_v2 = vmul.f32 %v6044_v15, %v6496_v43  ;;  %v6509_v19 = vld [vmem:[#allocation3 + $0x111] sm:$0xff]  ;;  %v3608_v45 = vmul.f32 %v6123_v41, %v6362_v60  ;;  %v2472_v5 = vmul.f32 %v6014_v53, %v6283_v23  ;;  %v2601_v62 = vadd.f32 %v2569_v55, %v2503_v3 }
 0x32d   : > { %3443 = vst.msk [vmem:[#allocation5 + $0xa8] sm:$0xff] %vm2326_vm3, %v3374_v50  ;;  %v3147_v49 = vmul.f32 %v6443_v58, %v3113_v52  ;;  %v3114_v21 = vld [vmem:[#allocation3 + $0x110] sm:$0xff]  ;;  %v2668_v12 = vmul.f32 %v6044_v15, %v6509_v19  ;;  %v3541_v61 = vadd.f32 %v6139_v25, %v3509_v11  ;;  %v3542_v28 = vadd.f32 %v6139_v25, %v3510_v4  ;;  %v7262_v55 = vld [vmem:[#allocation23_spill] sm:$0xff]  ;;  %v1766_v4 = vpop.f32.mrf.mxu2 }
 0x32e   : > { %v2944_v22 = vmul.f32 %v7261_v32, %v2910_v38  ;;  %v2699_v57 = vadd.f32 %v2667_v2, %v2600_v44  ;;  %v3511_v51 = vmul.f32 %v6098_v46, %v6348_v18  ;;  %v3148_v26 = vmul.f32 %v6443_v58, %v3114_v21  ;;  %v3309_v18 = vld [vmem:[#allocation3 + $0x10a] sm:$0xff]  ;;  %v7263_v44 = vld [vmem:[#allocation16_spill] sm:$0xff] }
 0x32f   : > { %v2813_v27 = vld [vmem:[#allocation4 + $0xc8] sm:$0xff]  ;;  %v3179_v23 = vadd.f32 %v6463_v0, %v3147_v49  ;;  %v2700_v7 = vadd.f32 %v2668_v12, %v2601_v62  ;;  %v3639_v29 = vadd.f32 %v3607_v10, %v3541_v61  ;;  %v3640_v50 = vadd.f32 %v3608_v45, %v3542_v28 }
 0x330   : > { %v2911_v56 = vld [vmem:[#allocation4 + $0xc9] sm:$0xff]  ;;  %v2976_v40 = vadd.f32 %v2944_v22, %v2878_v20  ;;  %v2847_v54 = vmul.f32 %v6151_v13, %v2813_v27  ;;  %2779 = vst.msk [vmem:[#allocation4 + $0xd9] sm:$0xff] %vm2326_vm3, %v2699_v57  ;;  %v2473_v6 = vmul.f32 %v6014_v53, %v6435_v1  ;;  %v3245_v52 = vmul.f32 %v6431_v48, %v6496_v43 }
 0x331   : > { %v3008_v34 = vld [vmem:[#allocation4 + $0xc2] sm:$0xff]  ;;  %v3009_v3 = vld [vmem:[#allocation4 + $0xca] sm:$0xff]  ;;  %2780 = vst.msk [vmem:[#allocation4 + $0xe1] sm:$0xff] %vm2326_vm3, %v2700_v7  ;;  %v2945_v10 = vmul.f32 %v7261_v32, %v2911_v56  ;;  %v3180_v2 = vadd.f32 %v6463_v0, %v3148_v26  ;;  %v3246_v45 = vmul.f32 %v6431_v48, %v6509_v19  ;;  %v3343_v62 = vmul.f32 %v6452_v14, %v3309_v18 }
 0x332   : > { %v3042_v42 = vmul.f32 %v7262_v55, %v3008_v34  ;;  %v6530_v11 = vld [vmem:[#allocation5 + $0xa0] sm:$0xff]  ;;  %v2879_v35 = vadd.f32 %v6170_v31, %v2847_v54  ;;  %v3277_v21 = vadd.f32 %v3245_v52, %v3179_v23  ;;  %v3043_v61 = vmul.f32 %v7262_v55, %v3009_v3  ;;  %v6556_v23 = vld [vmem:[#allocation3 + $0x121] sm:$0xff] }
 0x333   : > { %v3706_v38 = vmul.f32 %v7263_v44, %v6530_v11  ;;  %v3310_v49 = vld [vmem:[#allocation3 + $0x112] sm:$0xff]  ;;  %v2570_v22 = vmul.f32 %v7233_v24, %v6496_v43  ;;  %v3278_v27 = vadd.f32 %v3246_v45, %v3180_v2  ;;  %v3543_v7 = vadd.f32 %v6139_v25, %v3511_v51 }
 0x334   : > { %v3074_v20 = vadd.f32 %v3042_v42, %v2976_v40  ;;  %v6545_v53 = vld [vmem:[#allocation5 + $0xa8] sm:$0xff]  ;;  %v2977_v12 = vadd.f32 %v2945_v10, %v2879_v35  ;;  %v3344_v56 = vmul.f32 %v6452_v14, %v3310_v49  ;;  %v3375_v34 = vadd.f32 %v3343_v62, %v3277_v21  ;;  %v6583_v62 = vld [vmem:[#allocation3 + $0x129] sm:$0xff] }
 0x335   : > { %v3738_v1 = vadd.f32 %v3706_v38, %v3639_v29  ;;  %v3707_v28 = vmul.f32 %v7263_v44, %v6545_v53  ;;  %v2504_v26 = vadd.f32 %v6004_v37, %v2472_v5  ;;  %v3512_v54 = vmul.f32 %v6098_v46, %v6362_v60 }
 0x336   : > { %v3075_v29 = vadd.f32 %v3043_v61, %v2977_v12  ;;  %v3376_v3 = vadd.f32 %v3344_v56, %v3278_v27  ;;  %3444 = vst.msk [vmem:[#allocation5 + $0xb0] sm:$0xff] %vm2326_vm3, %v3375_v34  ;;  %v1586_v38 = vadd.f32 %v6457_v63, %v6500_v16  ;;  %v2505_v52 = vadd.f32 %v6004_v37, %v2473_v6  ;;  %v6570_v46 = vpop.f32.mrf.mxu0  ;;  %v3115_v37 = vld [vmem:[#allocation3 + $0x120] sm:$0xff]  ;;  %v6575_v16 = vpop.f32.mrf.mxu1 }
 0x337   : > { %v3770_v57 = vadd.f32 %v3738_v1, %v3074_v20  ;;  %v3739_v40 = vadd.f32 %v3707_v28, %v3640_v50  ;;  %v2814_v18 = vld [vmem:[#allocation4 + $0xd8] sm:$0xff]  ;;  %v2669_v50 = vmul.f32 %v6044_v15, %v6556_v23  ;;  %v2602_v20 = vadd.f32 %v2570_v22, %v2504_v26 }
 0x338   : > { %v2848_v51 = vmul.f32 %v6151_v13, %v2814_v18  ;;  %v2815_v5 = vld [vmem:[#allocation4 + $0xe0] sm:$0xff]  ;;  %3445 = vst.msk [vmem:[#allocation5 + $0xb8] sm:$0xff] %vm2326_vm3, %v3376_v3  ;;  %v1809_v63 = vadd.f32 %v1766_v4, %v1586_v38  ;;  %v3609_v6 = vmul.f32 %v6123_v41, %v6530_v11  ;;  %v2571_v45 = vmul.f32 %v7233_v24, %v6509_v19 }
 0x339   : > { %v3804_v42 = vmul.f32 %v6224_v33, %v3770_v57  ;;  %v3771_v35 = vadd.f32 %v3739_v40, %v3075_v29  ;;  %v2913_v10 = vld [vmem:[#allocation4 + $0xe1] sm:$0xff]  ;;  %v2912_v2 = vld [vmem:[#allocation4 + $0xd9] sm:$0xff]  ;;  %v2849_v49 = vmul.f32 %v6151_v13, %v2815_v5  ;;  %v2701_v22 = vadd.f32 %v2669_v50, %v2602_v20 }
 0x33a   : > { %v3010_v1 = vld [vmem:[#allocation4 + $0xda] sm:$0xff]  ;;  %v2880_v21 = vadd.f32 %v6170_v31, %v2848_v51  ;;  %v2947_v28 = vmul.f32 %v7261_v32, %v2913_v10  ;;  %v2946_v34 = vmul.f32 %v7261_v32, %v2912_v2  ;;  %v3011_v26 = vld [vmem:[#allocation4 + $0xe2] sm:$0xff]  ;;  %v3149_v29 = vmul.f32 %v6443_v58, %v3115_v37 }
 0x33b   : > { %v3838_v60 = vadd.f32 %v6246_v8, %v3804_v42  ;;  %v3805_v15 = vmul.f32 %v6224_v33, %v3771_v35  ;;  %v6585_v12 = vpop.f32.mrf.mxu2  ;;  %v2881_v4 = vadd.f32 %v6170_v31, %v2849_v49  ;;  %v3116_v57 = vld [vmem:[#allocation3 + $0x128] sm:$0xff]  ;;  %v3044_v24 = vmul.f32 %v7262_v55, %v3010_v1  ;;  %v6603_v3 = vld [vmem:[%s7102_s2 + $0x3] ss:$0 sm:$0xff]  ;;  %2781 = vst.msk [vmem:[#allocation4 + $0xf1] sm:$0xff] %vm2326_vm3, %v2701_v22 }
 0x33c   : > { %v6589_v27 = vpop.f32.mrf.mxu3  ;;  %v3544_v40 = vadd.f32 %v6139_v25, %v3512_v54  ;;  %v3610_v42 = vmul.f32 %v6123_v41, %v6545_v53  ;;  %v2670_v38 = vmul.f32 %v6603_v3, %v6583_v62  ;;  %v2978_v51 = vadd.f32 %v2946_v34, %v2880_v21  ;;  %v6614_v54 = vld [vmem:[%s7102_s2 + $0x1] ss:$0 sm:$0xff] }
 0x33d   : > { %v3870_v61 = vmax.f32 %v3838_v60, 0.0  ;;  %v3839_v56 = vadd.f32 %v6246_v8, %v3805_v15  ;;  %v2979_v18 = vadd.f32 %v2947_v28, %v2881_v4  ;;  %v2603_v5 = vadd.f32 %v2571_v45, %v2505_v52  ;;  %v6607_v10 = vld [vmem:[#allocation5 + $0xb0] sm:$0xff]  ;;  %v3312_v22 = vld [vmem:[#allocation3 + $0x12a] sm:$0xff] }
 0x33e   : > { %v3150_v25 = vmul.f32 %v6443_v58, %v3116_v57  ;;  %v2474_v50 = vmul.f32 %v6614_v54, %v6496_v43  ;;  %v3045_v60 = vmul.f32 %v7262_v55, %v3011_v26  ;;  %v3708_v20 = vmul.f32 %v7263_v44, %v6607_v10  ;;  %v3311_v15 = vld [vmem:[#allocation3 + $0x122] sm:$0xff]  ;;  %v6630_v43 = vld [vmem:[%s7102_s2 + $0x2] ss:$0 sm:$0xff]  ;;  %v6642_v57 = vld [vmem:[#allocation3 + $0x139] sm:$0xff] }
 0x33f   : > { %3902 = vst.msk [vmem:[%s5681_s26 + $0x80] sm:$0xff] %vm2326_vm3, %v3870_v61  ;;  %v3871_v35 = vmax.f32 %v3839_v56, 0.0  ;;  %v3181_v52 = vadd.f32 %v6463_v0, %v3149_v29  ;;  %v3641_v2 = vadd.f32 %v3609_v6, %v3543_v7  ;;  %v3076_v49 = vadd.f32 %v3044_v24, %v2978_v51  ;;  %v6624_v1 = vld [vmem:[#allocation5 + $0xb8] sm:$0xff]  ;;  %v6644_v56 = vpop.f32.mrf.mxu0  ;;  %v6651_v26 = vld [vmem:[%s7102_s2 + $0x4] ss:$0 sm:$0xff]  ;;  %v6659_v51 = vpop.f32.mrf.mxu1 }
 0x340   : > { %v2702_v37 = vadd.f32 %v2670_v38, %v2603_v5  ;;  %v2031_v21 = vadd.f32 %v6540_v30, %v1809_v63  ;;  %v3642_v45 = vadd.f32 %v3610_v42, %v3544_v40  ;;  %v3077_v61 = vadd.f32 %v3045_v60, %v2979_v18  ;;  %v7264_v42 = vld [vmem:[#allocation52_spill] sm:$0xff] }
 0x341   : > { %3903 = vst.msk [vmem:[%s5681_s26 + $0x88] sm:$0xff] %vm2326_vm3, %v3871_v35  ;;  %v2572_v4 = vmul.f32 %v6630_v43, %v6556_v23  ;;  %v3247_v7 = vmul.f32 %v6431_v48, %v6556_v23  ;;  %v3709_v6 = vmul.f32 %v7263_v44, %v6624_v1  ;;  %v3740_v28 = vadd.f32 %v3708_v20, %v3641_v2  ;;  %v7265_v18 = vld [vmem:[#allocation48_spill] sm:$0xff] }
 0x342   : > { %2782 = vst.msk [vmem:[#allocation4 + $0xf9] sm:$0xff] %vm2326_vm3, %v2702_v37  ;;  %v3182_v30 = vadd.f32 %v6463_v0, %v3150_v25  ;;  %v3248_v63 = vmul.f32 %v6431_v48, %v6583_v62  ;;  %v2506_v24 = vadd.f32 %v6651_v26, %v2474_v50  ;;  %v3345_v40 = vmul.f32 %v6452_v14, %v3311_v15  ;;  %v2816_v37 = vld [vmem:[#allocation4 + $0xf0] sm:$0xff] }
 0x343   : > { %v6646_v34 = vpop.f32.mrf.mxu2  ;;  %v3279_v29 = vadd.f32 %v3247_v7, %v3181_v52  ;;  %v1365_v38 = vadd.f32 %v7265_v18, %v7264_v42  ;;  %v3741_v5 = vadd.f32 %v3709_v6, %v3642_v45  ;;  %v3772_v25 = vadd.f32 %v3740_v28, %v3076_v49  ;;  %v7266_v18 = vld [vmem:[#allocation51_spill] sm:$0xff]  ;;  %v7268_v6 = vld [vmem:[#allocation54_spill] sm:$0xff] }
 0x344   : > { %v6657_v35 = vpop.f32.mrf.mxu3  ;;  %v3280_v60 = vadd.f32 %v3248_v63, %v3182_v30  ;;  %v2253_v20 = vadd.f32 %v6520_v17, %v2031_v21  ;;  %v2604_v2 = vadd.f32 %v2572_v4, %v2506_v24  ;;  %v3346_v59 = vmul.f32 %v6452_v14, %v3312_v22  ;;  %v7267_v4 = vld [vmem:[#allocation7_spill] sm:$0xff] }
 0x345   : > { %v3377_v50 = vadd.f32 %v3345_v40, %v3279_v29  ;;  %v2671_v52 = vmul.f32 %v6603_v3, %v6642_v57  ;;  %v3773_v15 = vadd.f32 %v3741_v5, %v3077_v61  ;;  %v3806_v7 = vmul.f32 %v6224_v33, %v3772_v25  ;;  %v6676_v61 = vld [vmem:[%s7102_s2 + $0xd] ss:$0 sm:$0xff] }
 0x346   : > { %v2850_v42 = vmul.f32 %v6151_v13, %v2816_v37  ;;  %v1366_v45 = vadd.f32 %v7266_v18, %v6478_v9  ;;  %v3378_v49 = vadd.f32 %v3346_v59, %v3280_v60  ;;  %v1587_v21 = vadd.f32 %v6526_v39, %v1365_v38  ;;  %v2914_v39 = vld [vmem:[#allocation4 + $0xf1] sm:$0xff] }
 0x347   : > { %3446 = vst.msk [vmem:[#allocation5 + $0xc0] sm:$0xff] %vm2326_vm3, %v3377_v50  ;;  %v2703_v17 = vadd.f32 %v2671_v52, %v2604_v2  ;;  %v1367_v28 = vadd.f32 %v7268_v6, %v7267_v4  ;;  %v3513_v30 = vmul.f32 %v6676_v61, %v6530_v11  ;;  %v6682_v9 = vmul.f32 %v6614_v54, %v6509_v19 }
 0x348   : > { %v3807_v59 = vmul.f32 %v6224_v33, %v3773_v15  ;;  %v3840_v63 = vadd.f32 %v6246_v8, %v3806_v7  ;;  %v3514_v22 = vmul.f32 %v6676_v61, %v6545_v53  ;;  %v3611_v24 = vmul.f32 %v6123_v41, %v6607_v10  ;;  %3447 = vst.msk [vmem:[#allocation5 + $0xc8] sm:$0xff] %vm2326_vm3, %v3378_v49  ;;  %v3117_v41 = vld [vmem:[#allocation3 + $0x138] sm:$0xff] }
 0x349   : > { %v2817_v29 = vld [vmem:[#allocation4 + $0xf8] sm:$0xff]  ;;  %v2287_v19 = vadd.f32 %v6384_v47, %v2253_v20  ;;  %v1810_v11 = vadd.f32 %v6585_v12, %v1587_v21  ;;  %v2882_v60 = vadd.f32 %v6170_v31, %v2850_v42  ;;  %2783 = vst.msk [vmem:[#allocation4 + $0x109] sm:$0xff] %vm2326_vm3, %v2703_v17  ;;  %v2948_v2 = vmul.f32 %v7261_v32, %v2914_v39  ;;  %v2218_v18 = vpop.f32.mrf.mxu0  ;;  %v1553_v17 = vpop.f32.mrf.mxu1 }
 0x34a   : > { %v2915_v40 = vld [vmem:[#allocation4 + $0xf9] sm:$0xff]  ;;  %v3841_v5 = vadd.f32 %v6246_v8, %v3807_v59  ;;  %v3872_v25 = vmax.f32 %v3840_v63, 0.0  ;;  %v2851_v53 = vmul.f32 %v6151_v13, %v2817_v29  ;;  %v1588_v20 = vadd.f32 %v6575_v16, %v1366_v45  ;;  %v6714_v16 = vld [vmem:[%s7102_s2 + $0xe] ss:$0 sm:$0xff]  ;;  %v6730_v29 = vld [vmem:[%s7102_s2 + $0x7] ss:$0 sm:$0xff] }
 0x34b   : > { %v3012_v38 = vld [vmem:[#allocation4 + $0xf2] sm:$0xff]  ;;  %v2949_v37 = vmul.f32 %v7261_v32, %v2915_v40  ;;  %v3013_v7 = vld [vmem:[#allocation4 + $0xfa] sm:$0xff]  ;;  %v2319_v13 = vmax.f32 %v2287_v19, 0.0  ;;  %v2032_v42 = vadd.f32 %v6589_v27, %v1810_v11  ;;  %v6708_v32 = vld [vmem:[%s7102_s2 + $0x10] ss:$0 sm:$0xff]  ;;  %v3151_v45 = vmul.f32 %v6443_v58, %v3117_v41 }
 0x34c   : > { %v3046_v50 = vmul.f32 %v7262_v55, %v3012_v38  ;;  %v1774_v52 = vpop.f32.mrf.mxu2  ;;  %v3873_v12 = vmax.f32 %v3841_v5, 0.0  ;;  %3904 = vst.msk [vmem:[%s5681_s26 + $0x90] sm:$0xff] %vm2326_vm3, %v3872_v25  ;;  %v2883_v15 = vadd.f32 %v6170_v31, %v2851_v53  ;;  %v3545_v55 = vadd.f32 %v6708_v32, %v3513_v30  ;;  %v7269_v5 = vld [vmem:[#allocation55_spill] sm:$0xff] }
 0x34d   : > { %v1996_v49 = vpop.f32.mrf.mxu3  ;;  %v3612_v31 = vmul.f32 %v6714_v16, %v6624_v1  ;;  %v1811_v27 = vadd.f32 %v6646_v34, %v1588_v20  ;;  %v2980_v21 = vadd.f32 %v2948_v2, %v2882_v60  ;;  %v2254_v30 = vadd.f32 %v6570_v46, %v2032_v42  ;;  %2408 = vst.msk [vmem:[#allocation3 + $0x141] sm:$0xff] %vm2326_vm3, %v2319_v13  ;;  %v6749_v60 = vld [vmem:[%s7102_s2 + $0xf] ss:$0 sm:$0xff]  ;;  %v7271_v20 = vld [vmem:[#allocation13_spill] sm:$0xff] }
 0x34e   : > { %3905 = vst.msk [vmem:[%s5681_s26 + $0x98] sm:$0xff] %vm2326_vm3, %v3873_v12  ;;  %v2981_v4 = vadd.f32 %v2949_v37, %v2883_v15  ;;  %v6722_v6 = vld [vmem:[#allocation5 + $0xc0] sm:$0xff]  ;;  %v1589_v59 = vadd.f32 %v6659_v51, %v1367_v28  ;;  %v3546_v63 = vadd.f32 %v6708_v32, %v3514_v22  ;;  %v3643_v39 = vadd.f32 %v3611_v24, %v3545_v55 }
 0x34f   : > { %v3047_v34 = vmul.f32 %v6730_v29, %v3013_v7  ;;  %v3710_v40 = vmul.f32 %v7263_v44, %v6722_v6  ;;  %v3078_v38 = vadd.f32 %v3046_v50, %v2980_v21  ;;  %v6736_v19 = vld [vmem:[#allocation5 + $0xc8] sm:$0xff]  ;;  %v2288_v46 = vadd.f32 %v6384_v47, %v2254_v30  ;;  %v7270_v50 = vld [vmem:[#allocation58_spill] sm:$0xff] }
 0x350   : > { %v2033_v51 = vadd.f32 %v6657_v35, %v1811_v27  ;;  %v1812_v28 = vadd.f32 %v1774_v52, %v1589_v59  ;;  %v3644_v22 = vadd.f32 %v3612_v31, %v3546_v63  ;;  %v2476_v24 = vmul.f32 %v6614_v54, %v6556_v23 }
 0x351   : > { %v2573_v11 = vmul.f32 %v6630_v43, %v6583_v62  ;;  %v1368_v44 = vadd.f32 %v7269_v5, %v6485_v36  ;;  %v3079_v25 = vadd.f32 %v3047_v34, %v2981_v4  ;;  %v3711_v35 = vmul.f32 %v6749_v60, %v6736_v19 }
 0x352   : > { %v3742_v53 = vadd.f32 %v3710_v40, %v3643_v39  ;;  %v3183_v41 = vadd.f32 %v6463_v0, %v3151_v45  ;;  %v2507_v23 = vadd.f32 %v6651_v26, %v6682_v9  ;;  %v3249_v2 = vmul.f32 %v6431_v48, %v6642_v57  ;;  %v1556_v40 = vpop.f32.mrf.mxu1 }
 0x353   : > { %v2320_v37 = vmax.f32 %v2288_v46, 0.0  ;;  %v1369_v52 = vadd.f32 %v7271_v20, %v7270_v50  ;;  %v3743_v12 = vadd.f32 %v3711_v35, %v3644_v22  ;;  %v2255_v7 = vadd.f32 %v6644_v56, %v2033_v51 }
 0x354   : > { %v1776_v36 = vpop.f32.mrf.mxu2  ;;  %v3774_v15 = vadd.f32 %v3742_v53, %v3078_v38  ;;  %v2034_v13 = vadd.f32 %v1996_v49, %v1812_v28  ;;  %v6763_v55 = vmul.f32 %v6676_v61, %v6607_v10  ;;  %v2508_v9 = vadd.f32 %v6651_v26, %v2476_v24  ;;  %v6772_v49 = vld [vmem:[#allocation3 + $0x141] sm:$0xff]  ;;  %v2220_v10 = vpop.f32.mrf.mxu0 }
 0x355   : > { %v1998_v42 = vpop.f32.mrf.mxu3  ;;  %v6768_v31 = vmul.f32 %v6614_v54, %v6583_v62  ;;  %2409 = vst.msk [vmem:[#allocation3 + $0x151] sm:$0xff] %vm2326_vm3, %v2320_v37  ;;  %v1590_v45 = vadd.f32 %v1553_v17, %v1368_v44  ;;  %v2605_v27 = vadd.f32 %v2573_v11, %v2507_v23  ;;  %v3775_v21 = vadd.f32 %v3743_v12, %v3079_v25  ;;  %v3118_v30 = vld [vmem:[#allocation3 + $0x140] sm:$0xff] }
 0x356   : > { %v3808_v4 = vmul.f32 %v6224_v33, %v3774_v15  ;;  %v3281_v56 = vadd.f32 %v3249_v2, %v3183_v41  ;;  %v3313_v59 = vld [vmem:[#allocation3 + $0x13a] sm:$0xff]  ;;  %v2672_v63 = vmul.f32 %v6603_v3, %v6772_v49  ;;  %v3152_v39 = vmul.f32 %v6443_v58, %v3118_v30  ;;  %v3314_v46 = vld [vmem:[#allocation3 + $0x142] sm:$0xff] }
 0x357   : > { %v2256_v62 = vadd.f32 %v2218_v18, %v2034_v13  ;;  %v1813_v34 = vadd.f32 %v1776_v36, %v1590_v45  ;;  %v6780_v17 = vld [vmem:[%s7102_s2 + $0x11] ss:$0 sm:$0xff]  ;;  %v3347_v51 = vmul.f32 %v6452_v14, %v3313_v59  ;;  %v2289_v28 = vadd.f32 %v6384_v47, %v2255_v7  ;;  %v2818_v18 = vld [vmem:[#allocation4 + $0x108] sm:$0xff] }
 0x358   : > { %v3809_v33 = vmul.f32 %v6780_v17, %v3775_v21  ;;  %v3842_v38 = vadd.f32 %v6246_v8, %v3808_v4  ;;  %v2574_v22 = vmul.f32 %v6630_v43, %v6642_v57  ;;  %v2704_v24 = vadd.f32 %v2672_v63, %v2605_v27  ;;  %v2916_v30 = vld [vmem:[#allocation4 + $0x109] sm:$0xff]  ;;  %v6820_v63 = vld [vmem:[%s7102_s2 + $0x8] ss:$0 sm:$0xff] }
 0x359   : > { %v3184_v11 = vadd.f32 %v6463_v0, %v3152_v39  ;;  %v3250_v5 = vmul.f32 %v6431_v48, %v6772_v49  ;;  %v3379_v35 = vadd.f32 %v3347_v51, %v3281_v56  ;;  %v1591_v53 = vadd.f32 %v1556_v40, %v1369_v52 }
 0x35a   : > { %v3843_v44 = vadd.f32 %v6246_v8, %v3809_v33  ;;  %v3874_v25 = vmax.f32 %v3842_v38, 0.0  ;;  %2784 = vst.msk [vmem:[#allocation4 + $0x111] sm:$0xff] %vm2326_vm3, %v2704_v24  ;;  %v3348_v23 = vmul.f32 %v6452_v14, %v3314_v46  ;;  %v2290_v2 = vadd.f32 %v6384_v47, %v2256_v62  ;;  %v6800_v8 = vld [vmem:[%s7102_s2 + $0x5] ss:$0 sm:$0xff]  ;;  %v7272_v62 = vld [vmem:[#allocation17_spill] sm:$0xff] }
 0x35b   : > { %v3282_v41 = vadd.f32 %v3250_v5, %v3184_v11  ;;  %v2035_v37 = vadd.f32 %v1998_v42, %v1813_v34  ;;  %v2852_v20 = vmul.f32 %v6800_v8, %v2818_v18  ;;  %v2321_v12 = vmax.f32 %v2289_v28, 0.0  ;;  %3448 = vst.msk [vmem:[#allocation5 + $0xd0] sm:$0xff] %vm2326_vm3, %v3379_v35  ;;  %v7273_v34 = vld [vmem:[#allocation60_spill] sm:$0xff]  ;;  %v6839_v24 = vld [vmem:[%s7102_s2 + $0x6] ss:$0 sm:$0xff] }
 0x35c   : > { %v1779_v36 = vpop.f32.mrf.mxu2  ;;  %v3875_v50 = vmax.f32 %v3843_v44, 0.0  ;;  %3906 = vst.msk [vmem:[%s5681_s26 + $0xa0] sm:$0xff] %vm2326_vm3, %v3874_v25  ;;  %v6803_v52 = vld [vmem:[#allocation3 + $0x151] sm:$0xff]  ;;  %v3516_v7 = vmul.f32 %v6676_v61, %v6624_v1  ;;  %v2606_v13 = vadd.f32 %v2574_v22, %v2508_v9  ;;  %v2478_v27 = vmul.f32 %v6614_v54, %v6642_v57 }
 0x35d   : > { %v1814_v15 = vadd.f32 %v1779_v36, %v1591_v53  ;;  %v3380_v42 = vadd.f32 %v3348_v23, %v3282_v41  ;;  %v2673_v45 = vmul.f32 %v6603_v3, %v6803_v52  ;;  %v2322_v21 = vmax.f32 %v2290_v2, 0.0  ;;  %2410 = vst.msk [vmem:[#allocation3 + $0x159] sm:$0xff] %vm2326_vm3, %v2321_v12  ;;  %v3119_v51 = vld [vmem:[#allocation3 + $0x150] sm:$0xff] }
 0x35e   : > { %3907 = vst.msk [vmem:[%s5681_s26 + $0xa8] sm:$0xff] %vm2326_vm3, %v3875_v50  ;;  %v2257_v4 = vadd.f32 %v2220_v10, %v2035_v37  ;;  %v2001_v56 = vpop.f32.mrf.mxu3  ;;  %v3517_v9 = vmul.f32 %v6676_v61, %v6722_v6  ;;  %v2884_v39 = vadd.f32 %v6820_v63, %v2852_v20  ;;  %v2223_v10 = vpop.f32.mrf.mxu0  ;;  %v1370_v40 = vadd.f32 %v7273_v34, %v7272_v62 }
 0x35f   : > { %3449 = vst.msk [vmem:[#allocation5 + $0xd8] sm:$0xff] %vm2326_vm3, %v3380_v42  ;;  %v2705_v59 = vadd.f32 %v2673_v45, %v2606_v13  ;;  %v2036_v1 = vadd.f32 %v2001_v56, %v1814_v15  ;;  %v3547_v33 = vadd.f32 %v6708_v32, %v6763_v55  ;;  %v3548_v38 = vadd.f32 %v6708_v32, %v3516_v7  ;;  %v1558_v56 = vpop.f32.mrf.mxu1 }
 0x360   : > { %v2291_v57 = vadd.f32 %v6384_v47, %v2257_v4  ;;  %v2509_v46 = vadd.f32 %v6651_v26, %v6768_v31  ;;  %v3613_v22 = vmul.f32 %v6714_v16, %v6722_v6  ;;  %v2510_v18 = vadd.f32 %v6651_v26, %v2478_v27  ;;  %2411 = vst.msk [vmem:[#allocation3 + $0x169] sm:$0xff] %vm2326_vm3, %v2322_v21 }
 0x361   : > { %2785 = vst.msk [vmem:[#allocation4 + $0x121] sm:$0xff] %vm2326_vm3, %v2705_v59  ;;  %v2258_v28 = vadd.f32 %v2223_v10, %v2036_v1  ;;  %v2950_v55 = vmul.f32 %v6839_v24, %v2916_v30  ;;  %v2819_v11 = vld [vmem:[#allocation4 + $0x110] sm:$0xff]  ;;  %v3518_v25 = vmul.f32 %v6676_v61, %v6736_v19  ;;  %v6849_v41 = vadd.f32 %v6708_v32, %v3517_v9 }
 0x362   : > { %v2917_v5 = vld [vmem:[#allocation4 + $0x111] sm:$0xff]  ;;  %v2323_v31 = vmax.f32 %v2291_v57, 0.0  ;;  %v2853_v6 = vmul.f32 %v6800_v8, %v2819_v11  ;;  %v3614_v23 = vmul.f32 %v6714_v16, %v6736_v19  ;;  %v3153_v50 = vmul.f32 %v6443_v58, %v3119_v51 }
 0x363   : > { %v3014_v44 = vld [vmem:[#allocation4 + $0x10a] sm:$0xff]  ;;  %v2292_v53 = vadd.f32 %v6384_v47, %v2258_v28  ;;  %v2982_v2 = vadd.f32 %v2950_v55, %v2884_v39  ;;  %v3015_v37 = vld [vmem:[#allocation4 + $0x112] sm:$0xff]  ;;  %v2479_v20 = vmul.f32 %v6614_v54, %v6772_v49  ;;  %v2575_v47 = vmul.f32 %v6630_v43, %v6772_v49 }
 0x364   : > { %v3048_v35 = vmul.f32 %v6730_v29, %v3014_v44  ;;  %v6853_v36 = vld [vmem:[#allocation5 + $0xd0] sm:$0xff]  ;;  %2412 = vst.msk [vmem:[#allocation3 + $0x171] sm:$0xff] %vm2326_vm3, %v2323_v31  ;;  %v2885_v12 = vadd.f32 %v6820_v63, %v2853_v6  ;;  %v2951_v15 = vmul.f32 %v6839_v24, %v2917_v5  ;;  %v3645_v7 = vadd.f32 %v3613_v22, %v3547_v33  ;;  %v3120_v57 = vld [vmem:[#allocation3 + $0x158] sm:$0xff]  ;;  %v1781_v6 = vpop.f32.mrf.mxu2 }
 0x365   : > { %v3712_v42 = vmul.f32 %v6749_v60, %v6853_v36  ;;  %v2324_v45 = vmax.f32 %v2292_v53, 0.0  ;;  %v3049_v21 = vmul.f32 %v6730_v29, %v3015_v37  ;;  %v2480_v4 = vmul.f32 %v6614_v54, %v6803_v52  ;;  %v6875_v39 = vld [vmem:[#allocation3 + $0x159] sm:$0xff] }
 0x366   : > { %v3080_v19 = vadd.f32 %v3048_v35, %v2982_v2  ;;  %v6863_v13 = vld [vmem:[#allocation5 + $0xd8] sm:$0xff]  ;;  %v2983_v27 = vadd.f32 %v2951_v15, %v2885_v12  ;;  %v2576_v49 = vmul.f32 %v6630_v43, %v6803_v52  ;;  %v3646_v30 = vadd.f32 %v3614_v23, %v3548_v38  ;;  %v3315_v51 = vld [vmem:[#allocation3 + $0x152] sm:$0xff]  ;;  %v3316_v23 = vld [vmem:[#allocation3 + $0x15a] sm:$0xff] }
 0x367   : > { %v3713_v59 = vmul.f32 %v6749_v60, %v6863_v13  ;;  %v3744_v1 = vadd.f32 %v3712_v42, %v3645_v7  ;;  %v3185_v9 = vadd.f32 %v6463_v0, %v3153_v50  ;;  %2413 = vst.msk [vmem:[#allocation3 + $0x181] sm:$0xff] %vm2326_vm3, %v2324_v45  ;;  %v6879_v10 = vadd.f32 %v6708_v32, %v3518_v25  ;;  %v2448_v37 = vld [vmem:[#allocation3 + $0x169] sm:$0xff]  ;;  %v6900_v12 = vld [vmem:[%s7102_s2 + $0x12] ss:$0 sm:$0xff] }
 0x368   : > { %v2511_v62 = vadd.f32 %v6651_v26, %v2479_v20  ;;  %v2607_v34 = vadd.f32 %v2575_v47, %v2509_v46  ;;  %v3081_v33 = vadd.f32 %v3049_v21, %v2983_v27  ;;  %v2820_v22 = vld [vmem:[#allocation4 + $0x120] sm:$0xff]  ;;  %v3251_v55 = vmul.f32 %v6431_v48, %v6803_v52  ;;  %v3121_v20 = vld [vmem:[#allocation3 + $0x168] sm:$0xff] }
 0x369   : > { %v3745_v38 = vadd.f32 %v3713_v59, %v3646_v30  ;;  %v3776_v28 = vadd.f32 %v3744_v1, %v3080_v19  ;;  %v1592_v11 = vadd.f32 %v1558_v56, %v1370_v40  ;;  %v6885_v5 = vadd.f32 %v6651_v26, %v2480_v4 }
 0x36a   : > { %v2608_v44 = vadd.f32 %v2576_v49, %v2510_v18  ;;  %v2674_v31 = vmul.f32 %v6603_v3, %v6875_v39  ;;  %v3154_v25 = vmul.f32 %v6443_v58, %v3120_v57  ;;  %v3283_v53 = vadd.f32 %v3251_v55, %v3185_v9 }
 0x36b   : > { %v3777_v46 = vadd.f32 %v3745_v38, %v3081_v33  ;;  %v3810_v35 = vmul.f32 %v6780_v17, %v3776_v28  ;;  %v3349_v2 = vmul.f32 %v6452_v14, %v3315_v51  ;;  %v2854_v52 = vmul.f32 %v6800_v8, %v2820_v22  ;;  %v6915_v59 = vld [vmem:[#allocation3 + $0x171] sm:$0xff] }
 0x36c   : > { %v2706_v40 = vadd.f32 %v2674_v31, %v2607_v34  ;;  %v3186_v50 = vadd.f32 %v6463_v0, %v3154_v25  ;;  %v3252_v18 = vmul.f32 %v6431_v48, %v6875_v39  ;;  %v6903_v19 = vadd.f32 %v1781_v6, %v1592_v11  ;;  %v3122_v1 = vld [vmem:[#allocation3 + $0x170] sm:$0xff] }
 0x36d   : > { %v3811_v47 = vmul.f32 %v6780_v17, %v3777_v46  ;;  %v3844_v15 = vadd.f32 %v6900_v12, %v3810_v35  ;;  %v3381_v7 = vadd.f32 %v3349_v2, %v3283_v53  ;;  %v2577_v42 = vmul.f32 %v6630_v43, %v6875_v39  ;;  %v3317_v9 = vld [vmem:[#allocation3 + $0x16a] sm:$0xff] }
 0x36e   : > { %2786 = vst.msk [vmem:[#allocation4 + $0x129] sm:$0xff] %vm2326_vm3, %v2706_v40  ;;  %v3284_v45 = vadd.f32 %v3252_v18, %v3186_v50  ;;  %v3350_v27 = vmul.f32 %v6452_v14, %v3316_v23  ;;  %v2675_v21 = vmul.f32 %v6603_v3, %v2448_v37  ;;  %v3615_v4 = vmul.f32 %v6714_v16, %v6853_v36  ;;  %v2918_v33 = vld [vmem:[#allocation4 + $0x121] sm:$0xff]  ;;  %v6925_v31 = vld [vmem:[#allocation3 + $0x181] sm:$0xff] }
 0x36f   : > { %v3845_v49 = vadd.f32 %v6900_v12, %v3811_v47  ;;  %v3876_v56 = vmax.f32 %v3844_v15, 0.0  ;;  %3450 = vst.msk [vmem:[#allocation5 + $0xe0] sm:$0xff] %vm2326_vm3, %v3381_v7  ;;  %v3155_v30 = vmul.f32 %v6443_v58, %v3121_v20  ;;  %v3616_v57 = vmul.f32 %v6714_v16, %v6863_v13 }
 0x370   : > { %v2886_v34 = vadd.f32 %v6820_v63, %v2854_v52  ;;  %v3382_v51 = vadd.f32 %v3350_v27, %v3284_v45  ;;  %v2707_v38 = vadd.f32 %v2675_v21, %v2608_v44  ;;  %v2482_v22 = vmul.f32 %v6614_v54, %v2448_v37  ;;  %v3318_v52 = vld [vmem:[#allocation3 + $0x172] sm:$0xff] }
 0x371   : > { %v3877_v28 = vmax.f32 %v3845_v49, 0.0  ;;  %3908 = vst.msk [vmem:[%s5681_s26 + $0xb0] sm:$0xff] %vm2326_vm3, %v3876_v56  ;;  %v3187_v55 = vadd.f32 %v6463_v0, %v3155_v30  ;;  %v3253_v11 = vmul.f32 %v6431_v48, %v2448_v37  ;;  %v2609_v25 = vadd.f32 %v2577_v42, %v2511_v62 }
 0x372   : > { %3451 = vst.msk [vmem:[#allocation5 + $0xe8] sm:$0xff] %vm2326_vm3, %v3382_v51  ;;  %v2676_v6 = vmul.f32 %v6603_v3, %v6915_v59  ;;  %v3156_v46 = vmul.f32 %v6443_v58, %v3122_v1  ;;  %v3351_v44 = vmul.f32 %v6452_v14, %v3317_v9  ;;  %v3647_v35 = vadd.f32 %v3615_v4, %v6849_v41  ;;  %v2645_v41 = vld [vmem:[#allocation3 + $0x199] sm:$0xff] }
 0x373   : > { %3909 = vst.msk [vmem:[%s5681_s26 + $0xb8] sm:$0xff] %vm2326_vm3, %v3877_v28  ;;  %v2952_v53 = vmul.f32 %v6839_v24, %v2918_v33  ;;  %v2578_v23 = vmul.f32 %v6630_v43, %v2448_v37  ;;  %v3285_v2 = vadd.f32 %v3253_v11, %v3187_v55  ;;  %v3254_v58 = vmul.f32 %v6431_v48, %v6915_v59 }
 0x374   : > { %2787 = vst.msk [vmem:[#allocation4 + $0x139] sm:$0xff] %vm2326_vm3, %v2707_v38  ;;  %v2708_v62 = vadd.f32 %v2676_v6, %v2609_v25  ;;  %v3188_v40 = vadd.f32 %v6463_v0, %v3156_v46  ;;  %v2580_v50 = vmul.f32 %v6630_v43, %v6925_v31  ;;  %v2514_v37 = vadd.f32 %v6651_v26, %v2482_v22  ;;  %v2003_v38 = vpop.f32.mrf.mxu3 }
 0x375   : > { %v2984_v18 = vadd.f32 %v2952_v53, %v2886_v34  ;;  %v2821_v20 = vld [vmem:[#allocation4 + $0x128] sm:$0xff]  ;;  %v3383_v7 = vadd.f32 %v3351_v44, %v3285_v2  ;;  %v2677_v42 = vmul.f32 %v6603_v3, %v6925_v31  ;;  %v3352_v21 = vmul.f32 %v6452_v14, %v3318_v52 }
 0x376   : > { %v2919_v47 = vld [vmem:[#allocation4 + $0x129] sm:$0xff]  ;;  %v2855_v45 = vmul.f32 %v6800_v8, %v2821_v20  ;;  %v6948_v27 = vld [vmem:[#allocation5 + $0xe0] sm:$0xff]  ;;  %2788 = vst.msk [vmem:[#allocation4 + $0x141] sm:$0xff] %vm2326_vm3, %v2708_v62  ;;  %v3286_v48 = vadd.f32 %v3254_v58, %v3188_v40  ;;  %v2610_v30 = vadd.f32 %v2578_v23, %v6885_v5  ;;  %v2679_v1 = vmul.f32 %v6603_v3, %v2645_v41  ;;  %v2225_v41 = vpop.f32.mrf.mxu0 }
 0x377   : > { %v3016_v15 = vld [vmem:[#allocation4 + $0x122] sm:$0xff]  ;;  %v2953_v4 = vmul.f32 %v6839_v24, %v2919_v47  ;;  %v3017_v49 = vld [vmem:[#allocation4 + $0x12a] sm:$0xff]  ;;  %v3714_v56 = vmul.f32 %v6749_v60, %v6948_v27  ;;  %3452 = vst.msk [vmem:[#allocation5 + $0xf0] sm:$0xff] %vm2326_vm3, %v3383_v7  ;;  %v2612_v51 = vadd.f32 %v2580_v50, %v2514_v37  ;;  %v3519_v14 = vmul.f32 %v6676_v61, %v6853_v36 }
 0x378   : > { %v3050_v0 = vmul.f32 %v6730_v29, %v3016_v15  ;;  %v2887_v9 = vadd.f32 %v6820_v63, %v2855_v45  ;;  %v3384_v33 = vadd.f32 %v3352_v21, %v3286_v48  ;;  %v2709_v55 = vadd.f32 %v2677_v42, %v2610_v30 }
 0x379   : > { %v6961_v28 = vld [vmem:[#allocation5 + $0xe8] sm:$0xff]  ;;  %v3746_v22 = vadd.f32 %v3714_v56, %v3647_v35  ;;  %v2037_v11 = vadd.f32 %v2003_v38, %v6903_v19  ;;  %v3648_v5 = vadd.f32 %v3616_v57, %v6879_v10  ;;  %v3051_v6 = vmul.f32 %v6730_v29, %v3017_v49 }
 0x37a   : > { %v3082_v34 = vadd.f32 %v3050_v0, %v2984_v18  ;;  %v2985_v25 = vadd.f32 %v2953_v4, %v2887_v9  ;;  %v3715_v46 = vmul.f32 %v6749_v60, %v6961_v28  ;;  %3453 = vst.msk [vmem:[#allocation5 + $0xf8] sm:$0xff] %vm2326_vm3, %v3384_v33  ;;  %v2711_v23 = vadd.f32 %v2679_v1, %v2612_v51 }
 0x37b   : > { %v2822_v53 = vld [vmem:[#allocation4 + $0x138] sm:$0xff]  ;;  %2789 = vst.msk [vmem:[#allocation4 + $0x151] sm:$0xff] %vm2326_vm3, %v2709_v55  ;;  %v3520_v36 = vmul.f32 %v6676_v61, %v6863_v13  ;;  %v3551_v10 = vadd.f32 %v6708_v32, %v3519_v14  ;;  %v3617_v57 = vmul.f32 %v6714_v16, %v6948_v27  ;;  %v3618_v13 = vmul.f32 %v6714_v16, %v6961_v28  ;;  %v4286_v14 = vld [vmem:[%s7102_s2] ss:$0 sm:$0xff] }
 0x37c   : > { %v3778_v44 = vadd.f32 %v3746_v22, %v3082_v34  ;;  %v3083_v35 = vadd.f32 %v3051_v6, %v2985_v25  ;;  %v3747_v19 = vadd.f32 %v3715_v46, %v3648_v5  ;;  %v2920_v2 = vld [vmem:[#allocation4 + $0x139] sm:$0xff]  ;;  %v2856_v62 = vmul.f32 %v6800_v8, %v2822_v53  ;;  %2791 = vst.msk [vmem:[#allocation4 + $0x169] sm:$0xff] %vm2326_vm3, %v2711_v23  ;;  %v3123_v23 = vld [vmem:[#allocation3 + $0x180] sm:$0xff] }
 0x37d   : > { %v2823_v40 = vld [vmem:[#allocation4 + $0x140] sm:$0xff]  ;;  %v2259_v15 = vadd.f32 %v2225_v41, %v2037_v11  ;;  %v2954_v42 = vmul.f32 %v6839_v24, %v2920_v2  ;;  %v3552_v56 = vadd.f32 %v6708_v32, %v3520_v36  ;;  %v3649_v30 = vadd.f32 %v3617_v57, %v3551_v10 }
 0x37e   : > { %v3812_v52 = vmul.f32 %v6780_v17, %v3778_v44  ;;  %v2921_v58 = vld [vmem:[#allocation4 + $0x141] sm:$0xff]  ;;  %v3779_v18 = vadd.f32 %v3747_v19, %v3083_v35  ;;  %v2857_v20 = vmul.f32 %v6800_v8, %v2823_v40  ;;  %v6981_v47 = vld [vmem:[#allocation5 + $0xf0] sm:$0xff]  ;;  %v2888_v7 = vadd.f32 %v6820_v63, %v2856_v62 }
 0x37f   : > { %v3018_v50 = vld [vmem:[#allocation4 + $0x13a] sm:$0xff]  ;;  %v3019_v45 = vld [vmem:[#allocation4 + $0x142] sm:$0xff]  ;;  %v2955_v4 = vmul.f32 %v6839_v24, %v2921_v58  ;;  %v3716_v49 = vmul.f32 %v6749_v60, %v6981_v47  ;;  %v2293_v22 = vadd.f32 %v4286_v14, %v2259_v15  ;;  %v3650_v55 = vadd.f32 %v3618_v13, %v3552_v56  ;;  %v2646_v15 = vld [vmem:[#allocation3 + $0x1a1] sm:$0xff] }
 0x380   : > { %v3846_v37 = vadd.f32 %v6900_v12, %v3812_v52  ;;  %v3052_v0 = vmul.f32 %v6730_v29, %v3018_v50  ;;  %v3813_v48 = vmul.f32 %v6780_v17, %v3779_v18  ;;  %v2889_v21 = vadd.f32 %v6820_v63, %v2857_v20  ;;  %v4287_v52 = vld [vmem:[%s7102_s2 + $0x9] ss:$0 sm:$0xff]  ;;  %v4288_v18 = vld [vmem:[%s7102_s2 + $0xc] ss:$0 sm:$0xff] }
 0x381   : > { %v2986_v9 = vadd.f32 %v2954_v42, %v2888_v7  ;;  %v6993_v34 = vld [vmem:[#allocation5 + $0xf8] sm:$0xff]  ;;  %v3053_v38 = vmul.f32 %v6730_v29, %v3019_v45  ;;  %v3748_v25 = vadd.f32 %v3716_v49, %v3649_v30  ;;  %v2325_v36 = vmax.f32 %v2293_v22, 0.0 }
 0x382   : > { %v3878_v1 = vmax.f32 %v3846_v37, 0.0  ;;  %v3847_v33 = vadd.f32 %v6900_v12, %v3813_v48  ;;  %v2987_v51 = vadd.f32 %v2955_v4, %v2889_v21  ;;  %v3717_v5 = vmul.f32 %v6749_v60, %v6993_v34 }
 0x383   : > { %v3084_v11 = vadd.f32 %v3052_v0, %v2986_v9  ;;  %2414 = vst.msk [vmem:[#allocation3 + $0x189] sm:$0xff] %vm2326_vm3, %v2325_v36  ;;  %v2481_v2 = vmul.f32 %v6614_v54, %v6875_v39  ;;  %v3157_v62 = vmul.f32 %v4287_v52, %v3123_v23  ;;  %v2483_v40 = vmul.f32 %v6614_v54, %v6915_v59 }
 0x384   : > { %3910 = vst.msk [vmem:[%s5681_s26 + $0xc0] sm:$0xff] %vm2326_vm3, %v3878_v1  ;;  %v3879_v6 = vmax.f32 %v3847_v33, 0.0  ;;  %v3085_v46 = vadd.f32 %v3053_v38, %v2987_v51  ;;  %v3749_v44 = vadd.f32 %v3717_v5, %v3650_v55  ;;  %v2579_v58 = vmul.f32 %v6630_v43, %v6915_v59  ;;  %v4289_v59 = vld [vmem:[%s7102_s2 + $0xa] ss:$0 sm:$0xff]  ;;  %v4290_v1 = vld [vmem:[%s7102_s2 + $0xb] ss:$0 sm:$0xff] }
 0x385   : > { %v3780_v53 = vadd.f32 %v3748_v25, %v3084_v11  ;;  %v2513_v39 = vadd.f32 %v6651_v26, %v2481_v2  ;;  %v3189_v20 = vadd.f32 %v4288_v18, %v3157_v62  ;;  %v2515_v37 = vadd.f32 %v6651_v26, %v2483_v40  ;;  %v2824_v26 = vld [vmem:[#allocation4 + $0x150] sm:$0xff]  ;;  %v2826_v33 = vld [vmem:[#allocation4 + $0x168] sm:$0xff] }
 0x386   : > { %3911 = vst.msk [vmem:[%s5681_s26 + $0xc8] sm:$0xff] %vm2326_vm3, %v3879_v6  ;;  %v3781_v35 = vadd.f32 %v3749_v44, %v3085_v46  ;;  %v3255_v7 = vmul.f32 %v4289_v59, %v6925_v31  ;;  %v2680_v4 = vmul.f32 %v6603_v3, %v2646_v15  ;;  %v3521_v5 = vmul.f32 %v6676_v61, %v6948_v27  ;;  %v2922_v27 = vld [vmem:[#allocation4 + $0x151] sm:$0xff] }
 0x387   : > { %v3814_v19 = vmul.f32 %v6780_v17, %v3780_v53  ;;  %v2611_v54 = vadd.f32 %v2579_v58, %v2513_v39  ;;  %v2860_v25 = vmul.f32 %v6800_v8, %v2826_v33  ;;  %v3522_v6 = vmul.f32 %v6676_v61, %v6961_v28 }
 0x388   : > { %v3815_v10 = vmul.f32 %v6780_v17, %v3781_v35  ;;  %v3287_v56 = vadd.f32 %v3255_v7, %v3189_v20  ;;  %v3523_v46 = vmul.f32 %v6676_v61, %v6981_v47  ;;  %v3524_v53 = vmul.f32 %v6676_v61, %v6993_v34  ;;  %v2924_v35 = vld [vmem:[#allocation4 + $0x169] sm:$0xff] }
 0x389   : > { %v3848_v57 = vadd.f32 %v6900_v12, %v3814_v19  ;;  %v3619_v23 = vmul.f32 %v6714_v16, %v6981_v47  ;;  %v3686_v19 = vld [vmem:[#allocation5 + $0x110] sm:$0xff]  ;;  %v3553_v28 = vadd.f32 %v6708_v32, %v3521_v5  ;;  %v2892_v2 = vadd.f32 %v6820_v63, %v2860_v25 }
 0x38a   : > { %v3849_v50 = vadd.f32 %v6900_v12, %v3815_v10  ;;  %v2547_v42 = vld [vmem:[#allocation3 + $0x189] sm:$0xff]  ;;  %v3620_v61 = vmul.f32 %v6714_v16, %v6993_v34  ;;  %v2956_v47 = vmul.f32 %v6839_v24, %v2922_v27  ;;  %v3556_v62 = vadd.f32 %v6708_v32, %v3524_v53 }
 0x38b   : > { %v3880_v41 = vmax.f32 %v3848_v57, 0.0  ;;  %v3124_v45 = vld [vmem:[#allocation3 + $0x188] sm:$0xff]  ;;  %v2581_v48 = vmul.f32 %v6630_v43, %v2547_v42  ;;  %v2678_v21 = vmul.f32 %v6603_v3, %v2547_v42  ;;  %v3256_v14 = vmul.f32 %v4289_v59, %v2547_v42 }
 0x38c   : > { %v3881_v13 = vmax.f32 %v3849_v50, 0.0  ;;  %v3319_v0 = vld [vmem:[#allocation3 + $0x182] sm:$0xff]  ;;  %v3158_v49 = vmul.f32 %v4287_v52, %v3124_v45  ;;  %v3320_v30 = vld [vmem:[#allocation3 + $0x18a] sm:$0xff]  ;;  %v2858_v43 = vmul.f32 %v6800_v8, %v2824_v26  ;;  %v3554_v57 = vadd.f32 %v6708_v32, %v3522_v6 }
 0x38d   : > { %3912 = vst.msk [vmem:[%s5681_s26 + $0xd0] sm:$0xff] %vm2326_vm3, %v3880_v41  ;;  %v3353_v9 = vmul.f32 %v4290_v1, %v3319_v0  ;;  %v2613_v31 = vadd.f32 %v2581_v48, %v2515_v37  ;;  %v2710_v51 = vadd.f32 %v2678_v21, %v2611_v54  ;;  %v3354_v11 = vmul.f32 %v4290_v1, %v3320_v30  ;;  %v3687_v10 = vld [vmem:[#allocation5 + $0x118] sm:$0xff] }
 0x38e   : > { %3913 = vst.msk [vmem:[%s5681_s26 + $0xd8] sm:$0xff] %vm2326_vm3, %v3881_v13  ;;  %v3190_v38 = vadd.f32 %v4288_v18, %v3158_v49  ;;  %v2890_v36 = vadd.f32 %v6820_v63, %v2858_v43  ;;  %v3555_v52 = vadd.f32 %v6708_v32, %v3523_v46  ;;  %v3651_v40 = vadd.f32 %v3619_v23, %v3553_v28 }
 0x38f   : > { %v3385_v22 = vadd.f32 %v3353_v9, %v3287_v56  ;;  %v2712_v55 = vadd.f32 %v2680_v4, %v2613_v31  ;;  %2790 = vst.msk [vmem:[#allocation4 + $0x159] sm:$0xff] %vm2326_vm3, %v2710_v51  ;;  %v2958_v58 = vmul.f32 %v6839_v24, %v2924_v35  ;;  %v3720_v13 = vmul.f32 %v6749_v60, %v3686_v19 }
 0x390   : > { %v3288_v3 = vadd.f32 %v3256_v14, %v3190_v38  ;;  %v2988_v18 = vadd.f32 %v2956_v47, %v2890_v36  ;;  %v3721_v34 = vmul.f32 %v6749_v60, %v3687_v10 }
 0x391   : > { %3454 = vst.msk [vmem:[#allocation5 + $0x100] sm:$0xff] %vm2326_vm3, %v3385_v22  ;;  %v2990_v59 = vadd.f32 %v2958_v58, %v2892_v2 }
 0x392   : > { %2792 = vst.msk [vmem:[#allocation4 + $0x171] sm:$0xff] %vm2326_vm3, %v2712_v55  ;;  %v3386_v44 = vadd.f32 %v3354_v11, %v3288_v3 }
 0x394   : > { %3455 = vst.msk [vmem:[#allocation5 + $0x108] sm:$0xff] %vm2326_vm3, %v3386_v44 }
 0x396   : > { %v2825_v50 = vld [vmem:[#allocation4 + $0x158] sm:$0xff] }
 0x397   : > { %v2923_v41 = vld [vmem:[#allocation4 + $0x159] sm:$0xff]  ;;  %v2859_v20 = vmul.f32 %v6800_v8, %v2825_v50 }
 0x398   : > { %v3020_v39 = vld [vmem:[#allocation4 + $0x152] sm:$0xff]  ;;  %v3021_v15 = vld [vmem:[#allocation4 + $0x15a] sm:$0xff]  ;;  %v2957_v42 = vmul.f32 %v6839_v24, %v2923_v41 }
 0x399   : > { %v3054_v37 = vmul.f32 %v6730_v29, %v3020_v39  ;;  %v3587_v54 = vld [vmem:[#allocation5 + $0x100] sm:$0xff]  ;;  %v2827_v7 = vld [vmem:[#allocation4 + $0x170] sm:$0xff]  ;;  %v2891_v4 = vadd.f32 %v6820_v63, %v2859_v20  ;;  %v3055_v49 = vmul.f32 %v6730_v29, %v3021_v15 }
 0x39a   : > { %v2925_v32 = vld [vmem:[#allocation4 + $0x171] sm:$0xff]  ;;  %v3621_v0 = vmul.f32 %v6714_v16, %v3587_v54  ;;  %v3718_v48 = vmul.f32 %v6749_v60, %v3587_v54  ;;  %v2861_v21 = vmul.f32 %v6800_v8, %v2827_v7  ;;  %v3652_v8 = vadd.f32 %v3620_v61, %v3554_v57 }
 0x39b   : > { %v3022_v45 = vld [vmem:[#allocation4 + $0x16a] sm:$0xff]  ;;  %v2959_v56 = vmul.f32 %v6839_v24, %v2925_v32  ;;  %v3023_v30 = vld [vmem:[#allocation4 + $0x172] sm:$0xff]  ;;  %v3086_v1 = vadd.f32 %v3054_v37, %v2988_v18  ;;  %v2989_v38 = vadd.f32 %v2957_v42, %v2891_v4 }
 0x39c   : > { %v3056_v26 = vmul.f32 %v6730_v29, %v3022_v45  ;;  %v3588_v9 = vld [vmem:[#allocation5 + $0x108] sm:$0xff]  ;;  %v3653_v33 = vadd.f32 %v3621_v0, %v3555_v52  ;;  %v3750_v31 = vadd.f32 %v3718_v48, %v3651_v40  ;;  %v2893_v51 = vadd.f32 %v6820_v63, %v2861_v21 }
 0x39d   : > { %v3622_v22 = vmul.f32 %v6714_v16, %v3588_v9  ;;  %v3719_v43 = vmul.f32 %v6749_v60, %v3588_v9  ;;  %v3057_v5 = vmul.f32 %v6730_v29, %v3023_v30  ;;  %v3087_v24 = vadd.f32 %v3055_v49, %v2989_v38 }
 0x39e   : > { %v3088_v14 = vadd.f32 %v3056_v26, %v2990_v59  ;;  %v3752_v55 = vadd.f32 %v3720_v13, %v3653_v33  ;;  %v3782_v3 = vadd.f32 %v3750_v31, %v3086_v1  ;;  %v2991_v11 = vadd.f32 %v2959_v56, %v2893_v51 }
 0x39f   : > { %v3654_v25 = vadd.f32 %v3622_v22, %v3556_v62  ;;  %v3751_v6 = vadd.f32 %v3719_v43, %v3652_v8 }
 0x3a0   : > { %v3784_v46 = vadd.f32 %v3752_v55, %v3088_v14  ;;  %v3816_v44 = vmul.f32 %v6780_v17, %v3782_v3  ;;  %v3089_v63 = vadd.f32 %v3057_v5, %v2991_v11 }
 0x3a1   : > { %v3753_v53 = vadd.f32 %v3721_v34, %v3654_v25  ;;  %v3783_v16 = vadd.f32 %v3751_v6, %v3087_v24 }
 0x3a2   : > { %v3818_v60 = vmul.f32 %v6780_v17, %v3784_v46  ;;  %v3850_v23 = vadd.f32 %v6900_v12, %v3816_v44 }
 0x3a3   : > { %v3785_v27 = vadd.f32 %v3753_v53, %v3089_v63  ;;  %v3817_v29 = vmul.f32 %v6780_v17, %v3783_v16 }
 0x3a4   : > { %v3852_v36 = vadd.f32 %v6900_v12, %v3818_v60  ;;  %v3882_v35 = vmax.f32 %v3850_v23, 0.0 }
 0x3a5   : > { %v3819_v19 = vmul.f32 %v6780_v17, %v3785_v27  ;;  %v3851_v28 = vadd.f32 %v6900_v12, %v3817_v29 }
 0x3a6   : > { %v3884_v2 = vmax.f32 %v3852_v36, 0.0  ;;  %3914 = vst.msk [vmem:[%s5681_s26 + $0xe0] sm:$0xff] %vm2326_vm3, %v3882_v35 }
 0x3a7   : > { %v3853_v10 = vadd.f32 %v6900_v12, %v3819_v19  ;;  %v3883_v57 = vmax.f32 %v3851_v28, 0.0 }
 0x3a8   : > { %3916 = vst.msk [vmem:[%s5681_s26 + $0xf0] sm:$0xff] %vm2326_vm3, %v3884_v2 }
 0x3a9   : > { %v3885_v52 = vmax.f32 %v3853_v10, 0.0  ;;  %3915 = vst.msk [vmem:[%s5681_s26 + $0xe8] sm:$0xff] %vm2326_vm3, %v3883_v57 }
 0x3ab   : > { %3917 = vst.msk [vmem:[%s5681_s26 + $0xf8] sm:$0xff] %vm2326_vm3, %v3885_v52 }
 0x3ac PF: > { %s13_s12 = sadd.s32 1, %s4297_s12  }
 0x3ad   : > { %p10_p4 = scmp.ge.s32.totalorder %s13_s12, 4  }
 0x3af   :  { %12 = sbr.rel (!%p10_p4) target bundleno = 1 (0x1), region = 76 }

</bundles_post_ra>
